<compile_context>
chip_gen: v6e
topology: v6e:2x2x1
jax: 0.10.0
libtpu: 0.0.40
codegen_flags: <defaults>
</compile_context>

<pallas_src>
import jax
import jax.numpy as jnp
import numpy as np
from jax.experimental import pallas as pl
from jax.experimental.pallas import tpu as pltpu

LANE = 128   # TPU lane width; all feature axes are zero-padded to this
SUB = 8      # sublane tile (bias block rows)
TB = 256     # batch tile: fills the MXU M-dim; grid forced to >=2 steps (v7x megacore)


def _rup(x, m):
  return (x + m - 1) // m * m


def _sigmoid(x):
  # One EUP push per element instead of exp + reciprocal.
  return 0.5 * jnp.tanh(0.5 * x) + 0.5


# ----------------------------- Pallas kernel -------------------------------
def _make_kernel(offs, DP, FP):
  r_ab, r_ef, r_w1, r_w2, r_w3, r_bias = offs

  def kernel(act_ref, w_ref, out_ref):
    f32 = jnp.float32
    dot = lambda a, b: jnp.dot(a, b, preferred_element_type=f32)

    acts = act_ref[...]                                   # (TB, DP): [kn | prompt | exer]

    # static, lane-aligned carves out of the single resident weight slab
    w_ab  = w_ref[r_ab:r_ab + DP, 0:2 * DP]               # [gen-fold | fc1 prompt-half]
    w_e   = w_ref[r_ef:r_ef + DP, 0:DP]                   # kn_low^T on the exercise rows
    w_f1k = w_ref[r_ef:r_ef + DP, DP:2 * DP]              # fc1 knowledge-half
    w_w1  = w_ref[r_w1:r_w1 + DP, 0:FP]                   # w1 student cols, pre-tiled (k,o)
    w_w2  = w_ref[r_w2:r_w2 + DP, 0:FP]
    w_w3  = w_ref[r_w3:r_w3 + FP, 0:DP]                   # block-diag w3 (o-reduction on MXU)
    w_f2k = w_ref[r_w3:r_w3 + DP, DP:2 * DP]              # fc2 knowledge-half (co-packed)
    gen_b  = w_ref[r_bias + 0:r_bias + 1, 0:DP]           # gen_b folded through kn_low
    fc1_b  = w_ref[r_bias + 1:r_bias + 2, 0:DP]
    fc2_b  = w_ref[r_bias + 2:r_bias + 3, 0:DP]           # fc2 bias + folded conv path
    b3_row = w_ref[r_bias + 3:r_bias + 4, 0:DP]
    prefk  = w_ref[r_bias + 4:r_bias + 5, 0:FP]           # (kn_low @ w1_k.T) flattened
    diffk  = w_ref[r_bias + 5:r_bias + 6, 0:FP]           # (kn_low @ w2_k.T) flattened
    kmask  = w_ref[r_bias + 6:r_bias + 7, 0:DP]           # 1.0 on the kn lanes

    # --- student branch (gen folded into kn_low; gen + fc1-prompt in ONE matmul) ---
    x_ab = dot(acts, w_ab)                                # (TB, 2*DP)
    old_stu = _sigmoid(x_ab[:, 0:DP] + gen_b)
    stu_emb = _sigmoid(dot(old_stu, w_f1k) + x_ab[:, DP:2 * DP] + fc1_b)

    # --- exercise branch (conv path already folded into fc2_b) ---
    old_exer = _sigmoid(dot(acts, w_e))
    exer_emb = _sigmoid(dot(old_exer, w_f2k) + fc2_b)

    # --- prednet: flattened (k, o) lane axis, reductions on the MXU ---
    pref = _sigmoid(dot(stu_emb, w_w1) + prefk)           # (TB, FP)
    diff = _sigmoid(dot(exer_emb, w_w2) + diffk)
    o = _sigmoid(dot(pref - diff, w_w3) + b3_row)         # (TB, DP)

    kn = acts * kmask                                     # only the kn lanes survive; aligned with o
    num = jnp.sum(o * kn, axis=1, keepdims=True)          # (TB, 1)
    cnt = jnp.sum(kn, axis=1, keepdims=True)
    res = num * pl.reciprocal(jnp.maximum(cnt, 1.0), approx=True)
    # TODO(synk): for production batches (TB>=1024) transpose the (TB,1) column
    # into (TB//128,128) lane-dense tiles instead of broadcasting to 128 lanes.
    out_ref[...] = jnp.broadcast_to(res, out_ref.shape)

  return kernel


# --------------------- parameter packing (done once) -------------------------
def pack_params(params):
  """Hoist all input-independent compute and pack the weights into one slab."""
  f32 = jnp.float32
  kn_low = jnp.asarray(params["knowledge_emb"], f32)            # (K, L)
  K, L = kn_low.shape
  P = params["prompt_stu"].shape[1]
  DP = LANE
  assert K + P + L <= DP, "packed activation lanes must fit one 128-lane tile"
  F = K * K
  FP = _rup(F, LANE)
  W = max(2 * DP, FP)

  w1 = jnp.asarray(params["w1"], f32)          # (K, K+L)
  w2 = jnp.asarray(params["w2"], f32)
  fc1_w = jnp.asarray(params["fc1_w"], f32)    # (K, P+K)
  fc2_w = jnp.asarray(params["fc2_w"], f32)
  w3 = jnp.asarray(params["w3"], f32).reshape(-1)   # (K,)
  b3 = jnp.asarray(params["b3"], f32).reshape(())   # scalar
  gen_w = jnp.asarray(params["gen_w"], f32)         # (L, P)
  gen_b = jnp.asarray(params["gen_b"], f32)         # (L,)

  # ---- hoisted, input-independent constants ----
  conv_out = (jnp.asarray(params["conv_w"], f32).reshape(1, -1)
              @ jnp.asarray(params["s_exer_vectors"], f32)
              + jnp.asarray(params["conv_b"], f32).reshape(1, 1))           # (1, P)
  fc2_b_eff = jnp.asarray(params["fc2_b"], f32) + (conv_out @ fc2_w[:, :P].T).reshape(-1)
  gen_fold = gen_w.T @ kn_low.T             # (P, K): gen layer folded through kn_low
  gen_b_fold = gen_b @ kn_low.T             # (K,)
  pref_k = (kn_low @ w1[:, K:].T).reshape(-1)    # (K*K,)
  diff_k = (kn_low @ w2[:, K:].T).reshape(-1)

  # activation lane layout: kn [0,K), prompt [K,K+P), exer [K+P,K+P+L)
  o_pr, o_ex = K, K + P

  # [gen-fold | fc1 prompt-half] -> one (DP, 2*DP) matmul against the acts panel
  w_ab = jnp.zeros((DP, W), f32)
  w_ab = w_ab.at[o_pr:o_pr + P, 0:K].set(gen_fold)
  w_ab = w_ab.at[o_pr:o_pr + P, DP:DP + K].set(fc1_w[:, :P].T)

  # [kn_low^T (exer rows) | fc1 knowledge-half] packed two-abreast
  w_ef = jnp.zeros((DP, W), f32)
  w_ef = w_ef.at[o_ex:o_ex + L, 0:K].set(kn_low.T)
  w_ef = w_ef.at[0:K, DP:DP + K].set(fc1_w[:, P:].T)

  # cols k*K + o hold w1[o, i] -> stu_emb @ w1t lands in the flat (k,o) layout
  w1t = jnp.zeros((DP, W), f32).at[0:K, 0:F].set(jnp.tile(w1[:, :K].T, (1, K)))
  w2t = jnp.zeros((DP, W), f32).at[0:K, 0:F].set(jnp.tile(w2[:, :K].T, (1, K)))

  # w3_blk[k*K+o, k'] = w3[o]*delta(k,k') -> MXU does the o-reduction;
  # fc2 knowledge-half co-packed into the spare lanes of this band.
  w3_blk = (jnp.eye(K, dtype=f32)[:, None, :] * w3[None, :, None]).reshape(F, K)
  w3b = jnp.zeros((FP, W), f32)
  w3b = w3b.at[0:F, 0:K].set(w3_blk)
  w3b = w3b.at[0:K, DP:DP + K].set(fc2_w[:, P:].T)

  # ---- bias / constant-row block (8 sublanes) ----
  bias = jnp.zeros((SUB, W), f32)
  bias = bias.at[0, 0:K].set(gen_b_fold)
  bias = bias.at[1, 0:K].set(jnp.asarray(params["fc1_b"], f32))
  bias = bias.at[2, 0:K].set(fc2_b_eff)
  bias = bias.at[3, 0:K].set(jnp.full((K,), b3))
  bias = bias.at[4, 0:F].set(pref_k)
  bias = bias.at[5, 0:F].set(diff_k)
  bias = bias.at[6, 0:K].set(jnp.ones((K,), f32))           # kn-lane mask

  blocks = [w_ab, w_ef, w1t, w2t, w3b, bias]
  offs, r = [], 0
  for blk in blocks:
    offs.append(r)
    r += blk.shape[0]
  slab = jnp.concatenate(blocks, axis=0)                    # (4*DP + FP + 8, W)
  meta = dict(K=K, L=L, P=P, DP=DP, FP=FP, W=W, offs=tuple(offs))
  return slab, meta


# ------------------------------- wrapper ------------------------------------
def target_net2_forward(params, stu_id, exer_id, kn_emb, *, slab=None, meta=None):
  if slab is None:
    slab, meta = pack_params(params)
  K, L, P = meta["K"], meta["L"], meta["P"]
  DP, FP = meta["DP"], meta["FP"]

  B = stu_id.shape[0]
  B_pad = max(_rup(B, TB), 2 * TB)   # >= 2 grid steps so v7x can use both TensorCores

  # TODO(synk): for production batch sizes, fuse these embedding gathers into the
  # kernel (scalar-prefetch ids + manual DMA) instead of materializing acts in HBM.
  prompt = jnp.asarray(params["prompt_stu"], jnp.float32)[stu_id]        # (B, P)
  exer_raw = jnp.asarray(params["k_difficulty"], jnp.float32)[exer_id]   # (B, L)

  # single 128-lane activation panel: [kn | prompt | exer], zero-padded batch rows
  acts = jnp.zeros((B_pad, DP), jnp.float32)
  acts = acts.at[:B, 0:K].set(jnp.asarray(kn_emb, jnp.float32))
  acts = acts.at[:B, K:K + P].set(prompt)
  acts = acts.at[:B, K + P:K + P + L].set(exer_raw)

  kernel = _make_kernel(meta["offs"], DP, FP)

  out = pl.pallas_call(
      kernel,
      out_shape=jax.ShapeDtypeStruct((B_pad, LANE), jnp.float32),
      grid=(B_pad // TB,),
      in_specs=[
          pl.BlockSpec((TB, DP), lambda i: (i, 0)),
          pl.BlockSpec(slab.shape, lambda i: (0, 0)),   # weight slab stays VMEM-resident
      ],
      out_specs=pl.BlockSpec((TB, LANE), lambda i: (i, 0)),
      compiler_params=pltpu.CompilerParams(
          dimension_semantics=("parallel",)),
  )(acts, slab)

  return out[:B, :1]


# --------------------------- pure-JAX reference ------------------------------
def target_net2_reference(params, stu_id, exer_id, kn_emb):
  hi = jax.lax.Precision.HIGHEST
  kn_low = params["knowledge_emb"]                           # (K, L)
  K, L = kn_low.shape
  prompt = params["prompt_stu"][stu_id]                      # (B, P)
  B, P = prompt.shape

  old_stu = jnp.dot(prompt, params["gen_w"].T, precision=hi) + params["gen_b"]
  old_stu = jax.nn.sigmoid(jnp.dot(old_stu, kn_low.T, precision=hi))
  new_stu = jnp.concatenate([prompt, old_stu], axis=1)
  stu_emb = jax.nn.sigmoid(jnp.dot(new_stu, params["fc1_w"].T, precision=hi) + params["fc1_b"])
  stu_vec = jnp.broadcast_to(stu_emb[:, None, :], (B, K, K))

  old_exer = params["k_difficulty"][exer_id]
  old_exer = jax.nn.sigmoid(jnp.dot(old_exer, kn_low.T, precision=hi))
  conv_out = jnp.dot(params["conv_w"].reshape(1, -1), params["s_exer_vectors"],
                     precision=hi) + params["conv_b"]        # (1, P)
  new_exer = jnp.concatenate([jnp.broadcast_to(conv_out, (B, P)), old_exer], axis=1)
  exer_emb = jax.nn.sigmoid(jnp.dot(new_exer, params["fc2_w"].T, precision=hi) + params["fc2_b"])
  exer_vec = jnp.broadcast_to(exer_emb[:, None, :], (B, K, K))

  kn_vec = jnp.broadcast_to(kn_low[None], (B, K, L))
  pref = jax.nn.sigmoid(jnp.einsum("bkf,of->bko",
                                   jnp.concatenate([stu_vec, kn_vec], axis=2),
                                   params["w1"], precision=hi))
  diff = jax.nn.sigmoid(jnp.einsum("bkf,of->bko",
                                   jnp.concatenate([exer_vec, kn_vec], axis=2),
                                   params["w2"], precision=hi))
  o = jax.nn.sigmoid(jnp.einsum("bko,po->bkp", pref - diff, params["w3"],
                                precision=hi) + params["b3"])   # (B, K, 1)
  sum_out = jnp.sum(o * kn_emb[..., None], axis=1)
  count = jnp.sum(kn_emb, axis=1, keepdims=True)
  return sum_out / count


# ---------------------------------- main -------------------------------------
if __name__ == "__main__":
  knowledge_n, exer_n, student_n = 16, 20, 30
  low_dim, pp_dim = 8, 12
  s_ranges = [0, 1, 2]
  S = len(s_ranges)
  B = 4
  K, L, P = knowledge_n, low_dim, pp_dim

  root = jax.random.PRNGKey(0)
  keys = jax.random.split(root, 20)

  def nrm(k, shape, scale=0.3):
    return (scale * jax.random.normal(k, shape)).astype(jnp.float32)

  params = {
      "prompt_stu":     nrm(keys[0], (student_n, P)),
      "gen_w":          nrm(keys[1], (L, P)),
      "gen_b":          nrm(keys[2], (L,)),
      "knowledge_emb":  nrm(keys[3], (K, L)),
      "k_difficulty":   nrm(keys[4], (exer_n, L)),
      "s_exer_vectors": jax.random.uniform(keys[5], (S, P), dtype=jnp.float32),
      "conv_w":         nrm(keys[6], (S,)),
      "conv_b":         nrm(keys[7], (1,)),
      "fc1_w":          nrm(keys[8], (K, P + K)),
      "fc1_b":          nrm(keys[9], (K,)),
      "fc2_w":          nrm(keys[10], (K, P + K)),
      "fc2_b":          nrm(keys[11], (K,)),
      "w1":             nrm(keys[12], (K, K + L)),   # prednet_full1 (no bias)
      "w2":             nrm(keys[13], (K, K + L)),   # prednet_full2 (no bias)
      "w3":             nrm(keys[14], (1, K)),       # prednet_full3
      "b3":             nrm(keys[15], (1,)),
  }

  stu_id = jax.random.randint(keys[16], (B,), 0, student_n)
  exer_id = jax.random.randint(keys[17], (B,), 0, exer_n)
  kn_emb = (jax.random.uniform(keys[18], (B, K)) > 0.5).astype(jnp.float32)
  kn_emb = kn_emb.at[:, 0].set(1.0)   # ensure non-zero concept count per row

  slab, meta = pack_params(params)    # done once, reused across calls
  out = target_net2_forward(params, stu_id, exer_id, kn_emb, slab=slab, meta=meta)
  out = jax.block_until_ready(out)

  ref = target_net2_reference(params, stu_id, exer_id, kn_emb)
  np.testing.assert_allclose(np.asarray(out), np.asarray(ref), atol=1e-2, rtol=1e-2)

  print("KERNEL_OK")
</pallas_src>

<mosaic_0001>
module attributes {stable_mosaic.version = 11 : i64} {
  func.func @kernel(%arg0: i32, %arg1: memref<256x128xf32, #tpu.memory_space<vmem>>, %arg2: memref<776x256xf32, #tpu.memory_space<vmem>>, %arg3: memref<256x128xf32, #tpu.memory_space<vmem>>) attributes {dimension_semantics = [#tpu.dimension_semantics<parallel>], iteration_bounds = array<i64: 2>, scalar_prefetch = 0 : i64, scratch_operands = 0 : i64, tpu.core_type = #tpu.core_type<tc>, window_params = [{transform_indices = @transform_0, window_bounds = array<i64: 256, 128>}, {pipeline_mode = #tpu.pipeline_mode<synchronous>, transform_indices = @transform_1, window_bounds = array<i64: 776, 256>}, {transform_indices = @transform_2, window_bounds = array<i64: 256, 128>}]} {
    %c0 = arith.constant 0 : index
    %c0_0 = arith.constant 0 : index
    %0 = vector.load %arg1[%c0, %c0_0] : memref<256x128xf32, #tpu.memory_space<vmem>>, vector<256x128xf32>
    %c0_1 = arith.constant 0 : index
    %c0_2 = arith.constant 0 : index
    %1 = vector.load %arg2[%c0_1, %c0_2] : memref<776x256xf32, #tpu.memory_space<vmem>>, vector<128x256xf32>
    %c128 = arith.constant 128 : index
    %c0_3 = arith.constant 0 : index
    %2 = vector.load %arg2[%c128, %c0_3] : memref<776x256xf32, #tpu.memory_space<vmem>>, vector<128x128xf32>
    %c128_4 = arith.constant 128 : index
    %c128_5 = arith.constant 128 : index
    %3 = vector.load %arg2[%c128_4, %c128_5] : memref<776x256xf32, #tpu.memory_space<vmem>>, vector<128x128xf32>
    %c256 = arith.constant 256 : index
    %c0_6 = arith.constant 0 : index
    %4 = vector.load %arg2[%c256, %c0_6] : memref<776x256xf32, #tpu.memory_space<vmem>>, vector<128x256xf32>
    %c384 = arith.constant 384 : index
    %c0_7 = arith.constant 0 : index
    %5 = vector.load %arg2[%c384, %c0_7] : memref<776x256xf32, #tpu.memory_space<vmem>>, vector<128x256xf32>
    %c512 = arith.constant 512 : index
    %c0_8 = arith.constant 0 : index
    %6 = vector.load %arg2[%c512, %c0_8] : memref<776x256xf32, #tpu.memory_space<vmem>>, vector<256x128xf32>
    %c512_9 = arith.constant 512 : index
    %c128_10 = arith.constant 128 : index
    %7 = vector.load %arg2[%c512_9, %c128_10] : memref<776x256xf32, #tpu.memory_space<vmem>>, vector<128x128xf32>
    %c768 = arith.constant 768 : index
    %c0_11 = arith.constant 0 : index
    %8 = vector.load %arg2[%c768, %c0_11] : memref<776x256xf32, #tpu.memory_space<vmem>>, vector<1x128xf32>
    %c769 = arith.constant 769 : index
    %c0_12 = arith.constant 0 : index
    %9 = vector.load %arg2[%c769, %c0_12] : memref<776x256xf32, #tpu.memory_space<vmem>>, vector<1x128xf32>
    %c770 = arith.constant 770 : index
    %c0_13 = arith.constant 0 : index
    %10 = vector.load %arg2[%c770, %c0_13] : memref<776x256xf32, #tpu.memory_space<vmem>>, vector<1x128xf32>
    %c771 = arith.constant 771 : index
    %c0_14 = arith.constant 0 : index
    %11 = vector.load %arg2[%c771, %c0_14] : memref<776x256xf32, #tpu.memory_space<vmem>>, vector<1x128xf32>
    %c772 = arith.constant 772 : index
    %c0_15 = arith.constant 0 : index
    %12 = vector.load %arg2[%c772, %c0_15] : memref<776x256xf32, #tpu.memory_space<vmem>>, vector<1x256xf32>
    %c773 = arith.constant 773 : index
    %c0_16 = arith.constant 0 : index
    %13 = vector.load %arg2[%c773, %c0_16] : memref<776x256xf32, #tpu.memory_space<vmem>>, vector<1x256xf32>
    %c774 = arith.constant 774 : index
    %c0_17 = arith.constant 0 : index
    %14 = vector.load %arg2[%c774, %c0_17] : memref<776x256xf32, #tpu.memory_space<vmem>>, vector<1x128xf32>
    %cst = arith.constant dense<0.000000e+00> : vector<256x256xf32>
    %15 = tpu.matmul %0, %1, %cst {dimension_numbers = #tpu.dot_dimension_numbers<[1], [0], [0], [1], [0, 0, 1, 1], [], []>} : vector<256x128xf32>, vector<128x256xf32>, vector<256x256xf32> -> vector<256x256xf32>
    %16 = vector.extract_strided_slice %15 {offsets = [0, 0], sizes = [256, 128], strides = [1, 1]} : vector<256x256xf32> to vector<256x128xf32>
    %17 = vector.broadcast %8 : vector<1x128xf32> to vector<256x128xf32>
    %18 = arith.addf %16, %17 : vector<256x128xf32>
    %cst_18 = arith.constant 5.000000e-01 : f32
    %19 = vector.broadcast %cst_18 : f32 to vector<256x128xf32>
    %20 = arith.mulf %19, %18 : vector<256x128xf32>
    %21 = math.tanh %20 : vector<256x128xf32>
    %cst_19 = arith.constant 5.000000e-01 : f32
    %22 = vector.broadcast %cst_19 : f32 to vector<256x128xf32>
    %23 = arith.mulf %22, %21 : vector<256x128xf32>
    %cst_20 = arith.constant 5.000000e-01 : f32
    %24 = vector.broadcast %cst_20 : f32 to vector<256x128xf32>
    %25 = arith.addf %23, %24 : vector<256x128xf32>
    %cst_21 = arith.constant dense<0.000000e+00> : vector<256x128xf32>
    %26 = tpu.matmul %25, %3, %cst_21 {dimension_numbers = #tpu.dot_dimension_numbers<[1], [0], [0], [1], [0, 0, 1, 1], [], []>} : vector<256x128xf32>, vector<128x128xf32>, vector<256x128xf32> -> vector<256x128xf32>
    %27 = vector.extract_strided_slice %15 {offsets = [0, 128], sizes = [256, 128], strides = [1, 1]} : vector<256x256xf32> to vector<256x128xf32>
    %28 = arith.addf %26, %27 : vector<256x128xf32>
    %29 = vector.broadcast %9 : vector<1x128xf32> to vector<256x128xf32>
    %30 = arith.addf %28, %29 : vector<256x128xf32>
    %cst_22 = arith.constant 5.000000e-01 : f32
    %31 = vector.broadcast %cst_22 : f32 to vector<256x128xf32>
    %32 = arith.mulf %31, %30 : vector<256x128xf32>
    %33 = math.tanh %32 : vector<256x128xf32>
    %cst_23 = arith.constant 5.000000e-01 : f32
    %34 = vector.broadcast %cst_23 : f32 to vector<256x128xf32>
    %35 = arith.mulf %34, %33 : vector<256x128xf32>
    %cst_24 = arith.constant 5.000000e-01 : f32
    %36 = vector.broadcast %cst_24 : f32 to vector<256x128xf32>
    %37 = arith.addf %35, %36 : vector<256x128xf32>
    %cst_25 = arith.constant dense<0.000000e+00> : vector<256x128xf32>
    %38 = tpu.matmul %0, %2, %cst_25 {dimension_numbers = #tpu.dot_dimension_numbers<[1], [0], [0], [1], [0, 0, 1, 1], [], []>} : vector<256x128xf32>, vector<128x128xf32>, vector<256x128xf32> -> vector<256x128xf32>
    %cst_26 = arith.constant 5.000000e-01 : f32
    %39 = vector.broadcast %cst_26 : f32 to vector<256x128xf32>
    %40 = arith.mulf %39, %38 : vector<256x128xf32>
    %41 = math.tanh %40 : vector<256x128xf32>
    %cst_27 = arith.constant 5.000000e-01 : f32
    %42 = vector.broadcast %cst_27 : f32 to vector<256x128xf32>
    %43 = arith.mulf %42, %41 : vector<256x128xf32>
    %cst_28 = arith.constant 5.000000e-01 : f32
    %44 = vector.broadcast %cst_28 : f32 to vector<256x128xf32>
    %45 = arith.addf %43, %44 : vector<256x128xf32>
    %cst_29 = arith.constant dense<0.000000e+00> : vector<256x128xf32>
    %46 = tpu.matmul %45, %7, %cst_29 {dimension_numbers = #tpu.dot_dimension_numbers<[1], [0], [0], [1], [0, 0, 1, 1], [], []>} : vector<256x128xf32>, vector<128x128xf32>, vector<256x128xf32> -> vector<256x128xf32>
    %47 = vector.broadcast %10 : vector<1x128xf32> to vector<256x128xf32>
    %48 = arith.addf %46, %47 : vector<256x128xf32>
    %cst_30 = arith.constant 5.000000e-01 : f32
    %49 = vector.broadcast %cst_30 : f32 to vector<256x128xf32>
    %50 = arith.mulf %49, %48 : vector<256x128xf32>
    %51 = math.tanh %50 : vector<256x128xf32>
    %cst_31 = arith.constant 5.000000e-01 : f32
    %52 = vector.broadcast %cst_31 : f32 to vector<256x128xf32>
    %53 = arith.mulf %52, %51 : vector<256x128xf32>
    %cst_32 = arith.constant 5.000000e-01 : f32
    %54 = vector.broadcast %cst_32 : f32 to vector<256x128xf32>
    %55 = arith.addf %53, %54 : vector<256x128xf32>
    %cst_33 = arith.constant dense<0.000000e+00> : vector<256x256xf32>
    %56 = tpu.matmul %37, %4, %cst_33 {dimension_numbers = #tpu.dot_dimension_numbers<[1], [0], [0], [1], [0, 0, 1, 1], [], []>} : vector<256x128xf32>, vector<128x256xf32>, vector<256x256xf32> -> vector<256x256xf32>
    %57 = vector.broadcast %12 : vector<1x256xf32> to vector<256x256xf32>
    %58 = arith.addf %56, %57 : vector<256x256xf32>
    %cst_34 = arith.constant 5.000000e-01 : f32
    %59 = vector.broadcast %cst_34 : f32 to vector<256x256xf32>
    %60 = arith.mulf %59, %58 : vector<256x256xf32>
    %61 = math.tanh %60 : vector<256x256xf32>
    %cst_35 = arith.constant 5.000000e-01 : f32
    %62 = vector.broadcast %cst_35 : f32 to vector<256x256xf32>
    %63 = arith.mulf %62, %61 : vector<256x256xf32>
    %cst_36 = arith.constant 5.000000e-01 : f32
    %64 = vector.broadcast %cst_36 : f32 to vector<256x256xf32>
    %65 = arith.addf %63, %64 : vector<256x256xf32>
    %cst_37 = arith.constant dense<0.000000e+00> : vector<256x256xf32>
    %66 = tpu.matmul %55, %5, %cst_37 {dimension_numbers = #tpu.dot_dimension_numbers<[1], [0], [0], [1], [0, 0, 1, 1], [], []>} : vector<256x128xf32>, vector<128x256xf32>, vector<256x256xf32> -> vector<256x256xf32>
    %67 = vector.broadcast %13 : vector<1x256xf32> to vector<256x256xf32>
    %68 = arith.addf %66, %67 : vector<256x256xf32>
    %cst_38 = arith.constant 5.000000e-01 : f32
    %69 = vector.broadcast %cst_38 : f32 to vector<256x256xf32>
    %70 = arith.mulf %69, %68 : vector<256x256xf32>
    %71 = math.tanh %70 : vector<256x256xf32>
    %cst_39 = arith.constant 5.000000e-01 : f32
    %72 = vector.broadcast %cst_39 : f32 to vector<256x256xf32>
    %73 = arith.mulf %72, %71 : vector<256x256xf32>
    %cst_40 = arith.constant 5.000000e-01 : f32
    %74 = vector.broadcast %cst_40 : f32 to vector<256x256xf32>
    %75 = arith.addf %73, %74 : vector<256x256xf32>
    %76 = arith.subf %65, %75 : vector<256x256xf32>
    %cst_41 = arith.constant dense<0.000000e+00> : vector<256x128xf32>
    %77 = tpu.matmul %76, %6, %cst_41 {dimension_numbers = #tpu.dot_dimension_numbers<[1], [0], [0], [1], [0, 0, 1, 1], [], []>} : vector<256x256xf32>, vector<256x128xf32>, vector<256x128xf32> -> vector<256x128xf32>
    %78 = vector.broadcast %11 : vector<1x128xf32> to vector<256x128xf32>
    %79 = arith.addf %77, %78 : vector<256x128xf32>
    %cst_42 = arith.constant 5.000000e-01 : f32
    %80 = vector.broadcast %cst_42 : f32 to vector<256x128xf32>
    %81 = arith.mulf %80, %79 : vector<256x128xf32>
    %82 = math.tanh %81 : vector<256x128xf32>
    %cst_43 = arith.constant 5.000000e-01 : f32
    %83 = vector.broadcast %cst_43 : f32 to vector<256x128xf32>
    %84 = arith.mulf %83, %82 : vector<256x128xf32>
    %cst_44 = arith.constant 5.000000e-01 : f32
    %85 = vector.broadcast %cst_44 : f32 to vector<256x128xf32>
    %86 = arith.addf %84, %85 : vector<256x128xf32>
    %87 = vector.broadcast %14 : vector<1x128xf32> to vector<256x128xf32>
    %88 = arith.mulf %0, %87 : vector<256x128xf32>
    %89 = arith.mulf %86, %88 : vector<256x128xf32>
    %cst_45 = arith.constant dense<0.000000e+00> : vector<256xf32>
    %90 = vector.multi_reduction <add>, %89, %cst_45 [1] : vector<256x128xf32> to vector<256xf32>
    %91 = vector.shape_cast %90 : vector<256xf32> to vector<256x1xf32>
    %cst_46 = arith.constant dense<0.000000e+00> : vector<256xf32>
    %92 = vector.multi_reduction <add>, %88, %cst_46 [1] : vector<256x128xf32> to vector<256xf32>
    %93 = vector.shape_cast %92 : vector<256xf32> to vector<256x1xf32>
    %cst_47 = arith.constant 1.000000e+00 : f32
    %94 = vector.broadcast %cst_47 : f32 to vector<256x1xf32>
    %95 = arith.maximumf %93, %94 : vector<256x1xf32>
    %96 = tpu.reciprocal %95 {approx = true} : vector<256x1xf32> -> vector<256x1xf32>
    %97 = arith.mulf %91, %96 : vector<256x1xf32>
    %98 = vector.shape_cast %97 : vector<256x1xf32> to vector<256x1xf32>
    %99 = vector.broadcast %98 : vector<256x1xf32> to vector<256x128xf32>
    %c0_48 = arith.constant 0 : index
    %c0_49 = arith.constant 0 : index
    %100 = vector.load %arg3[%c0_48, %c0_49] : memref<256x128xf32, #tpu.memory_space<vmem>>, vector<256x128xf32>
    tpu.vector_store %arg3[%c0_48, %c0_49], %99 {strides = array<i32>} : memref<256x128xf32, #tpu.memory_space<vmem>>, vector<256x128xf32>,
    return
  }
  func.func @transform_0(%arg0: i32) -> (i32, i32) {
    %c0_i32 = arith.constant 0 : i32
    %c0_i32_0 = arith.constant 0 : i32
    return %arg0, %c0_i32 : i32, i32
  }
  func.func @transform_1(%arg0: i32) -> (i32, i32) {
    %c0_i32 = arith.constant 0 : i32
    %c0_i32_0 = arith.constant 0 : i32
    %c0_i32_1 = arith.constant 0 : i32
    return %c0_i32, %c0_i32_0 : i32, i32
  }
  func.func @transform_2(%arg0: i32) -> (i32, i32) {
    %c0_i32 = arith.constant 0 : i32
    %c0_i32_0 = arith.constant 0 : i32
    return %arg0, %c0_i32 : i32, i32
  }
}

</mosaic_0001>

<bundles_post_ra>
// kernel: tpu_custom_call.1
= control target key start
LH: loop header
LB: loop body
LE: loop exit
PB: predicated region body
PF: predicated region fallthrough
CT: control target
= control target key end

     0   :  { %7 = vsyncpa [#allocation3], 0  ;;  %s6617_s0 = inlined_call_operand.hbm [shape: f32[512,128], index: 0, kind: input, shape index: {}]   ;;  %s6618_s1 = inlined_call_operand.hbm [shape: f32[776,256], index: 1, kind: input, shape index: {}]   ;;  %s6619_s2 = inlined_call_operand.hbm [shape: f32[512,128], index: 2, kind: output, shape index: {}]  }
   0x1   :  { %9 = vsyncpa [#allocation3 + $0x1], 0 }
   0x2   :  { %10 = vsyncpa [#allocation6], 0 }
   0x3   :  { %11 = vsyncpa [#allocation4], 0 }
   0x4   :  { %13 = vsyncpa [#allocation4 + $0x1], 0  ;;  %s5117_s9 = smov 0   ;;  %s5119_s10 = smov 0  }
   0x5   :  { %s5121_s11 = smov 0   ;;  %s5123_s12 = smov 0  }
   0x6 LB: > { %s5138_s13 = sadd.s32 4294967295, %s5090_s12   ;;  %s3786_s14 = sadd.s32 4294967294, %s5090_s12   ;;  %s5090_s12 = sphi %s5123_s12, %s6692_s12   ;;  %s5086_s11 = sphi %s5121_s11, %s6691_s11   ;;  %s5082_s10 = sphi %s5119_s10, %s6690_s10   ;;  %s5078_s9 = sphi %s5117_s9, %s6689_s9  }
   0x7   : > { %p39_p0 = scmp.ne.s32.totalorder %s5082_s10, %s5078_s9  ;;  %p6620_p1 = scmp.eq.s32.totalorder %s5138_s13, 0 }
   0x8   : > { %p90_p3 = scmp.eq.s32.totalorder %s3786_s14, 1  ;;  %p3787_p5 = scmp.ge.s32.totalorder %s5090_s12, 1 }
   0x9   : > { %p5147_p4 = por %p6620_p1, %p39_p0  ;;  %p97_p7 = scmp.lt.s32.totalorder %s5090_s12, 3 }
   0xa   : > { %p5152_p6 = por %p90_p3, %p39_p0  ;;  %s5092_s18 = smov [#allocation5]  }
   0xb   : > { %s6634_s15 = scalar_select %p5147_p4, 1, 0 }
   0xc   : > { %s6635_s16 = scalar_select %p5152_p6, 1, 0 }
   0xd   : > { %p5157_p8 = pnand %p3787_p5, %p97_p7  ;;  %s109_s19 = sshll.u32 %s5092_s18, 4  ;;  %s110_s19 = int_to_ptr.vmem [resolvable:$true] %s109_s19 }
   0xe   : > { %s5171_s21 = sadd.s32 1, %s5090_s12   ;;  %s26_s22 = sadd.s32 1, %s5086_s11 }
   0xf   : > { %s6636_s17 = scalar_select %p5157_p8, 1, 0 }
  0x10   : > { %p4228_p9 = pneg %p5157_p8  ;;  %s23_s23 = ssub.s32 %s5090_s12, %s5171_s21 }
  0x11   : > { %s4979_s24 = scalar_lea.vmem %s110_s19, 24832  ;;  %p4987_p5 = scmp.lt.s32.totalorder %s110_s19, %s110_s19 }
  0x12   : > { %p5166_p11 = pnand %p4228_p9, %p6620_p1  ;;  %p4980_p13 = scmp.ne.s32.totalorder %s110_s19, %s4979_s24 }
  0x13   : > { %p4988_p7 = scmp.lt.s32.totalorder %s4979_s24, %s4979_s24 }
  0x14   : > { %p4970_p12 = pneg %p5166_p11 }
  0x15   : > { %p4989_p10 = por %p4988_p7, %p4987_p5 }
  0x16   : > { %p4982_p0 = pnand %p4980_p13, %p4970_p12 }
  0x18   : > { %p4983_p3 = pneg %p4982_p0 }
  0x1a   : > { %p4990_p2 = pnand %p4989_p10, %p4983_p3 }
  0x1c   : > { %4993 = shalt.err (!%p4990_p2)
}
  0x1d   : > { %s5093_s25 = smov 256   ;;  %s5094_s26 = smov 16  }
  0x1e   : > { %4231 = dma.hbm_to_vmem [thread:$0]  (!%p5166_p11), %s6618_s1, 24832, %s110_s19, [#allocation6], %s5093_s25, %s5093_s25, %s5094_s26  }
  0x1f   : > { %p24_p9 = scmp.eq.s32.totalorder %s23_s23, 0  ;;  %p33_p12 = scmp.ne.s32.totalorder %s5086_s11, %s5082_s10 }
  0x20   : > { %p34_p10 = scmp.eq.s32.totalorder %s5090_s12, 0  ;;  %p4241_p2 = scmp.lt.s32.totalorder %s5090_s12, 2 }
  0x21   : > { %s5188_s29 = scalar_select %p24_p9, %s5086_s11, %s26_s22  }
  0x22   : > { %p35_p13 = por %p34_p10, %p33_p12  ;;  %p6638_p0 = scmp.eq.s32.totalorder %s5138_s13, 1 }
  0x23   : > { %s123_s3 = sand.u32 1, %s5086_s11   ;;  %s3802_s4 = sshll.u32 %s5090_s12, 12 }
  0x24   : > { %p5192_p3 = por %p6638_p0, %p33_p12  ;;  %s3790_s5 = sshll.u32 %s123_s3, 8 }
  0x25   : > { %s5201_s8 = scalar_lea.hbm %s6617_s0, %s3802_s4  ;;  %s127_s14 = scalar_lea.vmem [#allocation2], %s3790_s5 }
  0x26   : > { %s6639_s30 = scalar_select %p5192_p3, 1, 0 }
  0x27   : > { %s134_s18 = sshll.u32 %s127_s14, 4  ;;  %p5203_p11 = pnand %p4241_p2, %p35_p13  ;;  %s5207_s18 = int_to_ptr.vmem [resolvable:$true] %s134_s18 }
  0x28   : > { %s5209_s20 = scalar_lea.sflag [#allocation3], %s123_s3  ;;  %s4994_s22 = scalar_lea.hbm %s5201_s8, 4096 }
  0x29   : > { %p4995_p5 = scmp.ne.s32.totalorder %s5201_s8, %s4994_s22  ;;  %p4996_p7 = pneg %p5203_p11 }
  0x2a   : > { %s4999_s25 = scalar_lea.hbm %s6617_s0, 8192  ;;  %p5000_p10 = scmp.lt.s32.totalorder %s5201_s8, %s6617_s0 }
  0x2b   : > { %p4997_p9 = pnand %p4996_p7, %p4995_p5  ;;  %p5001_p2 = scmp.lt.s32.totalorder %s4999_s25, %s4994_s22 }
  0x2d   : > { %p4998_p12 = pneg %p4997_p9  ;;  %p5002_p13 = por %p5001_p2, %p5000_p10 }
  0x2f   : > { %p5003_p0 = pnand %p5002_p13, %p4998_p12 }
  0x31   : > { %5006 = shalt.err (!%p5003_p0)
}
  0x32   : > { %s5007_s28 = scalar_lea.vmem %s5207_s18, 4096  ;;  %s5095_s3 = smov [#allocation2]  }
  0x33   : > { %p5008_p1 = scmp.ne.s32.totalorder %s5207_s18, %s5007_s28  ;;  %s5012_s4 = sshll.u32 %s5095_s3, 4  ;;  %s5013_s4 = int_to_ptr.vmem [resolvable:$false] %s5012_s4 }
  0x34   : > { %s5014_s5 = scalar_lea.vmem %s5013_s4, 8192  ;;  %p5015_p9 = scmp.lt.s32.totalorder %s5207_s18, %s5013_s4 }
  0x35   : > { %p5010_p6 = pnand %p5008_p1, %p4996_p7  ;;  %p5016_p3 = scmp.lt.s32.totalorder %s5014_s5, %s5007_s28 }
  0x37   : > { %p5011_p5 = pneg %p5010_p6  ;;  %p5017_p4 = por %p5016_p3, %p5015_p9 }
  0x39   : > { %p5018_p8 = pnand %p5017_p4, %p5011_p5 }
  0x3b   : > { %5021 = shalt.err (!%p5018_p8)
}
  0x3c   : > { %s5096_s6 = smov 128   ;;  %s5097_s7 = smov 8  }
  0x3d   : > { %4235 = dma.hbm_to_vmem [thread:$0]  (!%p5203_p11), %s5201_s8, 4096, %s5207_s18, %s5209_s20, %s5096_s6, %s5096_s6, %s5097_s7  }
  0x3e   : > { %p6641_p1 = scmp.ne.s32.totalorder %s6636_s17, 0 }
  0x40   : > { %146 = sbr.rel (%p6641_p1) target bundleno = 1602 (0x642), region = 28 }
  0x45   : > { %s5233_s14 = sand.u32 1, %s5082_s10   ;;  %p6642_p4 = scmp.ne.s32.totalorder %s6634_s15, 0 }
  0x46   : > { %s3794_s22 = sshll.u32 %s5233_s14, 8  ;;  %s149_s23 = scalar_lea.sflag [#allocation3], %s5233_s14 }
  0x47   : > { %s5239_s24 = scalar_lea.vmem [#allocation2], %s3794_s22 }
  0x48   : > { %5065 = dma.done.wait (%p6642_p4), %s149_s23, 4096  }
  0x49   : > { %5067 = vsyncadd (%p6642_p4), %s149_s23, 4294963200  ;;  %p6643_p6 = scmp.eq.s32.totalorder %s5138_s13, 0 }
  0x4b   : > { %5069 = dma.done.wait (%p6643_p6), [#allocation6], 24832   ;;  %p6644_p8 = pmov %p6643_p6 }
  0x4c   : > { %v6624_v0 = vmov 0.0   ;;  %v242_v1 = vld [vmem:[#allocation5 + $0xf8] sm:$0xff]  ;;  %v241_v2 = vld [vmem:[#allocation5 + $0xf0] sm:$0xff]  ;;  %v240_v3 = vld [vmem:[#allocation5 + $0xe8] sm:$0xff]  ;;  %s6505_s15 = scalar_lea.vmem [#allocation7], %s3794_s22  ;;  %s3803_s17 = sshll.u32 %s5138_s13, 12 }
  0x4d   : > { %5071 = vsyncadd (%p6644_p8), [#allocation6], 4294942464  ;;  %460 = vmatprep.mubr.f32.mxu0 %v6624_v0  ;;  %396 = vmatprep.subr.mxu0 %v242_v1  ;;  %v239_v4 = vld [vmem:[#allocation5 + $0xe0] sm:$0xff]  ;;  %v238_v5 = vld [vmem:[#allocation5 + $0xd8] sm:$0xff]  ;;  %s3703_s8 = sshll.u32 %s6505_s15, 4  ;;  %s6571_s20 = scalar_lea.hbm %s6619_s2, %s3803_s17  ;;  %s6573_s8 = int_to_ptr.vmem [resolvable:$true] %s3703_s8 }
  0x4e   : > { %397 = vmatpush1.msra.mxu0 %v241_v2  ;;  %v237_v6 = vld [vmem:[#allocation5 + $0xd0] sm:$0xff]  ;;  %v236_v7 = vld [vmem:[#allocation5 + $0xc8] sm:$0xff]  ;;  %v235_v8 = vld [vmem:[#allocation5 + $0xc0] sm:$0xff]  ;;  %s3690_s25 = scalar_lea.sflag [#allocation4], %s5233_s14  ;;  %s5022_s26 = scalar_lea.vmem %s6573_s8, 4096 }
  0x4f   : > { %398 = vmatprep.subr.mxu0 %v240_v3  ;;  %v234_v9 = vld [vmem:[#allocation5 + $0xb8] sm:$0xff]  ;;  %v233_v10 = vld [vmem:[#allocation5 + $0xb0] sm:$0xff]  ;;  %v232_v11 = vld [vmem:[#allocation5 + $0xa8] sm:$0xff]  ;;  %p5023_p3 = scmp.ne.s32.totalorder %s6573_s8, %s5022_s26  ;;  %p6686_p11 = scmp.ne.s32.totalorder %s6639_s30, 0 }
  0x50   : > { %399 = vmatpush1.msra.mxu0 %v239_v4  ;;  %v231_v12 = vld [vmem:[#allocation5 + $0xa0] sm:$0xff]  ;;  %v230_v13 = vld [vmem:[#allocation5 + $0x98] sm:$0xff]  ;;  %v229_v14 = vld [vmem:[#allocation5 + $0x90] sm:$0xff]  ;;  %s5099_s13 = smov [#allocation7]  }
  0x51   : > { %400 = vmatprep.subr.mxu0 %v238_v5  ;;  %v228_v15 = vld [vmem:[#allocation5 + $0x88] sm:$0xff]  ;;  %v227_v16 = vld [vmem:[#allocation5 + $0x80] sm:$0xff]  ;;  %v226_v17 = vld [vmem:[#allocation5 + $0x78] sm:$0xff]  ;;  %p5024_p7 = pnand %p5023_p3, %p6686_p11  ;;  %s5026_s27 = sshll.u32 %s5099_s13, 4  ;;  %s5027_s27 = int_to_ptr.vmem [resolvable:$false] %s5026_s27 }
  0x52   : > { %401 = vmatpush1.msra.mxu0 %v237_v6  ;;  %v225_v18 = vld [vmem:[#allocation5 + $0x70] sm:$0xff]  ;;  %v224_v19 = vld [vmem:[#allocation5 + $0x68] sm:$0xff]  ;;  %v223_v20 = vld [vmem:[#allocation5 + $0x60] sm:$0xff]  ;;  %s5028_s28 = scalar_lea.vmem %s5027_s27, 8192  ;;  %p5029_p10 = scmp.lt.s32.totalorder %s6573_s8, %s5027_s27 }
  0x53   : > { %402 = vmatprep.subr.mxu0 %v236_v7  ;;  %v222_v21 = vld [vmem:[#allocation5 + $0x58] sm:$0xff]  ;;  %v221_v22 = vld [vmem:[#allocation5 + $0x50] sm:$0xff]  ;;  %v220_v23 = vld [vmem:[#allocation5 + $0x48] sm:$0xff]  ;;  %p5025_p12 = pneg %p5024_p7  ;;  %p5030_p2 = scmp.lt.s32.totalorder %s5028_s28, %s5022_s26 }
  0x54   : > { %403 = vmatpush1.msra.mxu0 %v235_v8  ;;  %v219_v24 = vld [vmem:[#allocation5 + $0x40] sm:$0xff]  ;;  %v218_v25 = vld [vmem:[#allocation5 + $0x38] sm:$0xff]  ;;  %v217_v26 = vld [vmem:[#allocation5 + $0x30] sm:$0xff] }
  0x55   : > { %404 = vmatprep.subr.mxu0 %v234_v9  ;;  %v216_v27 = vld [vmem:[#allocation5 + $0x28] sm:$0xff]  ;;  %v215_v28 = vld [vmem:[#allocation5 + $0x20] sm:$0xff]  ;;  %v214_v29 = vld [vmem:[#allocation5 + $0x18] sm:$0xff]  ;;  %p5031_p13 = por %p5030_p2, %p5029_p10 }
  0x56   : > { %405 = vmatpush1.msra.mxu0 %v233_v10  ;;  %v213_v30 = vld [vmem:[#allocation5 + $0x10] sm:$0xff]  ;;  %v212_v31 = vld [vmem:[#allocation5 + $0x8] sm:$0xff]  ;;  %v211_v32 = vld [vmem:[#allocation5] sm:$0xff] }
  0x57   : > { %406 = vmatprep.subr.mxu0 %v232_v11  ;;  %v274_v33 = vld [vmem:[#allocation5 + $0x1f8] sm:$0xff]  ;;  %v179_v34 = vld [vmem:[%s5239_s24] sm:$0xff]  ;;  %v273_v35 = vld [vmem:[#allocation5 + $0x1e8] sm:$0xff]  ;;  %p5032_p0 = pnand %p5031_p13, %p5025_p12 }
  0x58   : > { %407 = vmatpush1.msra.mxu0 %v231_v12  ;;  %4188 = vmatprep.subr.mxu1 %v274_v33  ;;  %v5253_v36 = vld [vmem:[%s5239_s24 + $0x8] sm:$0xff]  ;;  %v272_v37 = vld [vmem:[#allocation5 + $0x1d8] sm:$0xff]  ;;  %v5258_v38 = vld [vmem:[%s5239_s24 + $0x10] sm:$0xff] }
  0x59   : > { %408 = vmatprep.subr.mxu0 %v230_v13  ;;  %4204 = vmatpush3.msra.mxu1 %v274_v33  ;;  %v5263_v39 = vld [vmem:[%s5239_s24 + $0x18] sm:$0xff]  ;;  %v5268_v40 = vld [vmem:[%s5239_s24 + $0x20] sm:$0xff]  ;;  %v5273_v41 = vld [vmem:[%s5239_s24 + $0x28] sm:$0xff] }
  0x5a   : > { %409 = vmatpush1.msra.mxu0 %v229_v14  ;;  %4189 = vmatprep.subr.mxu1 %v273_v35  ;;  %v5278_v42 = vld [vmem:[%s5239_s24 + $0x30] sm:$0xff]  ;;  %v5283_v43 = vld [vmem:[%s5239_s24 + $0x38] sm:$0xff]  ;;  %v5288_v44 = vld [vmem:[%s5239_s24 + $0x40] sm:$0xff] }
  0x5b   : > { %410 = vmatprep.subr.mxu0 %v228_v15  ;;  %4205 = vmatpush3.msra.mxu1 %v273_v35  ;;  %v188_v45 = vld [vmem:[%s5239_s24 + $0x48] sm:$0xff]  ;;  %v189_v46 = vld [vmem:[%s5239_s24 + $0x50] sm:$0xff]  ;;  %v190_v47 = vld [vmem:[%s5239_s24 + $0x58] sm:$0xff] }
  0x5c   : > { %411 = vmatpush1.msra.mxu0 %v227_v16  ;;  %4190 = vmatprep.subr.mxu1 %v272_v37  ;;  %v191_v48 = vld [vmem:[%s5239_s24 + $0x60] sm:$0xff]  ;;  %v192_v49 = vld [vmem:[%s5239_s24 + $0x68] sm:$0xff]  ;;  %v193_v50 = vld [vmem:[%s5239_s24 + $0x70] sm:$0xff] }
  0x5d   : > { %412 = vmatprep.subr.mxu0 %v226_v17  ;;  %4206 = vmatpush3.msra.mxu1 %v272_v37  ;;  %v194_v51 = vld [vmem:[%s5239_s24 + $0x78] sm:$0xff]  ;;  %v195_v52 = vld [vmem:[%s5239_s24 + $0x80] sm:$0xff]  ;;  %v271_v53 = vld [vmem:[#allocation5 + $0x1c8] sm:$0xff] }
  0x5e   : > { %413 = vmatpush1.msra.mxu0 %v225_v18  ;;  %v196_v54 = vld [vmem:[%s5239_s24 + $0x88] sm:$0xff]  ;;  %v270_v55 = vld [vmem:[#allocation5 + $0x1b8] sm:$0xff]  ;;  %4191 = vmatprep.subr.mxu1 %v271_v53  ;;  %v197_v57 = vld [vmem:[%s5239_s24 + $0x90] sm:$0xff] }
  0x5f   : > { %414 = vmatprep.subr.mxu0 %v224_v19  ;;  %4207 = vmatpush3.msra.mxu1 %v271_v53  ;;  %v269_v56 = vld [vmem:[#allocation5 + $0x1a8] sm:$0xff]  ;;  %v268_v58 = vld [vmem:[#allocation5 + $0x198] sm:$0xff]  ;;  %v5318_v63 = vld [vmem:[%s5239_s24 + $0xa0] sm:$0xff] }
  0x60   : > { %415 = vmatpush1.msra.mxu0 %v223_v20  ;;  %4192 = vmatprep.subr.mxu1 %v270_v55  ;;  %v267_v59 = vld [vmem:[#allocation5 + $0x188] sm:$0xff]  ;;  %v5313_v60 = vld [vmem:[%s5239_s24 + $0x98] sm:$0xff]  ;;  %v5328_v6 = vld [vmem:[%s5239_s24 + $0xb0] sm:$0xff] }
  0x61   : > { %416 = vmatprep.subr.mxu0 %v222_v21  ;;  %4208 = vmatpush3.msra.mxu1 %v270_v55  ;;  %v266_v61 = vld [vmem:[#allocation5 + $0x178] sm:$0xff]  ;;  %v265_v62 = vld [vmem:[#allocation5 + $0x168] sm:$0xff]  ;;  %v5338_v10 = vld [vmem:[%s5239_s24 + $0xc0] sm:$0xff] }
  0x62   : > { %417 = vmatpush1.msra.mxu0 %v221_v22  ;;  %4193 = vmatprep.subr.mxu1 %v269_v56  ;;  %v264_v1 = vld [vmem:[#allocation5 + $0x158] sm:$0xff]  ;;  %v263_v2 = vld [vmem:[#allocation5 + $0x148] sm:$0xff]  ;;  %v5348_v12 = vld [vmem:[%s5239_s24 + $0xd0] sm:$0xff] }
  0x63   : > { %418 = vmatprep.subr.mxu0 %v220_v23  ;;  %4209 = vmatpush3.msra.mxu1 %v269_v56  ;;  %v5323_v3 = vld [vmem:[%s5239_s24 + $0xa8] sm:$0xff]  ;;  %v262_v4 = vld [vmem:[#allocation5 + $0x138] sm:$0xff]  ;;  %v5358_v14 = vld [vmem:[%s5239_s24 + $0xe0] sm:$0xff] }
  0x64   : > { %419 = vmatpush1.msra.mxu0 %v219_v24  ;;  %4194 = vmatprep.subr.mxu1 %v268_v58  ;;  %v261_v5 = vld [vmem:[#allocation5 + $0x128] sm:$0xff]  ;;  %v260_v7 = vld [vmem:[#allocation5 + $0x118] sm:$0xff]  ;;  %v5368_v16 = vld [vmem:[%s5239_s24 + $0xf0] sm:$0xff] }
  0x65   : > { %420 = vmatprep.subr.mxu0 %v218_v25  ;;  %4210 = vmatpush3.msra.mxu1 %v268_v58  ;;  %v259_v8 = vld [vmem:[#allocation5 + $0x108] sm:$0xff]  ;;  %v5333_v9 = vld [vmem:[%s5239_s24 + $0xb8] sm:$0xff]  ;;  %v5376_v18 = vld [vmem:[#allocation5 + $0x1f0] sm:$0xff] }
  0x66   : > { %421 = vmatpush1.msra.mxu0 %v217_v26  ;;  %4195 = vmatprep.subr.mxu1 %v267_v59  ;;  %v5343_v11 = vld [vmem:[%s5239_s24 + $0xc8] sm:$0xff]  ;;  %v5353_v13 = vld [vmem:[%s5239_s24 + $0xd8] sm:$0xff]  ;;  %v5379_v19 = vld [vmem:[#allocation5 + $0x600] ss:$0 sm:$0xff] }
  0x67   : > { %422 = vmatprep.subr.mxu0 %v216_v27  ;;  %4211 = vmatpush3.msra.mxu1 %v267_v59  ;;  %v5363_v15 = vld [vmem:[%s5239_s24 + $0xe8] sm:$0xff]  ;;  %v5373_v17 = vld [vmem:[%s5239_s24 + $0xf8] sm:$0xff] }
  0x68   : > { %423 = vmatpush1.msra.mxu0 %v215_v28  ;;  %4196 = vmatprep.subr.mxu1 %v266_v61 }
  0x69   : > { %424 = vmatprep.subr.mxu0 %v214_v29  ;;  %4212 = vmatpush3.msra.mxu1 %v266_v61 }
  0x6a   : > { %425 = vmatpush1.msra.mxu0 %v213_v30  ;;  %4197 = vmatprep.subr.mxu1 %v265_v62 }
  0x6b   : > { %426 = vmatprep.subr.mxu0 %v212_v31  ;;  %4213 = vmatpush3.msra.mxu1 %v265_v62 }
  0x6c   : > { %427 = vmatpush1.msra.mxu0 %v211_v32  ;;  %4198 = vmatprep.subr.mxu1 %v264_v1 }
  0x6d   : > { %461 = vmatmul.mubr.f32.vlgmr.msra.gmra.mxu0 %v179_v34  ;;  %3948 = vmatprep.subr.mxu0 %v274_v33 }
  0x6e   : > { %466 = vmatprep.mubr.f32.mxu0 %v6624_v0  ;;  %3949 = vmatpush3.msra.mxu0 %v274_v33 }
  0x6f   : > { %3950 = vmatprep.subr.mxu0 %v273_v35  ;;  %4214 = vmatpush3.msra.mxu1 %v264_v1 }
  0x70   : > { %3951 = vmatpush3.msra.mxu0 %v273_v35  ;;  %4199 = vmatprep.subr.mxu1 %v263_v2 }
  0x71   : > { %467 = vmatmul.mubr.f32.gmra.mxu0 %v5253_v36  ;;  %3952 = vmatprep.subr.mxu0 %v272_v37 }
  0x72   : > { %472 = vmatprep.mubr.f32.mxu0 %v6624_v0  ;;  %3953 = vmatpush3.msra.mxu0 %v272_v37 }
  0x73   : > { %3954 = vmatprep.subr.mxu0 %v271_v53  ;;  %4215 = vmatpush3.msra.mxu1 %v263_v2 }
  0x74   : > { %3955 = vmatpush3.msra.mxu0 %v271_v53  ;;  %4200 = vmatprep.subr.mxu1 %v262_v4 }
  0x75   : > { %473 = vmatmul.mubr.f32.gmra.mxu0 %v5258_v38  ;;  %3956 = vmatprep.subr.mxu0 %v270_v55 }
  0x76   : > { %478 = vmatprep.mubr.f32.mxu0 %v6624_v0  ;;  %3957 = vmatpush3.msra.mxu0 %v270_v55 }
  0x77   : > { %3958 = vmatprep.subr.mxu0 %v269_v56  ;;  %4216 = vmatpush3.msra.mxu1 %v262_v4 }
  0x78   : > { %3959 = vmatpush3.msra.mxu0 %v269_v56  ;;  %4201 = vmatprep.subr.mxu1 %v261_v5 }
  0x79   : > { %479 = vmatmul.mubr.f32.gmra.mxu0 %v5263_v39  ;;  %3960 = vmatprep.subr.mxu0 %v268_v58 }
  0x7a   : > { %484 = vmatprep.mubr.f32.mxu0 %v6624_v0  ;;  %3961 = vmatpush3.msra.mxu0 %v268_v58 }
  0x7b   : > { %3962 = vmatprep.subr.mxu0 %v267_v59  ;;  %4217 = vmatpush3.msra.mxu1 %v261_v5 }
  0x7c   : > { %3963 = vmatpush3.msra.mxu0 %v267_v59  ;;  %4202 = vmatprep.subr.mxu1 %v260_v7 }
  0x7d   : > { %485 = vmatmul.mubr.f32.gmra.mxu0 %v5268_v40  ;;  %3964 = vmatprep.subr.mxu0 %v266_v61 }
  0x7e   : > { %490 = vmatprep.mubr.f32.mxu0 %v6624_v0  ;;  %3965 = vmatpush3.msra.mxu0 %v266_v61 }
  0x7f   : > { %3966 = vmatprep.subr.mxu0 %v265_v62  ;;  %4218 = vmatpush3.msra.mxu1 %v260_v7 }
  0x80   : > { %3967 = vmatpush3.msra.mxu0 %v265_v62  ;;  %4203 = vmatprep.subr.mxu1 %v259_v8 }
  0x81   : > { %491 = vmatmul.mubr.f32.gmra.mxu0 %v5273_v41  ;;  %3968 = vmatprep.subr.mxu0 %v264_v1 }
  0x82   : > { %496 = vmatprep.mubr.f32.mxu0 %v6624_v0  ;;  %3969 = vmatpush3.msra.mxu0 %v264_v1 }
  0x83   : > { %3970 = vmatprep.subr.mxu0 %v263_v2  ;;  %4219 = vmatpush3.msra.mxu1 %v259_v8 }
  0x84   : > { %3971 = vmatpush3.msra.mxu0 %v263_v2  ;;  %4028 = vmatprep.subr.mxu1 %v5376_v18 }
  0x85   : > { %497 = vmatmul.mubr.f32.gmra.mxu0 %v5278_v42  ;;  %3972 = vmatprep.subr.mxu0 %v262_v4 }
  0x86   : > { %502 = vmatprep.mubr.f32.mxu0 %v6624_v0  ;;  %3973 = vmatpush3.msra.mxu0 %v262_v4 }
  0x87   : > { %3974 = vmatprep.subr.mxu0 %v261_v5 }
  0x88   : > { %3975 = vmatpush3.msra.mxu0 %v261_v5 }
  0x89   : > { %503 = vmatmul.mubr.f32.gmra.mxu0 %v5283_v43  ;;  %3976 = vmatprep.subr.mxu0 %v260_v7 }
  0x8a   : > { %508 = vmatprep.mubr.f32.mxu0 %v6624_v0  ;;  %3977 = vmatpush3.msra.mxu0 %v260_v7 }
  0x8b   : > { %3978 = vmatprep.subr.mxu0 %v259_v8 }
  0x8c   : > { %3979 = vmatpush3.msra.mxu0 %v259_v8 }
  0x8d   : > { %509 = vmatmul.mubr.f32.gmra.mxu0 %v5288_v44 }
  0x8e   : > { %514 = vmatprep.mubr.f32.mxu0 %v6624_v0 }
  0x91   : > { %515 = vmatmul.mubr.f32.gmra.mxu0 %v188_v45 }
  0x92   : > { %520 = vmatprep.mubr.f32.mxu0 %v6624_v0 }
  0x95   : > { %521 = vmatmul.mubr.f32.gmra.mxu0 %v189_v46 }
  0x96   : > { %526 = vmatprep.mubr.f32.mxu0 %v6624_v0 }
  0x99   : > { %527 = vmatmul.mubr.f32.gmra.mxu0 %v190_v47 }
  0x9a   : > { %532 = vmatprep.mubr.f32.mxu0 %v6624_v0 }
  0x9d   : > { %533 = vmatmul.mubr.f32.gmra.mxu0 %v191_v48 }
  0x9e   : > { %538 = vmatprep.mubr.f32.mxu0 %v6624_v0 }
  0xa1   : > { %539 = vmatmul.mubr.f32.gmra.mxu0 %v192_v49 }
  0xa2   : > { %544 = vmatprep.mubr.f32.mxu0 %v6624_v0 }
  0xa5   : > { %545 = vmatmul.mubr.f32.gmra.mxu0 %v193_v50 }
  0xa6   : > { %550 = vmatprep.mubr.f32.mxu0 %v6624_v0 }
  0xa9   : > { %551 = vmatmul.mubr.f32.gmra.mxu0 %v194_v51 }
  0xaa   : > { %556 = vmatprep.mubr.f32.mxu0 %v6624_v0 }
  0xad   : > { %557 = vmatmul.mubr.f32.gmra.mxu0 %v195_v52 }
  0xae   : > { %562 = vmatprep.mubr.f32.mxu0 %v6624_v0 }
  0xb1   : > { %563 = vmatmul.mubr.f32.gmra.mxu0 %v196_v54 }
  0xb2   : > { %568 = vmatprep.mubr.f32.mxu0 %v6624_v0 }
  0xb5   : > { %569 = vmatmul.mubr.f32.gmra.mxu0 %v197_v57 }
  0xb6   : > { %574 = vmatprep.mubr.f32.mxu0 %v6624_v0 }
  0xb9   : > { %575 = vmatmul.mubr.f32.gmra.mxu0 %v5313_v60 }
  0xba   : > { %580 = vmatprep.mubr.f32.mxu0 %v6624_v0 }
  0xbd   : > { %581 = vmatmul.mubr.f32.gmra.mxu0 %v5318_v63 }
  0xbe   : > { %586 = vmatprep.mubr.f32.mxu0 %v6624_v0 }
  0xc1   : > { %587 = vmatmul.mubr.f32.gmra.mxu0 %v5323_v3 }
  0xc2   : > { %592 = vmatprep.mubr.f32.mxu0 %v6624_v0 }
  0xc5   : > { %593 = vmatmul.mubr.f32.gmra.mxu0 %v5328_v6 }
  0xc6   : > { %598 = vmatprep.mubr.f32.mxu0 %v6624_v0 }
  0xc9   : > { %599 = vmatmul.mubr.f32.gmra.mxu0 %v5333_v9 }
  0xca   : > { %604 = vmatprep.mubr.f32.mxu0 %v6624_v0 }
  0xcd   : > { %605 = vmatmul.mubr.f32.gmra.mxu0 %v5338_v10 }
  0xce   : > { %610 = vmatprep.mubr.f32.mxu0 %v6624_v0 }
  0xd1   : > { %611 = vmatmul.mubr.f32.gmra.mxu0 %v5343_v11 }
  0xd2   : > { %616 = vmatprep.mubr.f32.mxu0 %v6624_v0 }
  0xd5   : > { %617 = vmatmul.mubr.f32.gmra.mxu0 %v5348_v12 }
  0xd6   : > { %622 = vmatprep.mubr.f32.mxu0 %v6624_v0 }
  0xd9   : > { %623 = vmatmul.mubr.f32.gmra.mxu0 %v5353_v13 }
  0xda   : > { %628 = vmatprep.mubr.f32.mxu0 %v6624_v0 }
  0xdd   : > { %629 = vmatmul.mubr.f32.gmra.mxu0 %v5358_v14 }
  0xde   : > { %634 = vmatprep.mubr.f32.mxu0 %v6624_v0 }
  0xe1   : > { %635 = vmatmul.mubr.f32.gmra.mxu0 %v5363_v15 }
  0xe2   : > { %640 = vmatprep.mubr.f32.mxu0 %v6624_v0 }
  0xe5   : > { %641 = vmatmul.mubr.f32.gmra.mxu0 %v5368_v16 }
  0xe6   : > { %646 = vmatprep.mubr.f32.mxu0 %v6624_v0 }
  0xe9   : > { %647 = vmatmul.mubr.f32.gmra.mxu0 %v5373_v17 }
 0x12d   : > { %v462_v20 = vpop.f32.mrf.mxu0 }
 0x12e   : > { %v653_v21 = vadd.f32 %v462_v20, %v5379_v19 }
 0x12f   : > { %v5382_v22 = vpop.f32.mrf.mxu0 }
 0x130   : > { %v685_v23 = vmul.f32 0.5, %v653_v21 }
 0x131   : > { %v468_v24 = vpop.f32.mrf.mxu0 }
 0x132   : > { %4284 = vtanh.f32 %v685_v23  ;;  %v654_v25 = vadd.f32 %v468_v24, %v5379_v19 }
 0x133   : > { %v5385_v26 = vpop.f32.mrf.mxu0 }
 0x134   : > { %v686_v27 = vmul.f32 0.5, %v654_v25 }
 0x135   : > { %v474_v28 = vpop.f32.mrf.mxu0 }
 0x136   : > { %4286 = vtanh.f32 %v686_v27  ;;  %v655_v29 = vadd.f32 %v474_v28, %v5379_v19 }
 0x137   : > { %v5388_v30 = vpop.f32.mrf.mxu0 }
 0x138   : > { %v687_v31 = vmul.f32 0.5, %v655_v29 }
 0x139   : > { %v480_v32 = vpop.f32.mrf.mxu0 }
 0x13a   : > { %4288 = vtanh.f32 %v687_v31  ;;  %v656_v33 = vadd.f32 %v480_v32, %v5379_v19 }
 0x13b   : > { %v5391_v34 = vpop.f32.mrf.mxu0 }
 0x13c   : > { %v688_v35 = vmul.f32 0.5, %v656_v33 }
 0x13d   : > { %v486_v37 = vpop.f32.mrf.mxu0 }
 0x13e   : > { %4290 = vtanh.f32 %v688_v35  ;;  %v657_v45 = vadd.f32 %v486_v37, %v5379_v19 }
 0x13f   : > { %v4285_v46 = vpop.eup %4284  ;;  %v5394_v47 = vpop.f32.mrf.mxu0 }
 0x140   : > { %v689_v48 = vmul.f32 0.5, %v657_v45  ;;  %v749_v49 = vmul.f32 0.5, %v4285_v46 }
 0x141   : > { %v492_v50 = vpop.f32.mrf.mxu0 }
 0x142   : > { %4292 = vtanh.f32 %v689_v48  ;;  %v658_v51 = vadd.f32 %v492_v50, %v5379_v19  ;;  %v781_v52 = vadd.f32 0.5, %v749_v49 }
 0x143   : > { %v4287_v53 = vpop.eup %4286  ;;  %v5397_v54 = vpop.f32.mrf.mxu0 }
 0x144   : > { %v750_v55 = vmul.f32 0.5, %v4287_v53  ;;  %v690_v56 = vmul.f32 0.5, %v658_v51  ;;  %3980 = vmatprep.mubr.f32.mxu0 %v781_v52 }
 0x145   : > { %v498_v57 = vpop.f32.mrf.mxu0 }
 0x146   : > { %v782_v58 = vadd.f32 0.5, %v750_v55  ;;  %4294 = vtanh.f32 %v690_v56  ;;  %v659_v59 = vadd.f32 %v498_v57, %v5379_v19 }
 0x147   : > { %v4289_v61 = vpop.eup %4288  ;;  %v5400_v62 = vpop.f32.mrf.mxu0 }
 0x148   : > { %v691_v1 = vmul.f32 0.5, %v659_v59  ;;  %3981 = vmatmul.mubr.f32.vlgmr.msra.gmra.mxu0 %v782_v58  ;;  %v751_v2 = vmul.f32 0.5, %v4289_v61 }
 0x149   : > { %v504_v4 = vpop.f32.mrf.mxu0 }
 0x14a   : > { %4296 = vtanh.f32 %v691_v1  ;;  %v660_v5 = vadd.f32 %v504_v4, %v5379_v19  ;;  %v783_v7 = vadd.f32 0.5, %v751_v2 }
 0x14b   : > { %v4291_v8 = vpop.eup %4290  ;;  %v5403_v20 = vpop.f32.mrf.mxu0 }
 0x14c   : > { %v692_v21 = vmul.f32 0.5, %v660_v5  ;;  %3983 = vmatprep.mubr.f32.mxu0 %v783_v7  ;;  %v752_v23 = vmul.f32 0.5, %v4291_v8 }
 0x14d   : > { %v510_v24 = vpop.f32.mrf.mxu0 }
 0x14e   : > { %4298 = vtanh.f32 %v692_v21  ;;  %v661_v25 = vadd.f32 %v510_v24, %v5379_v19  ;;  %v784_v27 = vadd.f32 0.5, %v752_v23 }
 0x14f   : > { %v4293_v28 = vpop.eup %4292  ;;  %v5406_v29 = vpop.f32.mrf.mxu0 }
 0x150   : > { %v693_v31 = vmul.f32 0.5, %v661_v25  ;;  %3984 = vmatmul.mubr.f32.gmra.mxu0 %v784_v27  ;;  %v753_v32 = vmul.f32 0.5, %v4293_v28 }
 0x151   : > { %v516_v33 = vpop.f32.mrf.mxu0 }
 0x152   : > { %4300 = vtanh.f32 %v693_v31  ;;  %v662_v35 = vadd.f32 %v516_v33, %v5379_v19  ;;  %v785_v37 = vadd.f32 0.5, %v753_v32 }
 0x153   : > { %v4295_v45 = vpop.eup %4294  ;;  %v5409_v46 = vpop.f32.mrf.mxu0 }
 0x154   : > { %v694_v48 = vmul.f32 0.5, %v662_v35  ;;  %3986 = vmatprep.mubr.f32.mxu0 %v785_v37  ;;  %v754_v49 = vmul.f32 0.5, %v4295_v45 }
 0x155   : > { %v522_v50 = vpop.f32.mrf.mxu0 }
 0x156   : > { %4302 = vtanh.f32 %v694_v48  ;;  %v663_v51 = vadd.f32 %v522_v50, %v5379_v19  ;;  %v786_v52 = vadd.f32 0.5, %v754_v49 }
 0x157   : > { %v4297_v53 = vpop.eup %4296  ;;  %v5412_v55 = vpop.f32.mrf.mxu0 }
 0x158   : > { %v695_v56 = vmul.f32 0.5, %v663_v51  ;;  %3987 = vmatmul.mubr.f32.gmra.mxu0 %v786_v52  ;;  %v755_v57 = vmul.f32 0.5, %v4297_v53 }
 0x159   : > { %v528_v58 = vpop.f32.mrf.mxu0 }
 0x15a   : > { %4304 = vtanh.f32 %v695_v56  ;;  %v664_v59 = vadd.f32 %v528_v58, %v5379_v19  ;;  %v787_v61 = vadd.f32 0.5, %v755_v57 }
 0x15b   : > { %v4299_v1 = vpop.eup %4298  ;;  %v5415_v2 = vpop.f32.mrf.mxu0 }
 0x15c   : > { %v696_v4 = vmul.f32 0.5, %v664_v59  ;;  %3989 = vmatprep.mubr.f32.mxu0 %v787_v61  ;;  %v756_v5 = vmul.f32 0.5, %v4299_v1 }
 0x15d   : > { %v534_v7 = vpop.f32.mrf.mxu0 }
 0x15e   : > { %4306 = vtanh.f32 %v696_v4  ;;  %v665_v8 = vadd.f32 %v534_v7, %v5379_v19  ;;  %v788_v21 = vadd.f32 0.5, %v756_v5 }
 0x15f   : > { %v4301_v23 = vpop.eup %4300  ;;  %v5418_v24 = vpop.f32.mrf.mxu0 }
 0x160   : > { %v697_v25 = vmul.f32 0.5, %v665_v8  ;;  %3990 = vmatmul.mubr.f32.gmra.mxu0 %v788_v21  ;;  %v757_v27 = vmul.f32 0.5, %v4301_v23 }
 0x161   : > { %v540_v28 = vpop.f32.mrf.mxu0 }
 0x162   : > { %4308 = vtanh.f32 %v697_v25  ;;  %v666_v31 = vadd.f32 %v540_v28, %v5379_v19  ;;  %v789_v32 = vadd.f32 0.5, %v757_v27 }
 0x163   : > { %v4303_v33 = vpop.eup %4302  ;;  %v5421_v35 = vpop.f32.mrf.mxu0 }
 0x164   : > { %v698_v37 = vmul.f32 0.5, %v666_v31  ;;  %3992 = vmatprep.mubr.f32.mxu0 %v789_v32  ;;  %v758_v45 = vmul.f32 0.5, %v4303_v33 }
 0x165   : > { %v546_v48 = vpop.f32.mrf.mxu0 }
 0x166   : > { %4310 = vtanh.f32 %v698_v37  ;;  %v667_v49 = vadd.f32 %v546_v48, %v5379_v19  ;;  %v790_v50 = vadd.f32 0.5, %v758_v45 }
 0x167   : > { %v4305_v51 = vpop.eup %4304  ;;  %v5424_v52 = vpop.f32.mrf.mxu0 }
 0x168   : > { %v699_v53 = vmul.f32 0.5, %v667_v49  ;;  %3993 = vmatmul.mubr.f32.gmra.mxu0 %v790_v50  ;;  %v759_v56 = vmul.f32 0.5, %v4305_v51 }
 0x169   : > { %v552_v57 = vpop.f32.mrf.mxu0 }
 0x16a   : > { %4312 = vtanh.f32 %v699_v53  ;;  %v668_v58 = vadd.f32 %v552_v57, %v5379_v19  ;;  %v791_v59 = vadd.f32 0.5, %v759_v56 }
 0x16b   : > { %v4307_v61 = vpop.eup %4306  ;;  %v5427_v1 = vpop.f32.mrf.mxu0 }
 0x16c   : > { %v700_v4 = vmul.f32 0.5, %v668_v58  ;;  %3995 = vmatprep.mubr.f32.mxu0 %v791_v59  ;;  %v760_v5 = vmul.f32 0.5, %v4307_v61 }
 0x16d   : > { %v558_v7 = vpop.f32.mrf.mxu0 }
 0x16e   : > { %4314 = vtanh.f32 %v700_v4  ;;  %v669_v8 = vadd.f32 %v558_v7, %v5379_v19  ;;  %v792_v21 = vadd.f32 0.5, %v760_v5 }
 0x16f   : > { %v4309_v23 = vpop.eup %4308  ;;  %v5430_v25 = vpop.f32.mrf.mxu0 }
 0x170   : > { %v701_v27 = vmul.f32 0.5, %v669_v8  ;;  %3996 = vmatmul.mubr.f32.gmra.mxu0 %v792_v21  ;;  %v761_v28 = vmul.f32 0.5, %v4309_v23 }
 0x171   : > { %v564_v31 = vpop.f32.mrf.mxu0 }
 0x172   : > { %4316 = vtanh.f32 %v701_v27  ;;  %v670_v32 = vadd.f32 %v564_v31, %v5379_v19  ;;  %v793_v33 = vadd.f32 0.5, %v761_v28 }
 0x173   : > { %v4311_v37 = vpop.eup %4310  ;;  %v5433_v45 = vpop.f32.mrf.mxu0 }
 0x174   : > { %v702_v48 = vmul.f32 0.5, %v670_v32  ;;  %3998 = vmatprep.mubr.f32.mxu0 %v793_v33  ;;  %v762_v49 = vmul.f32 0.5, %v4311_v37 }
 0x175   : > { %v570_v50 = vpop.f32.mrf.mxu0 }
 0x176   : > { %4318 = vtanh.f32 %v702_v48  ;;  %v671_v51 = vadd.f32 %v570_v50, %v5379_v19  ;;  %v794_v53 = vadd.f32 0.5, %v762_v49 }
 0x177   : > { %v4313_v56 = vpop.eup %4312  ;;  %v5436_v57 = vpop.f32.mrf.mxu0 }
 0x178   : > { %v703_v58 = vmul.f32 0.5, %v671_v51  ;;  %3999 = vmatmul.mubr.f32.gmra.mxu0 %v794_v53  ;;  %v763_v59 = vmul.f32 0.5, %v4313_v56 }
 0x179   : > { %v576_v61 = vpop.f32.mrf.mxu0 }
 0x17a   : > { %4320 = vtanh.f32 %v703_v58  ;;  %v672_v4 = vadd.f32 %v576_v61, %v5379_v19  ;;  %v795_v5 = vadd.f32 0.5, %v763_v59 }
 0x17b   : > { %v4315_v7 = vpop.eup %4314  ;;  %v5439_v8 = vpop.f32.mrf.mxu0 }
 0x17c   : > { %v704_v21 = vmul.f32 0.5, %v672_v4  ;;  %4001 = vmatprep.mubr.f32.mxu0 %v795_v5  ;;  %v764_v23 = vmul.f32 0.5, %v4315_v7 }
 0x17d   : > { %v582_v27 = vpop.f32.mrf.mxu0 }
 0x17e   : > { %4322 = vtanh.f32 %v704_v21  ;;  %v673_v28 = vadd.f32 %v582_v27, %v5379_v19  ;;  %v796_v31 = vadd.f32 0.5, %v764_v23  ;;  %v257_v23 = vld [vmem:[#allocation5 + $0x1e0] sm:$0xff] }
 0x17f   : > { %v4317_v32 = vpop.eup %4316  ;;  %v5442_v33 = vpop.f32.mrf.mxu0 }
 0x180   : > { %v705_v37 = vmul.f32 0.5, %v673_v28  ;;  %4002 = vmatmul.mubr.f32.gmra.mxu0 %v796_v31  ;;  %v765_v48 = vmul.f32 0.5, %v4317_v32  ;;  %v256_v32 = vld [vmem:[#allocation5 + $0x1d0] sm:$0xff] }
 0x181   : > { %v588_v49 = vpop.f32.mrf.mxu0 }
 0x182   : > { %4324 = vtanh.f32 %v705_v37  ;;  %v674_v50 = vadd.f32 %v588_v49, %v5379_v19  ;;  %v797_v51 = vadd.f32 0.5, %v765_v48 }
 0x183   : > { %v4319_v53 = vpop.eup %4318  ;;  %v5445_v56 = vpop.f32.mrf.mxu0 }
 0x184   : > { %v706_v58 = vmul.f32 0.5, %v674_v50  ;;  %4004 = vmatprep.mubr.f32.mxu1 %v797_v51  ;;  %v766_v59 = vmul.f32 0.5, %v4319_v53  ;;  %v255_v51 = vld [vmem:[#allocation5 + $0x1c0] sm:$0xff] }
 0x185   : > { %v594_v61 = vpop.f32.mrf.mxu0 }
 0x186   : > { %4326 = vtanh.f32 %v706_v58  ;;  %v675_v4 = vadd.f32 %v594_v61, %v5379_v19  ;;  %v798_v5 = vadd.f32 0.5, %v766_v59  ;;  %v254_v61 = vld [vmem:[#allocation5 + $0x1b0] sm:$0xff] }
 0x187   : > { %v4321_v7 = vpop.eup %4320  ;;  %v5448_v21 = vpop.f32.mrf.mxu0 }
 0x188   : > { %v707_v27 = vmul.f32 0.5, %v675_v4  ;;  %4005 = vmatmul.mubr.f32.vlgmr.msra.gmra.mxu1 %v798_v5  ;;  %v767_v28 = vmul.f32 0.5, %v4321_v7 }
 0x189   : > { %v600_v31 = vpop.f32.mrf.mxu0  ;;  %4029 = vmatpush3.msra.mxu1 %v5376_v18 }
 0x18a   : > { %4328 = vtanh.f32 %v707_v27  ;;  %v676_v37 = vadd.f32 %v600_v31, %v5379_v19  ;;  %v799_v48 = vadd.f32 0.5, %v767_v28  ;;  %4030 = vmatprep.subr.mxu1 %v257_v23  ;;  %v253_v27 = vld [vmem:[#allocation5 + $0x1a0] sm:$0xff] }
 0x18b   : > { %v4323_v49 = vpop.eup %4322  ;;  %v5452_v50 = vpop.f32.mrf.mxu0  ;;  %4031 = vmatpush3.msra.mxu1 %v257_v23 }
 0x18c   : > { %v708_v53 = vmul.f32 0.5, %v676_v37  ;;  %4007 = vmatprep.mubr.f32.mxu1 %v799_v48  ;;  %v768_v58 = vmul.f32 0.5, %v4323_v49  ;;  %4032 = vmatprep.subr.mxu1 %v256_v32  ;;  %v252_v37 = vld [vmem:[#allocation5 + $0x190] sm:$0xff] }
 0x18d   : > { %v606_v59 = vpop.f32.mrf.mxu0  ;;  %4033 = vmatpush3.msra.mxu1 %v256_v32 }
 0x18e   : > { %4330 = vtanh.f32 %v708_v53  ;;  %v677_v18 = vadd.f32 %v606_v59, %v5379_v19  ;;  %v800_v4 = vadd.f32 0.5, %v768_v58  ;;  %4034 = vmatprep.subr.mxu1 %v255_v51  ;;  %v251_v58 = vld [vmem:[#allocation5 + $0x180] sm:$0xff] }
 0x18f   : > { %v4325_v5 = vpop.eup %4324  ;;  %v5455_v7 = vpop.f32.mrf.mxu0  ;;  %4035 = vmatpush3.msra.mxu1 %v255_v51 }
 0x190   : > { %v709_v28 = vmul.f32 0.5, %v677_v18  ;;  %4008 = vmatmul.mubr.f32.gmra.mxu1 %v800_v4  ;;  %v769_v23 = vmul.f32 0.5, %v4325_v5  ;;  %4036 = vmatprep.subr.mxu1 %v254_v61  ;;  %v250_v4 = vld [vmem:[#allocation5 + $0x170] sm:$0xff] }
 0x191   : > { %v612_v31 = vpop.f32.mrf.mxu0  ;;  %4037 = vmatpush3.msra.mxu1 %v254_v61 }
 0x192   : > { %4332 = vtanh.f32 %v709_v28  ;;  %v678_v32 = vadd.f32 %v612_v31, %v5379_v19  ;;  %v801_v48 = vadd.f32 0.5, %v769_v23  ;;  %4038 = vmatprep.subr.mxu1 %v253_v27  ;;  %v249_v31 = vld [vmem:[#allocation5 + $0x160] sm:$0xff] }
 0x193   : > { %v4327_v49 = vpop.eup %4326  ;;  %v5458_v53 = vpop.f32.mrf.mxu0  ;;  %4039 = vmatpush3.msra.mxu1 %v253_v27 }
 0x194   : > { %v710_v59 = vmul.f32 0.5, %v678_v32  ;;  %4010 = vmatprep.mubr.f32.mxu1 %v801_v48  ;;  %v770_v51 = vmul.f32 0.5, %v4327_v49  ;;  %4040 = vmatprep.subr.mxu1 %v252_v37  ;;  %v248_v48 = vld [vmem:[#allocation5 + $0x150] sm:$0xff] }
 0x195   : > { %v618_v18 = vpop.f32.mrf.mxu0  ;;  %4041 = vmatpush3.msra.mxu1 %v252_v37 }
 0x196   : > { %4334 = vtanh.f32 %v710_v59  ;;  %v679_v61 = vadd.f32 %v618_v18, %v5379_v19  ;;  %v802_v5 = vadd.f32 0.5, %v770_v51  ;;  %4042 = vmatprep.subr.mxu1 %v251_v58  ;;  %v247_v18 = vld [vmem:[#allocation5 + $0x140] sm:$0xff] }
 0x197   : > { %v4329_v28 = vpop.eup %4328  ;;  %v5461_v23 = vpop.f32.mrf.mxu0  ;;  %4043 = vmatpush3.msra.mxu1 %v251_v58 }
 0x198   : > { %6645 = vst [vmem:[#allocation11_spill] sm:$0xff] %v5461_v23  ;;  %v711_v0 = vmul.f32 0.5, %v679_v61  ;;  %4011 = vmatmul.mubr.f32.gmra.mxu1 %v802_v5  ;;  %v771_v27 = vmul.f32 0.5, %v4329_v28  ;;  %4044 = vmatprep.subr.mxu1 %v250_v4  ;;  %v246_v5 = vld [vmem:[#allocation5 + $0x130] sm:$0xff] }
 0x199   : > { %v624_v32 = vpop.f32.mrf.mxu0  ;;  %4045 = vmatpush3.msra.mxu1 %v250_v4 }
 0x19a   : > { %4336 = vtanh.f32 %v711_v0  ;;  %v680_v37 = vadd.f32 %v624_v32, %v5379_v19  ;;  %v803_v49 = vadd.f32 0.5, %v771_v27  ;;  %4046 = vmatprep.subr.mxu1 %v249_v31  ;;  %v245_v32 = vld [vmem:[#allocation5 + $0x120] sm:$0xff] }
 0x19b   : > { %v4331_v59 = vpop.eup %4330  ;;  %v5464_v51 = vpop.f32.mrf.mxu0  ;;  %4047 = vmatpush3.msra.mxu1 %v249_v31 }
 0x19c   : > { %6646 = vst [vmem:[#allocation12_spill] sm:$0xff] %v5464_v51  ;;  %v712_v23 = vmul.f32 0.5, %v680_v37  ;;  %4013 = vmatprep.mubr.f32.mxu1 %v803_v49  ;;  %v772_v58 = vmul.f32 0.5, %v4331_v59  ;;  %4048 = vmatprep.subr.mxu1 %v248_v48  ;;  %v244_v49 = vld [vmem:[#allocation5 + $0x110] sm:$0xff] }
 0x19d   : > { %v630_v61 = vpop.f32.mrf.mxu0  ;;  %4049 = vmatpush3.msra.mxu1 %v248_v48 }
 0x19e   : > { %4338 = vtanh.f32 %v712_v23  ;;  %v681_v4 = vadd.f32 %v630_v61, %v5379_v19  ;;  %v804_v0 = vadd.f32 0.5, %v772_v58  ;;  %4050 = vmatprep.subr.mxu1 %v247_v18  ;;  %v243_v61 = vld [vmem:[#allocation5 + $0x100] sm:$0xff] }
 0x19f   : > { %v4333_v28 = vpop.eup %4332  ;;  %v5467_v27 = vpop.f32.mrf.mxu0  ;;  %4051 = vmatpush3.msra.mxu1 %v247_v18 }
 0x1a0   : > { %6647 = vst [vmem:[#allocation13_spill] sm:$0xff] %v5467_v27  ;;  %v713_v51 = vmul.f32 0.5, %v681_v4  ;;  %4014 = vmatmul.mubr.f32.gmra.mxu1 %v804_v0  ;;  %v773_v31 = vmul.f32 0.5, %v4333_v28  ;;  %4052 = vmatprep.subr.mxu1 %v246_v5  ;;  %v306_v0 = vld [vmem:[#allocation5 + $0x2f8] sm:$0xff] }
 0x1a1   : > { %v636_v37 = vpop.f32.mrf.mxu0  ;;  %4053 = vmatpush3.msra.mxu1 %v246_v5 }
 0x1a2   : > { %4340 = vtanh.f32 %v713_v51  ;;  %v682_v48 = vadd.f32 %v636_v37, %v5379_v19  ;;  %v805_v23 = vadd.f32 0.5, %v773_v31  ;;  %4054 = vmatprep.subr.mxu1 %v245_v32 }
 0x1a3   : > { %v4335_v59 = vpop.eup %4334  ;;  %v5470_v58 = vpop.f32.mrf.mxu0  ;;  %4055 = vmatpush3.msra.mxu1 %v245_v32 }
 0x1a4   : > { %6648 = vst [vmem:[#allocation14_spill] sm:$0xff] %v5470_v58  ;;  %v714_v27 = vmul.f32 0.5, %v682_v48  ;;  %4016 = vmatprep.mubr.f32.mxu1 %v805_v23  ;;  %v774_v18 = vmul.f32 0.5, %v4335_v59  ;;  %4056 = vmatprep.subr.mxu1 %v244_v49 }
 0x1a5   : > { %v642_v4 = vpop.f32.mrf.mxu0  ;;  %4057 = vmatpush3.msra.mxu1 %v244_v49 }
 0x1a6   : > { %4342 = vtanh.f32 %v714_v27  ;;  %v683_v5 = vadd.f32 %v642_v4, %v5379_v19  ;;  %v806_v51 = vadd.f32 0.5, %v774_v18  ;;  %4058 = vmatprep.subr.mxu1 %v243_v61 }
 0x1a7   : > { %v4337_v28 = vpop.eup %4336  ;;  %v5473_v31 = vpop.f32.mrf.mxu0  ;;  %4059 = vmatpush3.msra.mxu1 %v243_v61 }
 0x1a8   : > { %6649 = vst [vmem:[#allocation15_spill] sm:$0xff] %v5473_v31  ;;  %v715_v37 = vmul.f32 0.5, %v683_v5  ;;  %4017 = vmatmul.mubr.f32.gmra.mxu1 %v806_v51  ;;  %v775_v32 = vmul.f32 0.5, %v4337_v28  ;;  %1915 = vmatprep.subr.mxu1 %v306_v0 }
 0x1a9   : > { %v648_v48 = vpop.f32.mrf.mxu0 }
 0x1aa   : > { %4344 = vtanh.f32 %v715_v37  ;;  %v684_v23 = vadd.f32 %v648_v48, %v5379_v19  ;;  %v807_v59 = vadd.f32 0.5, %v775_v32 }
 0x1ab   : > { %v4339_v49 = vpop.eup %4338 }
 0x1ac   : > { %v716_v58 = vmul.f32 0.5, %v684_v23  ;;  %4019 = vmatprep.mubr.f32.mxu1 %v807_v59  ;;  %v776_v27 = vmul.f32 0.5, %v4339_v49  ;;  %v305_v59 = vld [vmem:[#allocation5 + $0x2f0] sm:$0xff]  ;;  %v304_v49 = vld [vmem:[#allocation5 + $0x2e8] sm:$0xff] }
 0x1ae   : > { %4346 = vtanh.f32 %v716_v58  ;;  %v808_v18 = vadd.f32 0.5, %v776_v27  ;;  %v4924_v58 = vld [vmem:[%s5239_s24] sm:$0xff]  ;;  %v302_v27 = vld [vmem:[#allocation5 + $0x2d8] sm:$0xff] }
 0x1af   : > { %v4341_v4 = vpop.eup %4340 }
 0x1b0   : > { %4020 = vmatmul.mubr.f32.gmra.mxu1 %v808_v18  ;;  %v777_v31 = vmul.f32 0.5, %v4341_v4  ;;  %v301_v18 = vld [vmem:[#allocation5 + $0x2d0] sm:$0xff]  ;;  %v300_v4 = vld [vmem:[#allocation5 + $0x2c8] sm:$0xff] }
 0x1b2   : > { %v809_v61 = vadd.f32 0.5, %v777_v31  ;;  %v303_v31 = vld [vmem:[#allocation5 + $0x2e0] sm:$0xff] }
 0x1b3   : > { %v4343_v5 = vpop.eup %4342 }
 0x1b4   : > { %4022 = vmatprep.mubr.f32.mxu1 %v809_v61  ;;  %v778_v51 = vmul.f32 0.5, %v4343_v5  ;;  %v299_v61 = vld [vmem:[#allocation5 + $0x2c0] sm:$0xff]  ;;  %v298_v5 = vld [vmem:[#allocation5 + $0x2b8] sm:$0xff] }
 0x1b6   : > { %v810_v0 = vadd.f32 0.5, %v778_v51  ;;  %v297_v51 = vld [vmem:[#allocation5 + $0x2b0] sm:$0xff] }
 0x1b7   : > { %v4345_v28 = vpop.eup %4344 }
 0x1b8   : > { %4023 = vmatmul.mubr.f32.gmra.mxu1 %v810_v0  ;;  %v779_v37 = vmul.f32 0.5, %v4345_v28  ;;  %v294_v0 = vld [vmem:[#allocation5 + $0x298] sm:$0xff]  ;;  %v291_v28 = vld [vmem:[#allocation5 + $0x280] sm:$0xff] }
 0x1ba   : > { %v811_v19 = vadd.f32 0.5, %v779_v37  ;;  %v289_v37 = vld [vmem:[#allocation5 + $0x270] sm:$0xff] }
 0x1bb   : > { %v4347_v32 = vpop.eup %4346 }
 0x1bc   : > { %4025 = vmatprep.mubr.f32.mxu1 %v811_v19  ;;  %v780_v48 = vmul.f32 0.5, %v4347_v32  ;;  %v4925_v19 = vld [vmem:[%s5239_s24 + $0x48] sm:$0xff]  ;;  %v287_v32 = vld [vmem:[#allocation5 + $0x260] sm:$0xff] }
 0x1be   : > { %v812_v23 = vadd.f32 0.5, %v780_v48  ;;  %v4926_v48 = vld [vmem:[%s5239_s24 + $0x50] sm:$0xff] }
 0x1c0   : > { %4026 = vmatmul.mubr.f32.gmra.mxu1 %v812_v23  ;;  %v285_v23 = vld [vmem:[#allocation5 + $0x250] sm:$0xff] }
 0x1c1   : > { %4060 = vmatprep.mubr.f32.mxu1 %v4924_v58  ;;  %v4927_v58 = vld [vmem:[%s5239_s24 + $0x58] sm:$0xff] }
 0x1c4   : > { %4061 = vmatmul.mubr.f32.vlgmr.msra.gmra.mxu1 %v5253_v36  ;;  %v296_v36 = vld [vmem:[#allocation5 + $0x2a8] sm:$0xff] }
 0x1c5   : > { %4063 = vmatprep.mubr.f32.mxu1 %v5258_v38  ;;  %1916 = vmatpush1.msra.mxu1 %v305_v59  ;;  %v295_v38 = vld [vmem:[#allocation5 + $0x2a0] sm:$0xff] }
 0x1c6   : > { %1917 = vmatprep.subr.mxu1 %v304_v49  ;;  %v283_v59 = vld [vmem:[#allocation5 + $0x240] sm:$0xff] }
 0x1c7   : > { %1918 = vmatpush1.msra.mxu1 %v303_v31  ;;  %v4928_v49 = vld [vmem:[%s5239_s24 + $0x60] sm:$0xff]  ;;  %v282_v31 = vld [vmem:[#allocation5 + $0x238] sm:$0xff] }
 0x1c8   : > { %4064 = vmatmul.mubr.f32.gmra.mxu1 %v5263_v39  ;;  %1919 = vmatprep.subr.mxu1 %v302_v27  ;;  %v293_v39 = vld [vmem:[#allocation5 + $0x290] sm:$0xff] }
 0x1c9   : > { %4066 = vmatprep.mubr.f32.mxu1 %v5268_v40  ;;  %1920 = vmatpush1.msra.mxu1 %v301_v18  ;;  %v292_v40 = vld [vmem:[#allocation5 + $0x288] sm:$0xff]  ;;  %v281_v27 = vld [vmem:[#allocation5 + $0x230] sm:$0xff] }
 0x1ca   : > { %1921 = vmatprep.subr.mxu1 %v300_v4  ;;  %v280_v18 = vld [vmem:[#allocation5 + $0x228] sm:$0xff] }
 0x1cb   : > { %1922 = vmatpush1.msra.mxu1 %v299_v61  ;;  %v4929_v4 = vld [vmem:[%s5239_s24 + $0x68] sm:$0xff]  ;;  %v279_v61 = vld [vmem:[#allocation5 + $0x220] sm:$0xff] }
 0x1cc   : > { %4067 = vmatmul.mubr.f32.gmra.mxu1 %v5273_v41  ;;  %1923 = vmatprep.subr.mxu1 %v298_v5  ;;  %v290_v41 = vld [vmem:[#allocation5 + $0x278] sm:$0xff]  ;;  %v4930_v5 = vld [vmem:[%s5239_s24 + $0x70] sm:$0xff] }
 0x1cd   : > { %4069 = vmatprep.mubr.f32.mxu1 %v5278_v42  ;;  %1924 = vmatpush1.msra.mxu1 %v297_v51  ;;  %v288_v42 = vld [vmem:[#allocation5 + $0x268] sm:$0xff]  ;;  %v278_v51 = vld [vmem:[#allocation5 + $0x218] sm:$0xff] }
 0x1ce   : > { %1925 = vmatprep.subr.mxu1 %v296_v36  ;;  %v277_v36 = vld [vmem:[#allocation5 + $0x210] sm:$0xff] }
 0x1cf   : > { %1926 = vmatpush1.msra.mxu1 %v295_v38  ;;  %v276_v38 = vld [vmem:[#allocation5 + $0x208] sm:$0xff] }
 0x1d0   : > { %4070 = vmatmul.mubr.f32.gmra.mxu1 %v5283_v43  ;;  %1927 = vmatprep.subr.mxu1 %v294_v0  ;;  %v286_v43 = vld [vmem:[#allocation5 + $0x258] sm:$0xff] }
 0x1d1   : > { %4072 = vmatprep.mubr.f32.mxu1 %v5288_v44  ;;  %1928 = vmatpush1.msra.mxu1 %v293_v39  ;;  %v284_v44 = vld [vmem:[#allocation5 + $0x248] sm:$0xff]  ;;  %v4931_v0 = vld [vmem:[%s5239_s24 + $0x78] sm:$0xff]  ;;  %v275_v39 = vld [vmem:[#allocation5 + $0x200] sm:$0xff] }
 0x1d2   : > { %1929 = vmatprep.subr.mxu1 %v292_v40  ;;  %v4932_v40 = vld [vmem:[%s5239_s24 + $0x80] sm:$0xff] }
 0x1d3   : > { %1930 = vmatpush1.msra.mxu1 %v291_v28  ;;  %v4933_v28 = vld [vmem:[%s5239_s24 + $0x88] sm:$0xff] }
 0x1d4   : > { %4073 = vmatmul.mubr.f32.gmra.mxu1 %v4925_v19  ;;  %1931 = vmatprep.subr.mxu1 %v290_v41  ;;  %v6650_v41 = vmov 0.0  }
 0x1d5   : > { %4075 = vmatprep.mubr.f32.mxu1 %v4926_v48  ;;  %1932 = vmatpush1.msra.mxu1 %v289_v37  ;;  %v4934_v37 = vld [vmem:[%s5239_s24 + $0x90] sm:$0xff] }
 0x1d6   : > { %1933 = vmatprep.subr.mxu1 %v288_v42  ;;  %v386_v42 = vld [vmem:[#allocation5 + $0x4f8] sm:$0xff] }
 0x1d7   : > { %1934 = vmatpush1.msra.mxu1 %v287_v32  ;;  %4108 = vmatprep.subr.mxu0 %v386_v42  ;;  %v378_v32 = vld [vmem:[#allocation5 + $0x478] sm:$0xff] }
 0x1d8   : > { %4076 = vmatmul.mubr.f32.gmra.mxu1 %v4927_v58  ;;  %1935 = vmatprep.subr.mxu1 %v286_v43  ;;  %v376_v58 = vld [vmem:[#allocation5 + $0x458] sm:$0xff] }
 0x1d9   : > { %4078 = vmatprep.mubr.f32.mxu1 %v4928_v49  ;;  %1936 = vmatpush1.msra.mxu1 %v285_v23  ;;  %v377_v23 = vld [vmem:[#allocation5 + $0x468] sm:$0xff] }
 0x1da   : > { %1937 = vmatprep.subr.mxu1 %v284_v44  ;;  %4109 = vmatpush3.msra.mxu0 %v386_v42  ;;  %v375_v49 = vld [vmem:[#allocation5 + $0x448] sm:$0xff] }
 0x1db   : > { %1938 = vmatpush1.msra.mxu1 %v283_v59 }
 0x1dc   : > { %4079 = vmatmul.mubr.f32.gmra.mxu1 %v4929_v4  ;;  %1939 = vmatprep.subr.mxu1 %v282_v31 }
 0x1dd   : > { %4081 = vmatprep.mubr.f32.mxu1 %v4930_v5  ;;  %1940 = vmatpush1.msra.mxu1 %v281_v27  ;;  %v373_v5 = vld [vmem:[#allocation5 + $0x428] sm:$0xff] }
 0x1de   : > { %1941 = vmatprep.subr.mxu1 %v280_v18  ;;  %v374_v18 = vld [vmem:[#allocation5 + $0x438] sm:$0xff] }
 0x1df   : > { %1942 = vmatpush1.msra.mxu1 %v279_v61 }
 0x1e0   : > { %4082 = vmatmul.mubr.f32.gmra.mxu1 %v4931_v0  ;;  %1943 = vmatprep.subr.mxu1 %v278_v51 }
 0x1e1   : > { %4084 = vmatprep.mubr.f32.mxu1 %v4932_v40  ;;  %1944 = vmatpush1.msra.mxu1 %v277_v36  ;;  %v372_v36 = vld [vmem:[#allocation5 + $0x418] sm:$0xff] }
 0x1e2   : > { %1945 = vmatprep.subr.mxu1 %v276_v38  ;;  %v371_v38 = vld [vmem:[#allocation5 + $0x408] sm:$0xff] }
 0x1e3   : > { %1946 = vmatpush1.msra.mxu1 %v275_v39 }
 0x1e4   : > { %4085 = vmatmul.mubr.f32.gmra.mxu1 %v4933_v28  ;;  %3016 = vmatprep.subr.mxu1 %v6650_v41 }
 0x1e5   : > { %4087 = vmatprep.mubr.f32.mxu1 %v4934_v37 }
 0x1e8   : > { %4088 = vmatmul.mubr.f32.gmra.mxu1 %v5313_v60  ;;  %v385_v60 = vld [vmem:[#allocation5 + $0x4e8] sm:$0xff] }
 0x1e9   : > { %4090 = vmatprep.mubr.f32.mxu1 %v5318_v63  ;;  %4110 = vmatprep.subr.mxu0 %v385_v60  ;;  %v384_v63 = vld [vmem:[#allocation5 + $0x4d8] sm:$0xff] }
 0x1ea   : > { %4111 = vmatpush3.msra.mxu0 %v385_v60 }
 0x1eb   : > { %4112 = vmatprep.subr.mxu0 %v384_v63 }
 0x1ec   : > { %4091 = vmatmul.mubr.f32.gmra.mxu1 %v5323_v3  ;;  %4113 = vmatpush3.msra.mxu0 %v384_v63  ;;  %v383_v3 = vld [vmem:[#allocation5 + $0x4c8] sm:$0xff] }
 0x1ed   : > { %4093 = vmatprep.mubr.f32.mxu1 %v5328_v6  ;;  %4114 = vmatprep.subr.mxu0 %v383_v3  ;;  %v382_v6 = vld [vmem:[#allocation5 + $0x4b8] sm:$0xff] }
 0x1ee   : > { %4115 = vmatpush3.msra.mxu0 %v383_v3 }
 0x1ef   : > { %4116 = vmatprep.subr.mxu0 %v382_v6 }
 0x1f0   : > { %4094 = vmatmul.mubr.f32.gmra.mxu1 %v5333_v9  ;;  %4117 = vmatpush3.msra.mxu0 %v382_v6  ;;  %v5510_v9 = vpop.f32.mrf.mxu0 }
 0x1f1   : > { %4096 = vmatprep.mubr.f32.mxu1 %v5338_v10  ;;  %v381_v10 = vld [vmem:[#allocation5 + $0x4a8] sm:$0xff] }
 0x1f2   : > { %4118 = vmatprep.subr.mxu0 %v381_v10 }
 0x1f3   : > { %4119 = vmatpush3.msra.mxu0 %v381_v10 }
 0x1f4   : > { %4097 = vmatmul.mubr.f32.gmra.mxu1 %v5343_v11  ;;  %v5512_v11 = vld [vmem:[#allocation5 + $0x601] ss:$0 sm:$0xff] }
 0x1f5   : > { %4099 = vmatprep.mubr.f32.mxu1 %v5348_v12 }
 0x1f8   : > { %4100 = vmatmul.mubr.f32.gmra.mxu1 %v5353_v13  ;;  %v380_v13 = vld [vmem:[#allocation5 + $0x498] sm:$0xff] }
 0x1f9   : > { %4102 = vmatprep.mubr.f32.mxu1 %v5358_v14  ;;  %4120 = vmatprep.subr.mxu0 %v380_v13 }
 0x1fa   : > { %4121 = vmatpush3.msra.mxu0 %v380_v13 }
 0x1fc   : > { %4103 = vmatmul.mubr.f32.gmra.mxu1 %v5363_v15 }
 0x1fd   : > { %4105 = vmatprep.mubr.f32.mxu1 %v5368_v16  ;;  %v379_v16 = vld [vmem:[#allocation5 + $0x488] sm:$0xff] }
 0x1fe   : > { %4122 = vmatprep.subr.mxu0 %v379_v16 }
 0x1ff   : > { %4123 = vmatpush3.msra.mxu0 %v379_v16 }
 0x200   : > { %4106 = vmatmul.mubr.f32.gmra.mxu1 %v5373_v17  ;;  %4124 = vmatprep.subr.mxu0 %v378_v32 }
 0x201   : > { %1979 = vmatprep.mubr.f32.mxu1 %v6650_v41  ;;  %4125 = vmatpush3.msra.mxu0 %v378_v32 }
 0x202   : > { %4126 = vmatprep.subr.mxu0 %v377_v23 }
 0x203   : > { %4127 = vmatpush3.msra.mxu0 %v377_v23 }
 0x204   : > { %4128 = vmatprep.subr.mxu0 %v376_v58 }
 0x205   : > { %4129 = vmatpush3.msra.mxu0 %v376_v58 }
 0x206   : > { %4130 = vmatprep.subr.mxu0 %v375_v49 }
 0x207   : > { %4131 = vmatpush3.msra.mxu0 %v375_v49 }
 0x208   : > { %v3982_v12 = vpop.f32.mrf.mxu0  ;;  %4132 = vmatprep.subr.mxu0 %v374_v18 }
 0x209   : > { %v885_v14 = vadd.f32 %v3982_v12, %v5385_v26  ;;  %4133 = vmatpush3.msra.mxu0 %v374_v18 }
 0x20a   : > { %v879_v15 = vpop.f32.mrf.mxu0  ;;  %4134 = vmatprep.subr.mxu0 %v373_v5 }
 0x20b   : > { %v1039_v17 = vadd.f32 %v885_v14, %v5512_v11  ;;  %v880_v19 = vadd.f32 %v879_v15, %v5382_v22  ;;  %4135 = vmatpush3.msra.mxu0 %v373_v5 }
 0x20c   : > { %4136 = vmatprep.subr.mxu0 %v372_v36 }
 0x20d   : > { %v1071_v48 = vmul.f32 0.5, %v1039_v17  ;;  %v1038_v43 = vadd.f32 %v880_v19, %v5512_v11  ;;  %4137 = vmatpush3.msra.mxu0 %v372_v36 }
 0x20e   : > { %4138 = vmatprep.subr.mxu0 %v371_v38 }
 0x20f   : > { %v1070_v44 = vmul.f32 0.5, %v1038_v43  ;;  %4348 = vtanh.f32 %v1071_v48  ;;  %4139 = vmatpush3.msra.mxu0 %v371_v38 }
 0x210   : > { %v3985_v26 = vpop.f32.mrf.mxu0 }
 0x211   : > { %4350 = vtanh.f32 %v1070_v44  ;;  %v895_v59 = vadd.f32 %v3985_v26, %v5391_v34 }
 0x212   : > { %v889_v22 = vpop.f32.mrf.mxu0 }
 0x213   : > { %v1041_v31 = vadd.f32 %v895_v59, %v5512_v11  ;;  %v890_v27 = vadd.f32 %v889_v22, %v5388_v30 }
 0x215   : > { %v1073_v4 = vmul.f32 0.5, %v1041_v31  ;;  %v1040_v61 = vadd.f32 %v890_v27, %v5512_v11 }
 0x217   : > { %v1072_v51 = vmul.f32 0.5, %v1040_v61  ;;  %4352 = vtanh.f32 %v1073_v4 }
 0x218   : > { %v3988_v34 = vpop.f32.mrf.mxu0 }
 0x219   : > { %4354 = vtanh.f32 %v1072_v51  ;;  %v905_v0 = vadd.f32 %v3988_v34, %v5397_v54 }
 0x21a   : > { %v899_v30 = vpop.f32.mrf.mxu0 }
 0x21b   : > { %v1043_v39 = vadd.f32 %v905_v0, %v5512_v11  ;;  %v900_v40 = vadd.f32 %v899_v30, %v5394_v47 }
 0x21c   : > { %v4349_v28 = vpop.eup %4348 }
 0x21d   : > { %v1075_v37 = vmul.f32 0.5, %v1043_v39  ;;  %v1042_v42 = vadd.f32 %v900_v40, %v5512_v11  ;;  %v1135_v12 = vmul.f32 0.5, %v4349_v28 }
 0x21e   : > { %v4351_v60 = vpop.eup %4350 }
 0x21f   : > { %v1134_v63 = vmul.f32 0.5, %v4351_v60  ;;  %v1074_v3 = vmul.f32 0.5, %v1042_v42  ;;  %4356 = vtanh.f32 %v1075_v37  ;;  %v1167_v19 = vadd.f32 0.5, %v1135_v12 }
 0x220   : > { %v3991_v6 = vpop.f32.mrf.mxu0 }
 0x221   : > { %v1166_v10 = vadd.f32 0.5, %v1134_v63  ;;  %4358 = vtanh.f32 %v1074_v3  ;;  %v915_v54 = vadd.f32 %v3991_v6, %v5403_v20 }
 0x222   : > { %v909_v13 = vpop.f32.mrf.mxu0 }
 0x223   : > { %v1045_v14 = vadd.f32 %v915_v54, %v5512_v11  ;;  %v910_v47 = vadd.f32 %v909_v13, %v5400_v62  ;;  %1980 = vmatmul.mubr.f32.vlgmr.msra.gmra.mxu1 %v1166_v10 }
 0x224   : > { %1985 = vmatprep.mubr.f32.mxu1 %v6650_v41  ;;  %v4353_v15 = vpop.eup %4352 }
 0x225   : > { %v1077_v16 = vmul.f32 0.5, %v1045_v14  ;;  %v1044_v17 = vadd.f32 %v910_v47, %v5512_v11  ;;  %v1137_v44 = vmul.f32 0.5, %v4353_v15 }
 0x226   : > { %v4355_v32 = vpop.eup %4354 }
 0x227   : > { %v1076_v48 = vmul.f32 0.5, %v1044_v17  ;;  %1986 = vmatmul.mubr.f32.gmra.mxu1 %v1167_v19  ;;  %v1136_v43 = vmul.f32 0.5, %v4355_v32  ;;  %4360 = vtanh.f32 %v1077_v16  ;;  %v1169_v27 = vadd.f32 0.5, %v1137_v44 }
 0x228   : > { %v3994_v20 = vpop.f32.mrf.mxu0  ;;  %1991 = vmatprep.mubr.f32.mxu1 %v6650_v41 }
 0x229   : > { %4362 = vtanh.f32 %v1076_v48  ;;  %v925_v23 = vadd.f32 %v3994_v20, %v5409_v46  ;;  %v1168_v62 = vadd.f32 0.5, %v1136_v43 }
 0x22a   : > { %v919_v26 = vpop.f32.mrf.mxu0 }
 0x22b   : > { %v1047_v58 = vadd.f32 %v925_v23, %v5512_v11  ;;  %v920_v59 = vadd.f32 %v919_v26, %v5406_v29  ;;  %1992 = vmatmul.mubr.f32.gmra.mxu1 %v1168_v62 }
 0x22c   : > { %1997 = vmatprep.mubr.f32.mxu1 %v6650_v41  ;;  %v4357_v22 = vpop.eup %4356 }
 0x22d   : > { %v1079_v49 = vmul.f32 0.5, %v1047_v58  ;;  %v1046_v31 = vadd.f32 %v920_v59, %v5512_v11  ;;  %v1139_v51 = vmul.f32 0.5, %v4357_v22 }
 0x22e   : > { %v4359_v18 = vpop.eup %4358 }
 0x22f   : > { %v1078_v4 = vmul.f32 0.5, %v1046_v31  ;;  %1998 = vmatmul.mubr.f32.gmra.mxu1 %v1169_v27  ;;  %v1138_v61 = vmul.f32 0.5, %v4359_v18  ;;  %4364 = vtanh.f32 %v1079_v49  ;;  %v1171_v40 = vadd.f32 0.5, %v1139_v51 }
 0x230   : > { %v3997_v46 = vpop.f32.mrf.mxu0  ;;  %2003 = vmatprep.mubr.f32.mxu1 %v6650_v41 }
 0x231   : > { %4366 = vtanh.f32 %v1078_v4  ;;  %v935_v5 = vadd.f32 %v3997_v46, %v5415_v2  ;;  %v1170_v29 = vadd.f32 0.5, %v1138_v61 }
 0x232   : > { %v929_v34 = vpop.f32.mrf.mxu0 }
 0x233   : > { %v1049_v36 = vadd.f32 %v935_v5, %v5512_v11  ;;  %v930_v38 = vadd.f32 %v929_v34, %v5412_v55  ;;  %2004 = vmatmul.mubr.f32.gmra.mxu1 %v1170_v29 }
 0x234   : > { %2009 = vmatprep.mubr.f32.mxu1 %v6650_v41  ;;  %v4361_v0 = vpop.eup %4360 }
 0x235   : > { %v1081_v30 = vmul.f32 0.5, %v1049_v36  ;;  %v1048_v39 = vadd.f32 %v930_v38, %v5512_v11  ;;  %v1141_v63 = vmul.f32 0.5, %v4361_v0 }
 0x236   : > { %v4363_v28 = vpop.eup %4362 }
 0x237   : > { %v1080_v37 = vmul.f32 0.5, %v1048_v39  ;;  %2010 = vmatmul.mubr.f32.gmra.mxu1 %v1171_v40  ;;  %v1140_v42 = vmul.f32 0.5, %v4363_v28  ;;  %4368 = vtanh.f32 %v1081_v30  ;;  %v1173_v14 = vadd.f32 0.5, %v1141_v63 }
 0x238   : > { %v4000_v2 = vpop.f32.mrf.mxu0  ;;  %2015 = vmatprep.mubr.f32.mxu1 %v6650_v41 }
 0x239   : > { %4370 = vtanh.f32 %v1080_v37  ;;  %v945_v60 = vadd.f32 %v4000_v2, %v5421_v35  ;;  %v1172_v55 = vadd.f32 0.5, %v1140_v42 }
 0x23a   : > { %v939_v3 = vpop.f32.mrf.mxu0 }
 0x23b   : > { %v1051_v6 = vadd.f32 %v945_v60, %v5512_v11  ;;  %v940_v10 = vadd.f32 %v939_v3, %v5418_v24  ;;  %2016 = vmatmul.mubr.f32.gmra.mxu1 %v1172_v55 }
 0x23c   : > { %2021 = vmatprep.mubr.f32.mxu1 %v6650_v41  ;;  %v4365_v54 = vpop.eup %4364 }
 0x23d   : > { %v1083_v12 = vmul.f32 0.5, %v1051_v6  ;;  %v1050_v13 = vadd.f32 %v940_v10, %v5512_v11  ;;  %v1143_v19 = vmul.f32 0.5, %v4365_v54 }
 0x23e   : > { %v4367_v47 = vpop.eup %4366 }
 0x23f   : > { %v1082_v15 = vmul.f32 0.5, %v1050_v13  ;;  %2022 = vmatmul.mubr.f32.gmra.mxu1 %v1173_v14  ;;  %v1142_v16 = vmul.f32 0.5, %v4367_v47  ;;  %4372 = vtanh.f32 %v1083_v12  ;;  %v1175_v44 = vadd.f32 0.5, %v1143_v19 }
 0x240   : > { %v4003_v35 = vpop.f32.mrf.mxu0  ;;  %2027 = vmatprep.mubr.f32.mxu1 %v6650_v41 }
 0x241   : > { %4374 = vtanh.f32 %v1082_v15  ;;  %v955_v17 = vadd.f32 %v4003_v35, %v5427_v1  ;;  %v1174_v24 = vadd.f32 0.5, %v1142_v16 }
 0x242   : > { %v949_v32 = vpop.f32.mrf.mxu0 }
 0x243   : > { %v1053_v48 = vadd.f32 %v955_v17, %v5512_v11  ;;  %v950_v43 = vadd.f32 %v949_v32, %v5424_v52  ;;  %2028 = vmatmul.mubr.f32.gmra.mxu1 %v1174_v24 }
 0x244   : > { %2033 = vmatprep.mubr.f32.mxu1 %v6650_v41  ;;  %v4369_v20 = vpop.eup %4368 }
 0x245   : > { %v1085_v23 = vmul.f32 0.5, %v1053_v48  ;;  %v1052_v62 = vadd.f32 %v950_v43, %v5512_v11  ;;  %v1145_v49 = vmul.f32 0.5, %v4369_v20 }
 0x246   : > { %v4371_v26 = vpop.eup %4370 }
 0x247   : > { %v1084_v58 = vmul.f32 0.5, %v1052_v62  ;;  %2034 = vmatmul.mubr.f32.gmra.mxu1 %v1175_v44  ;;  %v1144_v59 = vmul.f32 0.5, %v4371_v26  ;;  %4376 = vtanh.f32 %v1085_v23  ;;  %v1177_v5 = vadd.f32 0.5, %v1145_v49 }
 0x248   : > { %v4006_v1 = vpop.f32.mrf.mxu1  ;;  %2039 = vmatprep.mubr.f32.mxu1 %v6650_v41 }
 0x249   : > { %4378 = vtanh.f32 %v1084_v58  ;;  %v965_v22 = vadd.f32 %v4006_v1, %v5433_v45  ;;  %v1176_v52 = vadd.f32 0.5, %v1144_v59 }
 0x24a   : > { %v959_v31 = vpop.f32.mrf.mxu1 }
 0x24b   : > { %v1055_v27 = vadd.f32 %v965_v22, %v5512_v11  ;;  %v960_v18 = vadd.f32 %v959_v31, %v5430_v25  ;;  %2040 = vmatmul.mubr.f32.gmra.mxu1 %v1176_v52 }
 0x24c   : > { %2045 = vmatprep.mubr.f32.mxu1 %v6650_v41  ;;  %v4373_v4 = vpop.eup %4372 }
 0x24d   : > { %v1087_v61 = vmul.f32 0.5, %v1055_v27  ;;  %v1054_v46 = vadd.f32 %v960_v18, %v5512_v11  ;;  %v1147_v38 = vmul.f32 0.5, %v4373_v4 }
 0x24e   : > { %v4375_v29 = vpop.eup %4374 }
 0x24f   : > { %v1086_v51 = vmul.f32 0.5, %v1054_v46  ;;  %2046 = vmatmul.mubr.f32.gmra.mxu1 %v1177_v5  ;;  %v1146_v34 = vmul.f32 0.5, %v4375_v29  ;;  %4380 = vtanh.f32 %v1087_v61  ;;  %v1179_v42 = vadd.f32 0.5, %v1147_v38  ;;  %v6651_v29 = vld [vmem:[#allocation12_spill] sm:$0xff] }
 0x250   : > { %v4009_v45 = vpop.f32.mrf.mxu1  ;;  %2051 = vmatprep.mubr.f32.mxu1 %v6650_v41 }
 0x251   : > { %4382 = vtanh.f32 %v1086_v51  ;;  %v975_v36 = vadd.f32 %v4009_v45, %v5439_v8  ;;  %v1178_v25 = vadd.f32 0.5, %v1146_v34 }
 0x252   : > { %v969_v0 = vpop.f32.mrf.mxu1 }
 0x253   : > { %v1057_v30 = vadd.f32 %v975_v36, %v5512_v11  ;;  %v970_v39 = vadd.f32 %v969_v0, %v5436_v57  ;;  %2052 = vmatmul.mubr.f32.gmra.mxu1 %v1178_v25  ;;  %v6652_v25 = vld [vmem:[#allocation11_spill] sm:$0xff] }
 0x254   : > { %2057 = vmatprep.mubr.f32.mxu1 %v6650_v41  ;;  %v4377_v40 = vpop.eup %4376 }
 0x255   : > { %v1089_v28 = vmul.f32 0.5, %v1057_v30  ;;  %v1056_v37 = vadd.f32 %v970_v39, %v5512_v11  ;;  %v1149_v3 = vmul.f32 0.5, %v4377_v40 }
 0x256   : > { %v4379_v2 = vpop.eup %4378 }
 0x257   : > { %v1088_v60 = vmul.f32 0.5, %v1056_v37  ;;  %2058 = vmatmul.mubr.f32.gmra.mxu1 %v1179_v42  ;;  %v1148_v55 = vmul.f32 0.5, %v4379_v2  ;;  %4384 = vtanh.f32 %v1089_v28  ;;  %v1181_v47 = vadd.f32 0.5, %v1149_v3 }
 0x258   : > { %v4012_v8 = vpop.f32.mrf.mxu1  ;;  %2063 = vmatprep.mubr.f32.mxu1 %v6650_v41 }
 0x259   : > { %4386 = vtanh.f32 %v1088_v60  ;;  %v985_v63 = vadd.f32 %v4012_v8, %v5445_v56  ;;  %v1180_v57 = vadd.f32 0.5, %v1148_v55  ;;  %v6653_v60 = vld [vmem:[#allocation14_spill] sm:$0xff] }
 0x25a   : > { %v979_v6 = vpop.f32.mrf.mxu1 }
 0x25b   : > { %v1059_v10 = vadd.f32 %v985_v63, %v5512_v11  ;;  %v980_v54 = vadd.f32 %v979_v6, %v5442_v33  ;;  %2064 = vmatmul.mubr.f32.gmra.mxu1 %v1180_v57  ;;  %v6654_v6 = vld [vmem:[#allocation13_spill] sm:$0xff] }
 0x25c   : > { %2069 = vmatprep.mubr.f32.mxu1 %v6650_v41  ;;  %v4381_v12 = vpop.eup %4380 }
 0x25d   : > { %v1091_v13 = vmul.f32 0.5, %v1059_v10  ;;  %v1058_v14 = vadd.f32 %v980_v54, %v5512_v11  ;;  %v1151_v24 = vmul.f32 0.5, %v4381_v12 }
 0x25e   : > { %v4383_v15 = vpop.eup %4382 }
 0x25f   : > { %v1090_v16 = vmul.f32 0.5, %v1058_v14  ;;  %2070 = vmatmul.mubr.f32.gmra.mxu1 %v1181_v47  ;;  %v1150_v35 = vmul.f32 0.5, %v4383_v15  ;;  %4388 = vtanh.f32 %v1091_v13  ;;  %v1183_v62 = vadd.f32 0.5, %v1151_v24 }
 0x260   : > { %v4015_v56 = vpop.f32.mrf.mxu1  ;;  %2075 = vmatprep.mubr.f32.mxu1 %v6650_v41 }
 0x261   : > { %4390 = vtanh.f32 %v1090_v16  ;;  %v995_v17 = vadd.f32 %v4015_v56, %v5452_v50  ;;  %v1182_v33 = vadd.f32 0.5, %v1150_v35 }
 0x262   : > { %v989_v19 = vpop.f32.mrf.mxu1 }
 0x263   : > { %v1061_v32 = vadd.f32 %v995_v17, %v5512_v11  ;;  %v990_v48 = vadd.f32 %v989_v19, %v5448_v21  ;;  %2076 = vmatmul.mubr.f32.gmra.mxu1 %v1182_v33 }
 0x264   : > { %2081 = vmatprep.mubr.f32.mxu1 %v6650_v41  ;;  %v4385_v43 = vpop.eup %4384 }
 0x265   : > { %v1093_v20 = vmul.f32 0.5, %v1061_v32  ;;  %v1060_v23 = vadd.f32 %v990_v48, %v5512_v11  ;;  %v1153_v1 = vmul.f32 0.5, %v4385_v43  ;;  %v6655_v32 = vld [vmem:[#allocation15_spill] sm:$0xff] }
 0x266   : > { %v4387_v44 = vpop.eup %4386 }
 0x267   : > { %v1092_v26 = vmul.f32 0.5, %v1060_v23  ;;  %2082 = vmatmul.mubr.f32.gmra.mxu1 %v1183_v62  ;;  %v1152_v58 = vmul.f32 0.5, %v4387_v44  ;;  %4392 = vtanh.f32 %v1093_v20  ;;  %v1185_v4 = vadd.f32 0.5, %v1153_v1 }
 0x268   : > { %v4018_v50 = vpop.f32.mrf.mxu1  ;;  %2087 = vmatprep.mubr.f32.mxu1 %v6650_v41 }
 0x269   : > { %4394 = vtanh.f32 %v1092_v26  ;;  %v1005_v59 = vadd.f32 %v4018_v50, %v5458_v53  ;;  %v1184_v21 = vadd.f32 0.5, %v1152_v58 }
 0x26a   : > { %v999_v22 = vpop.f32.mrf.mxu1 }
 0x26b   : > { %v1063_v52 = vadd.f32 %v1005_v59, %v5512_v11  ;;  %v1000_v49 = vadd.f32 %v999_v22, %v5455_v7  ;;  %2088 = vmatmul.mubr.f32.gmra.mxu1 %v1184_v21 }
 0x26c   : > { %2093 = vmatprep.mubr.f32.mxu1 %v6650_v41  ;;  %v4389_v31 = vpop.eup %4388 }
 0x26d   : > { %v1095_v27 = vmul.f32 0.5, %v1063_v52  ;;  %v1062_v18 = vadd.f32 %v1000_v49, %v5512_v11  ;;  %v1155_v34 = vmul.f32 0.5, %v4389_v31 }
 0x26e   : > { %v4391_v61 = vpop.eup %4390 }
 0x26f   : > { %v1094_v46 = vmul.f32 0.5, %v1062_v18  ;;  %2094 = vmatmul.mubr.f32.gmra.mxu1 %v1185_v4  ;;  %v1154_v5 = vmul.f32 0.5, %v4391_v61  ;;  %4396 = vtanh.f32 %v1095_v27  ;;  %v1187_v40 = vadd.f32 0.5, %v1155_v34 }
 0x270   : > { %v4021_v53 = vpop.f32.mrf.mxu1  ;;  %2099 = vmatprep.mubr.f32.mxu1 %v6650_v41 }
 0x271   : > { %4398 = vtanh.f32 %v1094_v46  ;;  %v1015_v51 = vadd.f32 %v4021_v53, %v6651_v29  ;;  %v1186_v7 = vadd.f32 0.5, %v1154_v5 }
 0x272   : > { %v1009_v45 = vpop.f32.mrf.mxu1 }
 0x273   : > { %v1065_v36 = vadd.f32 %v1015_v51, %v5512_v11  ;;  %v1010_v38 = vadd.f32 %v1009_v45, %v6652_v25  ;;  %2100 = vmatmul.mubr.f32.gmra.mxu1 %v1186_v7 }
 0x274   : > { %2105 = vmatprep.mubr.f32.mxu1 %v6650_v41  ;;  %v4393_v0 = vpop.eup %4392 }
 0x275   : > { %v1097_v30 = vmul.f32 0.5, %v1065_v36  ;;  %v1064_v39 = vadd.f32 %v1010_v38, %v5512_v11  ;;  %v1157_v63 = vmul.f32 0.5, %v4393_v0 }
 0x276   : > { %v4395_v28 = vpop.eup %4394 }
 0x277   : > { %v1096_v37 = vmul.f32 0.5, %v1064_v39  ;;  %2106 = vmatmul.mubr.f32.gmra.mxu1 %v1187_v40  ;;  %v1156_v42 = vmul.f32 0.5, %v4395_v28  ;;  %4400 = vtanh.f32 %v1097_v30  ;;  %v1189_v14 = vadd.f32 0.5, %v1157_v63 }
 0x278   : > { %v4024_v2 = vpop.f32.mrf.mxu1  ;;  %2111 = vmatprep.mubr.f32.mxu1 %v6650_v41 }
 0x279   : > { %4402 = vtanh.f32 %v1096_v37  ;;  %v1025_v55 = vadd.f32 %v4024_v2, %v6653_v60  ;;  %v1188_v8 = vadd.f32 0.5, %v1156_v42 }
 0x27a   : > { %v1019_v57 = vpop.f32.mrf.mxu1 }
 0x27b   : > { %v1067_v3 = vadd.f32 %v1025_v55, %v5512_v11  ;;  %v1020_v10 = vadd.f32 %v1019_v57, %v6654_v6  ;;  %2112 = vmatmul.mubr.f32.gmra.mxu1 %v1188_v8 }
 0x27c   : > { %2117 = vmatprep.mubr.f32.mxu1 %v6650_v41  ;;  %v4397_v54 = vpop.eup %4396 }
 0x27d   : > { %v1099_v12 = vmul.f32 0.5, %v1067_v3  ;;  %v1066_v13 = vadd.f32 %v1020_v10, %v5512_v11  ;;  %v1159_v33 = vmul.f32 0.5, %v4397_v54 }
 0x27e   : > { %v4399_v47 = vpop.eup %4398 }
 0x27f   : > { %v1098_v15 = vmul.f32 0.5, %v1066_v13  ;;  %2118 = vmatmul.mubr.f32.gmra.mxu1 %v1189_v14  ;;  %v1158_v16 = vmul.f32 0.5, %v4399_v47  ;;  %4404 = vtanh.f32 %v1099_v12  ;;  %v1191_v26 = vadd.f32 0.5, %v1159_v33 }
 0x280   : > { %v4027_v35 = vpop.f32.mrf.mxu1  ;;  %2123 = vmatprep.mubr.f32.mxu1 %v6650_v41 }
 0x281   : > { %4406 = vtanh.f32 %v1098_v15  ;;  %v1035_v56 = vadd.f32 %v4027_v35, %v5510_v9  ;;  %v1190_v17 = vadd.f32 0.5, %v1158_v16 }
 0x282   : > { %v1029_v24 = vpop.f32.mrf.mxu1 }
 0x283   : > { %v1069_v19 = vadd.f32 %v1035_v56, %v5512_v11  ;;  %v1030_v48 = vadd.f32 %v1029_v24, %v6655_v32  ;;  %2124 = vmatmul.mubr.f32.gmra.mxu1 %v1190_v17 }
 0x284   : > { %v4062_v43 = vpop.f32.mrf.mxu1  ;;  %2129 = vmatprep.mubr.f32.mxu1 %v6650_v41  ;;  %v4401_v20 = vpop.eup %4400 }
 0x285   : > { %v1101_v23 = vmul.f32 0.5, %v1069_v19  ;;  %v1068_v62 = vadd.f32 %v1030_v48, %v5512_v11  ;;  %v1424_v44 = vmul.f32 0.5, %v4062_v43  ;;  %v1161_v49 = vmul.f32 0.5, %v4401_v20 }
 0x286   : > { %v4403_v58 = vpop.eup %4402  ;;  %v1264_v50 = vpop.f32.mrf.mxu1 }
 0x287   : > { %4408 = vtanh.f32 %v1101_v23  ;;  %v1100_v9 = vmul.f32 0.5, %v1068_v62  ;;  %v1423_v59 = vmul.f32 0.5, %v1264_v50  ;;  %2130 = vmatmul.mubr.f32.gmra.mxu1 %v1191_v26  ;;  %v1160_v21 = vmul.f32 0.5, %v4403_v58 }
 0x288   : > { %4410 = vtanh.f32 %v1424_v44  ;;  %v4065_v1 = vpop.f32.mrf.mxu1  ;;  %2135 = vmatprep.mubr.f32.mxu1 %v6650_v41  ;;  %v1193_v61 = vadd.f32 0.5, %v1161_v49 }
 0x289   : > { %4412 = vtanh.f32 %v1100_v9  ;;  %v1426_v22 = vmul.f32 0.5, %v4065_v1  ;;  %v1192_v52 = vadd.f32 0.5, %v1160_v21 }
 0x28a   : > { %4414 = vtanh.f32 %v1423_v59  ;;  %v1274_v31 = vpop.f32.mrf.mxu1 }
 0x28b   : > { %4416 = vtanh.f32 %v1426_v22  ;;  %v1425_v11 = vmul.f32 0.5, %v1274_v31  ;;  %2136 = vmatmul.mubr.f32.gmra.mxu1 %v1192_v52 }
 0x28c   : > { %2141 = vmatprep.mubr.f32.mxu1 %v6650_v41  ;;  %v4068_v27 = vpop.f32.mrf.mxu1  ;;  %v4405_v18 = vpop.eup %4404 }
 0x28d   : > { %4418 = vtanh.f32 %v1425_v11  ;;  %v1428_v4 = vmul.f32 0.5, %v4068_v27  ;;  %v1163_v45 = vmul.f32 0.5, %v4405_v18 }
 0x28e   : > { %v4407_v46 = vpop.eup %4406  ;;  %v1284_v5 = vpop.f32.mrf.mxu1 }
 0x28f   : > { %4420 = vtanh.f32 %v1428_v4  ;;  %2142 = vmatmul.mubr.f32.gmra.mxu1 %v1193_v61  ;;  %v1427_v53 = vmul.f32 0.5, %v1284_v5  ;;  %v1162_v29 = vmul.f32 0.5, %v4407_v46  ;;  %v1195_v39 = vadd.f32 0.5, %v1163_v45 }
 0x290   : > { %2147 = vmatprep.mubr.f32.mxu1 %v6650_v41  ;;  %v4071_v51 = vpop.f32.mrf.mxu1 }
 0x291   : > { %4422 = vtanh.f32 %v1427_v53  ;;  %v1194_v7 = vadd.f32 0.5, %v1162_v29  ;;  %v1430_v34 = vmul.f32 0.5, %v4071_v51 }
 0x292   : > { %v1294_v36 = vpop.f32.mrf.mxu1 }
 0x293   : > { %2148 = vmatmul.mubr.f32.gmra.mxu1 %v1194_v7  ;;  %4424 = vtanh.f32 %v1430_v34  ;;  %v1429_v25 = vmul.f32 0.5, %v1294_v36 }
 0x294   : > { %v4409_v38 = vpop.eup %4408  ;;  %2153 = vmatprep.mubr.f32.mxu1 %v6650_v41  ;;  %v4074_v0 = vpop.f32.mrf.mxu1 }
 0x295   : > { %v4411_v30 = vpop.eup %4410  ;;  %4426 = vtanh.f32 %v1429_v25  ;;  %v1432_v40 = vmul.f32 0.5, %v4074_v0  ;;  %v1165_v57 = vmul.f32 0.5, %v4409_v38 }
 0x296   : > { %v4413_v28 = vpop.eup %4412  ;;  %v1304_v37 = vpop.f32.mrf.mxu1  ;;  %v1488_v2 = vmul.f32 0.5, %v4411_v30 }
 0x297   : > { %v4415_v42 = vpop.eup %4414  ;;  %2154 = vmatmul.mubr.f32.gmra.mxu1 %v1195_v39  ;;  %v1164_v60 = vmul.f32 0.5, %v4413_v28  ;;  %4428 = vtanh.f32 %v1432_v40  ;;  %v1431_v55 = vmul.f32 0.5, %v1304_v37  ;;  %v1197_v56 = vadd.f32 0.5, %v1165_v57 }
 0x298   : > { %v4417_v8 = vpop.eup %4416  ;;  %2159 = vmatprep.mubr.f32.mxu1 %v6650_v41  ;;  %v1487_v63 = vmul.f32 0.5, %v4415_v42  ;;  %v4077_v3 = vpop.f32.mrf.mxu1  ;;  %v1520_v47 = vadd.f32 0.5, %v1488_v2 }
 0x299   : > { %v1196_v6 = vadd.f32 0.5, %v1164_v60  ;;  %v1490_v10 = vmul.f32 0.5, %v4417_v8  ;;  %4430 = vtanh.f32 %v1431_v55  ;;  %v1434_v54 = vmul.f32 0.5, %v4077_v3 }
 0x29a   : > { %v4419_v12 = vpop.eup %4418  ;;  %v1519_v13 = vadd.f32 0.5, %v1487_v63  ;;  %v1314_v14 = vpop.f32.mrf.mxu1 }
 0x29b   : > { %2160 = vmatmul.mubr.f32.gmra.mxu1 %v1196_v6  ;;  %v1489_v15 = vmul.f32 0.5, %v4419_v12  ;;  %4432 = vtanh.f32 %v1434_v54  ;;  %v1433_v16 = vmul.f32 0.5, %v1314_v14  ;;  %v1522_v17 = vadd.f32 0.5, %v1490_v10 }
 0x29c   : > { %v4421_v35 = vpop.eup %4420  ;;  %4140 = vmatprep.mubr.f32.mxu0 %v1519_v13  ;;  %2165 = vmatprep.mubr.f32.mxu1 %v6650_v41  ;;  %v4080_v33 = vpop.f32.mrf.mxu1 }
 0x29d   : > { %4141 = vmatmul.mubr.f32.vlgmr.msra.gmra.mxu0 %v1520_v47  ;;  %v1521_v24 = vadd.f32 0.5, %v1489_v15  ;;  %v1492_v19 = vmul.f32 0.5, %v4421_v35  ;;  %4434 = vtanh.f32 %v1433_v16  ;;  %v1436_v32 = vmul.f32 0.5, %v4080_v33 }
 0x29e   : > { %v4423_v48 = vpop.eup %4422  ;;  %v1324_v43 = vpop.f32.mrf.mxu1 }
 0x29f   : > { %4143 = vmatprep.mubr.f32.mxu0 %v1521_v24  ;;  %2166 = vmatmul.mubr.f32.gmra.mxu1 %v1197_v56  ;;  %v1491_v20 = vmul.f32 0.5, %v4423_v48  ;;  %4436 = vtanh.f32 %v1436_v32  ;;  %v1435_v23 = vmul.f32 0.5, %v1324_v43  ;;  %v1524_v44 = vadd.f32 0.5, %v1492_v19 }
 0x2a0   : > { %v4425_v62 = vpop.eup %4424  ;;  %v4083_v26 = vpop.f32.mrf.mxu1 }
 0x2a1   : > { %4144 = vmatmul.mubr.f32.gmra.mxu0 %v1522_v17  ;;  %v1523_v58 = vadd.f32 0.5, %v1491_v20  ;;  %v1494_v50 = vmul.f32 0.5, %v4425_v62  ;;  %4438 = vtanh.f32 %v1435_v23  ;;  %v1438_v9 = vmul.f32 0.5, %v4083_v26 }
 0x2a2   : > { %v4427_v59 = vpop.eup %4426  ;;  %v1334_v21 = vpop.f32.mrf.mxu1 }
 0x2a3   : > { %4146 = vmatprep.mubr.f32.mxu0 %v1523_v58  ;;  %v1493_v1 = vmul.f32 0.5, %v4427_v59  ;;  %4440 = vtanh.f32 %v1438_v9  ;;  %v1437_v22 = vmul.f32 0.5, %v1334_v21  ;;  %v1526_v49 = vadd.f32 0.5, %v1494_v50 }
 0x2a4   : > { %v4429_v52 = vpop.eup %4428  ;;  %v4086_v31 = vpop.f32.mrf.mxu1 }
 0x2a5   : > { %4147 = vmatmul.mubr.f32.gmra.mxu0 %v1524_v44  ;;  %v1525_v11 = vadd.f32 0.5, %v1493_v1  ;;  %v1496_v27 = vmul.f32 0.5, %v4429_v52  ;;  %4442 = vtanh.f32 %v1437_v22  ;;  %v1440_v18 = vmul.f32 0.5, %v4086_v31 }
 0x2a6   : > { %v4431_v4 = vpop.eup %4430  ;;  %v1344_v61 = vpop.f32.mrf.mxu1 }
 0x2a7   : > { %4149 = vmatprep.mubr.f32.mxu0 %v1525_v11  ;;  %v1495_v46 = vmul.f32 0.5, %v4431_v4  ;;  %4444 = vtanh.f32 %v1440_v18  ;;  %v1439_v5 = vmul.f32 0.5, %v1344_v61  ;;  %v1528_v29 = vadd.f32 0.5, %v1496_v27 }
 0x2a8   : > { %v4433_v53 = vpop.eup %4432  ;;  %v4089_v51 = vpop.f32.mrf.mxu1 }
 0x2a9   : > { %4150 = vmatmul.mubr.f32.gmra.mxu0 %v1526_v49  ;;  %v1527_v7 = vadd.f32 0.5, %v1495_v46  ;;  %v1498_v34 = vmul.f32 0.5, %v4433_v53  ;;  %4446 = vtanh.f32 %v1439_v5  ;;  %v1442_v45 = vmul.f32 0.5, %v4089_v51 }
 0x2aa   : > { %v4435_v36 = vpop.eup %4434  ;;  %v1354_v25 = vpop.f32.mrf.mxu1 }
 0x2ab   : > { %4152 = vmatprep.mubr.f32.mxu0 %v1527_v7  ;;  %v1497_v38 = vmul.f32 0.5, %v4435_v36  ;;  %4448 = vtanh.f32 %v1442_v45  ;;  %v1441_v0 = vmul.f32 0.5, %v1354_v25  ;;  %v1530_v39 = vadd.f32 0.5, %v1498_v34 }
 0x2ac   : > { %v4437_v30 = vpop.eup %4436  ;;  %v4092_v40 = vpop.f32.mrf.mxu1 }
 0x2ad   : > { %4153 = vmatmul.mubr.f32.gmra.mxu0 %v1528_v29  ;;  %v1529_v28 = vadd.f32 0.5, %v1497_v38  ;;  %v1500_v37 = vmul.f32 0.5, %v4437_v30  ;;  %4450 = vtanh.f32 %v1441_v0  ;;  %v1444_v42 = vmul.f32 0.5, %v4092_v40 }
 0x2ae   : > { %v4439_v2 = vpop.eup %4438  ;;  %v1364_v60 = vpop.f32.mrf.mxu1 }
 0x2af   : > { %4155 = vmatprep.mubr.f32.mxu0 %v1529_v28  ;;  %v1499_v55 = vmul.f32 0.5, %v4439_v2  ;;  %4452 = vtanh.f32 %v1444_v42  ;;  %v1443_v8 = vmul.f32 0.5, %v1364_v60  ;;  %v1532_v57 = vadd.f32 0.5, %v1500_v37  ;;  %v338_v60 = vld [vmem:[#allocation5 + $0x3f8] sm:$0xff] }
 0x2b0   : > { %v4441_v63 = vpop.eup %4440  ;;  %v4095_v3 = vpop.f32.mrf.mxu1  ;;  %2439 = vmatprep.subr.mxu0 %v338_v60 }
 0x2b1   : > { %4156 = vmatmul.mubr.f32.gmra.mxu0 %v1530_v39  ;;  %v1531_v6 = vadd.f32 0.5, %v1499_v55  ;;  %4454 = vtanh.f32 %v1443_v8  ;;  %v1446_v10 = vmul.f32 0.5, %v4095_v3  ;;  %v1502_v54 = vmul.f32 0.5, %v4441_v63  ;;  %v337_v8 = vld [vmem:[#allocation5 + $0x3f0] sm:$0xff]  ;;  %v336_v3 = vld [vmem:[#allocation5 + $0x3e8] sm:$0xff] }
 0x2b2   : > { %v4443_v12 = vpop.eup %4442  ;;  %v1374_v13 = vpop.f32.mrf.mxu1  ;;  %2440 = vmatpush1.msra.mxu0 %v337_v8 }
 0x2b3   : > { %4158 = vmatprep.mubr.f32.mxu0 %v1531_v6  ;;  %v1501_v14 = vmul.f32 0.5, %v4443_v12  ;;  %4456 = vtanh.f32 %v1446_v10  ;;  %v1445_v47 = vmul.f32 0.5, %v1374_v13  ;;  %v1534_v16 = vadd.f32 0.5, %v1502_v54  ;;  %2441 = vmatprep.subr.mxu0 %v336_v3  ;;  %v335_v13 = vld [vmem:[#allocation5 + $0x3e0] sm:$0xff] }
 0x2b4   : > { %v4445_v15 = vpop.eup %4444  ;;  %v4098_v35 = vpop.f32.mrf.mxu1  ;;  %2442 = vmatpush1.msra.mxu0 %v335_v13 }
 0x2b5   : > { %4159 = vmatmul.mubr.f32.gmra.mxu0 %v1532_v57  ;;  %v1533_v56 = vadd.f32 0.5, %v1501_v14  ;;  %4458 = vtanh.f32 %v1445_v47  ;;  %v1448_v17 = vmul.f32 0.5, %v4098_v35  ;;  %v1504_v33 = vmul.f32 0.5, %v4445_v15 }
 0x2b6   : > { %v4447_v24 = vpop.eup %4446  ;;  %v1384_v19 = vpop.f32.mrf.mxu1 }
 0x2b7   : > { %4161 = vmatprep.mubr.f32.mxu0 %v1533_v56  ;;  %4460 = vtanh.f32 %v1448_v17  ;;  %v1447_v32 = vmul.f32 0.5, %v1384_v19  ;;  %v1503_v48 = vmul.f32 0.5, %v4447_v24  ;;  %v1536_v23 = vadd.f32 0.5, %v1504_v33  ;;  %v334_v56 = vld [vmem:[#allocation5 + $0x3d8] sm:$0xff]  ;;  %v333_v33 = vld [vmem:[#allocation5 + $0x3d0] sm:$0xff]  ;;  %v332_v19 = vld [vmem:[#allocation5 + $0x3c8] sm:$0xff] }
 0x2b8   : > { %v4449_v43 = vpop.eup %4448  ;;  %v4101_v20 = vpop.f32.mrf.mxu1  ;;  %2443 = vmatprep.subr.mxu0 %v334_v56 }
 0x2b9   : > { %4162 = vmatmul.mubr.f32.gmra.mxu0 %v1534_v16  ;;  %4462 = vtanh.f32 %v1447_v32  ;;  %v1535_v62 = vadd.f32 0.5, %v1503_v48  ;;  %v1450_v44 = vmul.f32 0.5, %v4101_v20  ;;  %v1506_v26 = vmul.f32 0.5, %v4449_v43  ;;  %v331_v43 = vld [vmem:[#allocation5 + $0x3c0] sm:$0xff]  ;;  %v330_v20 = vld [vmem:[#allocation5 + $0x3b8] sm:$0xff] }
 0x2ba   : > { %v4451_v58 = vpop.eup %4450  ;;  %v1394_v50 = vpop.f32.mrf.mxu1  ;;  %2444 = vmatpush1.msra.mxu0 %v333_v33 }
 0x2bb   : > { %4164 = vmatprep.mubr.f32.mxu0 %v1535_v62  ;;  %4464 = vtanh.f32 %v1450_v44  ;;  %v1449_v9 = vmul.f32 0.5, %v1394_v50  ;;  %v1505_v59 = vmul.f32 0.5, %v4451_v58  ;;  %v1538_v22 = vadd.f32 0.5, %v1506_v26  ;;  %2445 = vmatprep.subr.mxu0 %v332_v19  ;;  %v328_v62 = vld [vmem:[#allocation5 + $0x3a8] sm:$0xff]  ;;  %v327_v44 = vld [vmem:[#allocation5 + $0x3a0] sm:$0xff]  ;;  %v326_v26 = vld [vmem:[#allocation5 + $0x398] sm:$0xff] }
 0x2bc   : > { %v4453_v21 = vpop.eup %4452  ;;  %v4104_v1 = vpop.f32.mrf.mxu1  ;;  %2446 = vmatpush1.msra.mxu0 %v331_v43  ;;  %v325_v58 = vld [vmem:[#allocation5 + $0x390] sm:$0xff]  ;;  %v324_v50 = vld [vmem:[#allocation5 + $0x388] sm:$0xff]  ;;  %v345_v19 = vld [vmem:[#allocation5 + $0x460] sm:$0xff] }
 0x2bd   : > { %4165 = vmatmul.mubr.f32.gmra.mxu0 %v1536_v23  ;;  %4466 = vtanh.f32 %v1449_v9  ;;  %v1452_v52 = vmul.f32 0.5, %v4104_v1  ;;  %v1537_v49 = vadd.f32 0.5, %v1505_v59  ;;  %v1508_v31 = vmul.f32 0.5, %v4453_v21  ;;  %2447 = vmatprep.subr.mxu0 %v330_v20  ;;  %v329_v23 = vld [vmem:[#allocation5 + $0x3b0] sm:$0xff]  ;;  %v323_v9 = vld [vmem:[#allocation5 + $0x380] sm:$0xff]  ;;  %v322_v59 = vld [vmem:[#allocation5 + $0x378] sm:$0xff] }
 0x2be   : > { %v4455_v11 = vpop.eup %4454  ;;  %v1404_v27 = vpop.f32.mrf.mxu1  ;;  %2448 = vmatpush1.msra.mxu0 %v329_v23  ;;  %v321_v21 = vld [vmem:[#allocation5 + $0x370] sm:$0xff]  ;;  %v320_v1 = vld [vmem:[#allocation5 + $0x368] sm:$0xff] }
 0x2bf   : > { %4468 = vtanh.f32 %v1452_v52  ;;  %v1451_v18 = vmul.f32 0.5, %v1404_v27  ;;  %4167 = vmatprep.mubr.f32.mxu0 %v1537_v49  ;;  %v1507_v4 = vmul.f32 0.5, %v4455_v11  ;;  %v1540_v5 = vadd.f32 0.5, %v1508_v31  ;;  %2449 = vmatprep.subr.mxu0 %v328_v62  ;;  %v318_v52 = vld [vmem:[#allocation5 + $0x358] sm:$0xff]  ;;  %v317_v49 = vld [vmem:[#allocation5 + $0x350] sm:$0xff]  ;;  %v316_v31 = vld [vmem:[#allocation5 + $0x348] sm:$0xff] }
 0x2c0   : > { %v4457_v61 = vpop.eup %4456  ;;  %v4107_v46 = vpop.f32.mrf.mxu1  ;;  %2450 = vmatpush1.msra.mxu0 %v327_v44  ;;  %v315_v11 = vld [vmem:[#allocation5 + $0x340] sm:$0xff]  ;;  %v314_v27 = vld [vmem:[#allocation5 + $0x338] sm:$0xff]  ;;  %v344_v23 = vld [vmem:[#allocation5 + $0x450] sm:$0xff] }
 0x2c1   : > { %4470 = vtanh.f32 %v1451_v18  ;;  %v1454_v53 = vmul.f32 0.5, %v4107_v46  ;;  %4168 = vmatmul.mubr.f32.gmra.mxu0 %v1538_v22  ;;  %v1539_v29 = vadd.f32 0.5, %v1507_v4  ;;  %v1510_v51 = vmul.f32 0.5, %v4457_v61  ;;  %2451 = vmatprep.subr.mxu0 %v326_v26  ;;  %v319_v22 = vld [vmem:[#allocation5 + $0x360] sm:$0xff]  ;;  %v313_v18 = vld [vmem:[#allocation5 + $0x330] sm:$0xff]  ;;  %v312_v4 = vld [vmem:[#allocation5 + $0x328] sm:$0xff] }
 0x2c2   : > { %v4459_v7 = vpop.eup %4458  ;;  %v1414_v34 = vpop.f32.mrf.mxu1  ;;  %2452 = vmatpush1.msra.mxu0 %v325_v58  ;;  %v311_v61 = vld [vmem:[#allocation5 + $0x320] sm:$0xff]  ;;  %v310_v46 = vld [vmem:[#allocation5 + $0x318] sm:$0xff] }
 0x2c3   : > { %4472 = vtanh.f32 %v1454_v53  ;;  %v1453_v45 = vmul.f32 0.5, %v1414_v34  ;;  %4170 = vmatprep.mubr.f32.mxu0 %v1539_v29  ;;  %v1509_v36 = vmul.f32 0.5, %v4459_v7  ;;  %v1542_v0 = vadd.f32 0.5, %v1510_v51  ;;  %2453 = vmatprep.subr.mxu0 %v324_v50  ;;  %v308_v53 = vld [vmem:[#allocation5 + $0x308] sm:$0xff]  ;;  %v307_v29 = vld [vmem:[#allocation5 + $0x300] sm:$0xff]  ;;  %v354_v51 = vld [vmem:[#allocation5 + $0x4f0] sm:$0xff] }
 0x2c4   : > { %v4461_v25 = vpop.eup %4460  ;;  %2454 = vmatpush1.msra.mxu0 %v323_v9  ;;  %3017 = vmatpush1.msra.mxu1 %v354_v51  ;;  %v353_v7 = vld [vmem:[#allocation5 + $0x4e0] sm:$0xff] }
 0x2c5   : > { %4474 = vtanh.f32 %v1453_v45  ;;  %4171 = vmatmul.mubr.f32.gmra.mxu0 %v1540_v5  ;;  %v1541_v38 = vadd.f32 0.5, %v1509_v36  ;;  %v1512_v30 = vmul.f32 0.5, %v4461_v25  ;;  %2455 = vmatprep.subr.mxu0 %v322_v59  ;;  %v309_v5 = vld [vmem:[#allocation5 + $0x310] sm:$0xff]  ;;  %v5612_v34 = vld [vmem:[#allocation5 + $0x602] ss:$0 sm:$0xff] }
 0x2c6   : > { %v4463_v39 = vpop.eup %4462  ;;  %2456 = vmatpush1.msra.mxu0 %v321_v21  ;;  %3018 = vmatprep.subr.mxu1 %v6650_v41  ;;  %v352_v45 = vld [vmem:[#allocation5 + $0x4d0] sm:$0xff]  ;;  %v343_v26 = vld [vmem:[#allocation5 + $0x440] sm:$0xff] }
 0x2c7   : > { %4173 = vmatprep.mubr.f32.mxu0 %v1541_v38  ;;  %v1511_v40 = vmul.f32 0.5, %v4463_v39  ;;  %v1544_v42 = vadd.f32 0.5, %v1512_v30  ;;  %2457 = vmatprep.subr.mxu0 %v320_v1  ;;  %v342_v21 = vld [vmem:[#allocation5 + $0x430] sm:$0xff] }
 0x2c8   : > { %v4465_v28 = vpop.eup %4464  ;;  %2458 = vmatpush1.msra.mxu0 %v319_v22  ;;  %3019 = vmatpush1.msra.mxu1 %v353_v7  ;;  %v370_v7 = vld [vmem:[#allocation5 + $0x5f0] sm:$0xff] }
 0x2c9   : > { %4174 = vmatmul.mubr.f32.gmra.mxu0 %v1542_v0  ;;  %v1543_v37 = vadd.f32 0.5, %v1511_v40  ;;  %v1514_v2 = vmul.f32 0.5, %v4465_v28  ;;  %2459 = vmatprep.subr.mxu0 %v318_v52  ;;  %v351_v0 = vld [vmem:[#allocation5 + $0x4c0] sm:$0xff] }
 0x2ca   : > { %v4467_v55 = vpop.eup %4466  ;;  %2460 = vmatpush1.msra.mxu0 %v317_v49  ;;  %3020 = vmatprep.subr.mxu1 %v6650_v41  ;;  %v341_v52 = vld [vmem:[#allocation5 + $0x420] sm:$0xff] }
 0x2cb   : > { %4176 = vmatprep.mubr.f32.mxu0 %v1543_v37  ;;  %v1513_v63 = vmul.f32 0.5, %v4467_v55  ;;  %v1546_v10 = vadd.f32 0.5, %v1514_v2  ;;  %2461 = vmatprep.subr.mxu0 %v316_v31 }
 0x2cc   : > { %v4469_v57 = vpop.eup %4468  ;;  %2462 = vmatpush1.msra.mxu0 %v315_v11  ;;  %3021 = vmatpush1.msra.mxu1 %v352_v45 }
 0x2cd   : > { %4177 = vmatmul.mubr.f32.gmra.mxu0 %v1544_v42  ;;  %v1545_v6 = vadd.f32 0.5, %v1513_v63  ;;  %v1516_v54 = vmul.f32 0.5, %v4469_v57  ;;  %2463 = vmatprep.subr.mxu0 %v314_v27  ;;  %v350_v42 = vld [vmem:[#allocation5 + $0x4b0] sm:$0xff]  ;;  %v349_v57 = vld [vmem:[#allocation5 + $0x4a0] sm:$0xff] }
 0x2ce   : > { %v4471_v12 = vpop.eup %4470  ;;  %2464 = vmatpush1.msra.mxu0 %v313_v18  ;;  %3022 = vmatprep.subr.mxu1 %v6650_v41  ;;  %v340_v18 = vld [vmem:[#allocation5 + $0x410] sm:$0xff] }
 0x2cf   : > { %4179 = vmatprep.mubr.f32.mxu0 %v1545_v6  ;;  %v1515_v14 = vmul.f32 0.5, %v4471_v12  ;;  %v1548_v16 = vadd.f32 0.5, %v1516_v54  ;;  %2465 = vmatprep.subr.mxu0 %v312_v4  ;;  %v348_v54 = vld [vmem:[#allocation5 + $0x490] sm:$0xff] }
 0x2d0   : > { %v4473_v47 = vpop.eup %4472  ;;  %2466 = vmatpush1.msra.mxu0 %v311_v61  ;;  %3023 = vmatpush1.msra.mxu1 %v351_v0 }
 0x2d1   : > { %4180 = vmatmul.mubr.f32.gmra.mxu0 %v1546_v10  ;;  %v1547_v15 = vadd.f32 0.5, %v1515_v14  ;;  %v1518_v35 = vmul.f32 0.5, %v4473_v47  ;;  %2467 = vmatprep.subr.mxu0 %v310_v46  ;;  %v347_v47 = vld [vmem:[#allocation5 + $0x480] sm:$0xff] }
 0x2d2   : > { %v4475_v17 = vpop.eup %4474  ;;  %2468 = vmatpush1.msra.mxu0 %v309_v5  ;;  %3024 = vmatprep.subr.mxu1 %v6650_v41  ;;  %v339_v46 = vld [vmem:[#allocation5 + $0x400] sm:$0xff] }
 0x2d3   : > { %4182 = vmatprep.mubr.f32.mxu0 %v1547_v15  ;;  %v1517_v24 = vmul.f32 0.5, %v4475_v17  ;;  %v1550_v48 = vadd.f32 0.5, %v1518_v35  ;;  %2469 = vmatprep.subr.mxu0 %v308_v53 }
 0x2d4   : > { %2470 = vmatpush1.msra.mxu0 %v307_v29  ;;  %3025 = vmatpush1.msra.mxu1 %v350_v42 }
 0x2d5   : > { %4183 = vmatmul.mubr.f32.gmra.mxu0 %v1548_v16  ;;  %v1549_v32 = vadd.f32 0.5, %v1517_v24  ;;  %3026 = vmatprep.subr.mxu1 %v6650_v41  ;;  %v346_v24 = vld [vmem:[#allocation5 + $0x470] sm:$0xff] }
 0x2d6   : > { %3027 = vmatpush1.msra.mxu1 %v349_v57 }
 0x2d7   : > { %4185 = vmatprep.mubr.f32.mxu0 %v1549_v32  ;;  %3028 = vmatprep.subr.mxu1 %v6650_v41 }
 0x2d8   : > { %3029 = vmatpush1.msra.mxu1 %v348_v54  ;;  %v365_v54 = vld [vmem:[#allocation5 + $0x5a0] sm:$0xff] }
 0x2d9   : > { %4186 = vmatmul.mubr.f32.gmra.mxu0 %v1550_v48  ;;  %3030 = vmatprep.subr.mxu1 %v6650_v41 }
 0x2da   : > { %2503 = vmatprep.mubr.f32.mxu0 %v6650_v41  ;;  %3031 = vmatpush1.msra.mxu1 %v347_v47 }
 0x2db   : > { %3032 = vmatprep.subr.mxu1 %v6650_v41 }
 0x2dc   : > { %3033 = vmatpush1.msra.mxu1 %v346_v24 }
 0x2dd   : > { %3034 = vmatprep.subr.mxu1 %v6650_v41 }
 0x2de   : > { %3035 = vmatpush1.msra.mxu1 %v345_v19 }
 0x2df   : > { %3036 = vmatprep.subr.mxu1 %v6650_v41 }
 0x2e0   : > { %3037 = vmatpush1.msra.mxu1 %v344_v23 }
 0x2e1   : > { %3038 = vmatprep.subr.mxu1 %v6650_v41 }
 0x2e2   : > { %3039 = vmatpush1.msra.mxu1 %v343_v26 }
 0x2e3   : > { %3040 = vmatprep.subr.mxu1 %v6650_v41 }
 0x2e4   : > { %3041 = vmatpush1.msra.mxu1 %v342_v21 }
 0x2e5   : > { %3042 = vmatprep.subr.mxu1 %v6650_v41 }
 0x2e6   : > { %3043 = vmatpush1.msra.mxu1 %v341_v52 }
 0x2e7   : > { %3044 = vmatprep.subr.mxu1 %v6650_v41 }
 0x2e8   : > { %3045 = vmatpush1.msra.mxu1 %v340_v18 }
 0x2e9   : > { %3046 = vmatprep.subr.mxu1 %v6650_v41 }
 0x2ea   : > { %3047 = vmatpush1.msra.mxu1 %v339_v46 }
 0x2eb   : > { %3048 = vmatprep.subr.mxu1 %v6650_v41 }
 0x2ec   : > { %3049 = vmatpush2.msra.mxu1 %v370_v7 }
 0x2ed   : > { %3050 = vmatprep.subr.mxu1 %v6650_v41 }
 0x35d   : > { %v4142_v36 = vpop.f32.mrf.mxu0 }
 0x35e   : > { %v1623_v25 = vadd.f32 %v4142_v36, %v5612_v34 }
 0x35f   : > { %v1617_v38 = vpop.f32.mrf.mxu0 }
 0x360   : > { %v1777_v30 = vmul.f32 0.5, %v1623_v25  ;;  %v1618_v39 = vadd.f32 %v1617_v38, %v5612_v34  ;;  %v369_v25 = vld [vmem:[#allocation5 + $0x5e0] sm:$0xff]  ;;  %v5642_v38 = vpop.f32.mrf.mxu1 }
 0x361   : > { %v4145_v40 = vpop.f32.mrf.mxu0  ;;  %3051 = vmatpush2.msra.mxu1 %v369_v25 }
 0x362   : > { %v1776_v28 = vmul.f32 0.5, %v1618_v39  ;;  %4476 = vtanh.f32 %v1777_v30  ;;  %v1633_v60 = vadd.f32 %v4145_v40, %v5612_v34  ;;  %3052 = vmatprep.subr.mxu1 %v6650_v41 }
 0x363   : > { %v1627_v37 = vpop.f32.mrf.mxu0 }
 0x364   : > { %v1628_v2 = vadd.f32 %v1627_v37, %v5612_v34  ;;  %4478 = vtanh.f32 %v1776_v28  ;;  %v1779_v3 = vmul.f32 0.5, %v1633_v60  ;;  %v368_v28 = vld [vmem:[#allocation5 + $0x5d0] sm:$0xff]  ;;  %v5648_v60 = vpop.f32.mrf.mxu1 }
 0x365   : > { %v4148_v55 = vpop.f32.mrf.mxu0  ;;  %3053 = vmatpush2.msra.mxu1 %v368_v28 }
 0x366   : > { %v1778_v8 = vmul.f32 0.5, %v1628_v2  ;;  %v1643_v12 = vadd.f32 %v4148_v55, %v5612_v34  ;;  %v367_v2 = vld [vmem:[#allocation5 + $0x5c0] sm:$0xff]  ;;  %3054 = vmatprep.subr.mxu1 %v6650_v41 }
 0x367   : > { %v1637_v63 = vpop.f32.mrf.mxu0  ;;  %3055 = vmatpush2.msra.mxu1 %v367_v2 }
 0x368   : > { %4480 = vtanh.f32 %v1778_v8  ;;  %v1638_v6 = vadd.f32 %v1637_v63, %v5612_v34  ;;  %v1781_v16 = vmul.f32 0.5, %v1643_v12  ;;  %3056 = vmatprep.subr.mxu1 %v6650_v41  ;;  %v5654_v12 = vpop.f32.mrf.mxu1 }
 0x369   : > { %v4151_v10 = vpop.f32.mrf.mxu0  ;;  %4482 = vtanh.f32 %v1779_v3  ;;  %v366_v3 = vld [vmem:[#allocation5 + $0x5b0] sm:$0xff] }
 0x36a   : > { %v1780_v13 = vmul.f32 0.5, %v1638_v6  ;;  %v1653_v32 = vadd.f32 %v4151_v10, %v5612_v34  ;;  %3057 = vmatpush2.msra.mxu1 %v366_v3 }
 0x36b   : > { %v1647_v14 = vpop.f32.mrf.mxu0  ;;  %3058 = vmatprep.subr.mxu1 %v6650_v41 }
 0x36c   : > { %4484 = vtanh.f32 %v1780_v13  ;;  %v1648_v35 = vadd.f32 %v1647_v14, %v5612_v34  ;;  %v1783_v58 = vmul.f32 0.5, %v1653_v32  ;;  %3059 = vmatpush2.msra.mxu1 %v365_v54 }
 0x36d   : > { %v4154_v17 = vpop.f32.mrf.mxu0  ;;  %4486 = vtanh.f32 %v1781_v16  ;;  %v364_v16 = vld [vmem:[#allocation5 + $0x590] sm:$0xff]  ;;  %3060 = vmatprep.subr.mxu1 %v6650_v41 }
 0x36e   : > { %v1782_v20 = vmul.f32 0.5, %v1648_v35  ;;  %v1663_v49 = vadd.f32 %v4154_v17, %v5612_v34  ;;  %v363_v17 = vld [vmem:[#allocation5 + $0x580] sm:$0xff]  ;;  %3061 = vmatpush2.msra.mxu1 %v364_v16 }
 0x36f   : > { %v4477_v15 = vpop.eup %4476  ;;  %v1657_v44 = vpop.f32.mrf.mxu0  ;;  %3062 = vmatprep.subr.mxu1 %v6650_v41 }
 0x370   : > { %v1841_v48 = vmul.f32 0.5, %v4477_v15  ;;  %4488 = vtanh.f32 %v1782_v20  ;;  %v1658_v59 = vadd.f32 %v1657_v44, %v5612_v34  ;;  %v1785_v5 = vmul.f32 0.5, %v1663_v49  ;;  %3063 = vmatpush2.msra.mxu1 %v363_v17 }
 0x371   : > { %v4479_v56 = vpop.eup %4478  ;;  %v4157_v22 = vpop.f32.mrf.mxu0  ;;  %4490 = vtanh.f32 %v1783_v58  ;;  %3064 = vmatprep.subr.mxu1 %v6650_v41 }
 0x372   : > { %v1840_v33 = vmul.f32 0.5, %v4479_v56  ;;  %v1873_v50 = vadd.f32 0.5, %v1841_v48  ;;  %v1784_v27 = vmul.f32 0.5, %v1658_v59  ;;  %v1673_v0 = vadd.f32 %v4157_v22, %v5612_v34 }
 0x373   : > { %v1667_v61 = vpop.f32.mrf.mxu0 }
 0x374   : > { %v1872_v43 = vadd.f32 0.5, %v1840_v33  ;;  %4492 = vtanh.f32 %v1784_v27  ;;  %v1668_v51 = vadd.f32 %v1667_v61, %v5612_v34  ;;  %v1787_v55 = vmul.f32 0.5, %v1673_v0  ;;  %v5660_v33 = vpop.f32.mrf.mxu1 }
 0x375   : > { %v4481_v62 = vpop.eup %4480  ;;  %v4160_v36 = vpop.f32.mrf.mxu0  ;;  %4494 = vtanh.f32 %v1785_v5 }
 0x376   : > { %2504 = vmatmul.mubr.f32.vlgmr.msra.gmra.mxu0 %v1872_v43  ;;  %v1842_v9 = vmul.f32 0.5, %v4481_v62  ;;  %v4483_v1 = vpop.eup %4482  ;;  %v1786_v40 = vmul.f32 0.5, %v1668_v51  ;;  %v1683_v13 = vadd.f32 %v4160_v36, %v5612_v34  ;;  %v362_v43 = vld [vmem:[#allocation5 + $0x570] sm:$0xff]  ;;  %v5666_v62 = vpop.f32.mrf.mxu1 }
 0x377   : > { %2509 = vmatprep.mubr.f32.mxu0 %v6650_v41  ;;  %v1843_v31 = vmul.f32 0.5, %v4483_v1  ;;  %v1677_v42 = vpop.f32.mrf.mxu0  ;;  %3065 = vmatpush2.msra.mxu1 %v362_v43 }
 0x378   : > { %v1874_v11 = vadd.f32 0.5, %v1842_v9  ;;  %4496 = vtanh.f32 %v1786_v40  ;;  %v1678_v57 = vadd.f32 %v1677_v42, %v5612_v34  ;;  %v1789_v24 = vmul.f32 0.5, %v1683_v13  ;;  %3066 = vmatprep.subr.mxu1 %v6650_v41  ;;  %v5671_v21 = vpop.f32.mrf.mxu1 }
 0x379   : > { %v4485_v4 = vpop.eup %4484  ;;  %v1875_v53 = vadd.f32 0.5, %v1843_v31  ;;  %v4163_v10 = vpop.f32.mrf.mxu0  ;;  %4498 = vtanh.f32 %v1787_v55 }
 0x37a   : > { %2510 = vmatmul.mubr.f32.gmra.mxu0 %v1873_v50  ;;  %v1844_v29 = vmul.f32 0.5, %v4485_v4  ;;  %v4487_v45 = vpop.eup %4486  ;;  %v1788_v15 = vmul.f32 0.5, %v1678_v57  ;;  %v1693_v44 = vadd.f32 %v4163_v10, %v5612_v34  ;;  %v5675_v27 = vpop.f32.mrf.mxu1 }
 0x37b   : > { %2515 = vmatprep.mubr.f32.mxu0 %v6650_v41  ;;  %v1845_v30 = vmul.f32 0.5, %v4487_v45  ;;  %v1687_v56 = vpop.f32.mrf.mxu0 }
 0x37c   : > { %v1876_v39 = vadd.f32 0.5, %v1844_v29  ;;  %4500 = vtanh.f32 %v1788_v15  ;;  %v1688_v48 = vadd.f32 %v1687_v56, %v5612_v34  ;;  %v1791_v1 = vmul.f32 0.5, %v1693_v44  ;;  %v5679_v29 = vpop.f32.mrf.mxu1 }
 0x37d   : > { %v4489_v37 = vpop.eup %4488  ;;  %v1877_v8 = vadd.f32 0.5, %v1845_v30  ;;  %v4166_v23 = vpop.f32.mrf.mxu0  ;;  %4502 = vtanh.f32 %v1789_v24 }
 0x37e   : > { %2516 = vmatmul.mubr.f32.gmra.mxu0 %v1874_v11  ;;  %v1846_v63 = vmul.f32 0.5, %v4489_v37  ;;  %v4491_v6 = vpop.eup %4490  ;;  %v1790_v50 = vmul.f32 0.5, %v1688_v48  ;;  %v1703_v18 = vadd.f32 %v4166_v23, %v5612_v34  ;;  %v5683_v30 = vpop.f32.mrf.mxu1 }
 0x37f   : > { %2521 = vmatprep.mubr.f32.mxu0 %v6650_v41  ;;  %v1847_v14 = vmul.f32 0.5, %v4491_v6  ;;  %v1697_v59 = vpop.f32.mrf.mxu0 }
 0x380   : > { %v1878_v47 = vadd.f32 0.5, %v1846_v63  ;;  %4504 = vtanh.f32 %v1790_v50  ;;  %v1698_v49 = vadd.f32 %v1697_v59, %v5612_v34  ;;  %v1793_v51 = vmul.f32 0.5, %v1703_v18  ;;  %v5687_v55 = vpop.f32.mrf.mxu1 }
 0x381   : > { %v4493_v35 = vpop.eup %4492  ;;  %v1879_v19 = vadd.f32 0.5, %v1847_v14  ;;  %v4169_v11 = vpop.f32.mrf.mxu0  ;;  %4506 = vtanh.f32 %v1791_v1 }
 0x382   : > { %2522 = vmatmul.mubr.f32.gmra.mxu0 %v1875_v53  ;;  %v1848_v32 = vmul.f32 0.5, %v4493_v35  ;;  %v4495_v20 = vpop.eup %4494  ;;  %v1792_v46 = vmul.f32 0.5, %v1698_v49  ;;  %v5691_v54 = vpop.f32.mrf.mxu1 }
 0x383   : > { %2527 = vmatprep.mubr.f32.mxu0 %v6650_v41  ;;  %v1849_v26 = vmul.f32 0.5, %v4495_v20  ;;  %v1707_v53 = vpop.f32.mrf.mxu0 }
 0x384   : > { %v1880_v58 = vadd.f32 0.5, %v1848_v32  ;;  %4508 = vtanh.f32 %v1792_v46  ;;  %v1708_v36 = vadd.f32 %v1707_v53, %v5612_v34  ;;  %v5695_v56 = vpop.f32.mrf.mxu1 }
 0x385   : > { %v4497_v9 = vpop.eup %4496  ;;  %v1881_v22 = vadd.f32 0.5, %v1849_v26  ;;  %v4172_v0 = vpop.f32.mrf.mxu0  ;;  %4510 = vtanh.f32 %v1793_v51 }
 0x386   : > { %2528 = vmatmul.mubr.f32.gmra.mxu0 %v1876_v39  ;;  %v1850_v52 = vmul.f32 0.5, %v4497_v9  ;;  %v4499_v31 = vpop.eup %4498  ;;  %v1713_v39 = vadd.f32 %v4169_v11, %v5612_v34  ;;  %v1794_v37 = vmul.f32 0.5, %v1708_v36  ;;  %v1723_v13 = vadd.f32 %v4172_v0, %v5612_v34  ;;  %v5699_v20 = vpop.f32.mrf.mxu1 }
 0x387   : > { %2533 = vmatprep.mubr.f32.mxu0 %v6650_v41  ;;  %v1851_v4 = vmul.f32 0.5, %v4499_v31  ;;  %v1717_v2 = vpop.f32.mrf.mxu0 }
 0x388   : > { %v1882_v61 = vadd.f32 0.5, %v1850_v52  ;;  %4512 = vtanh.f32 %v1794_v37  ;;  %v1718_v3 = vadd.f32 %v1717_v2, %v5612_v34  ;;  %v1797_v17 = vmul.f32 0.5, %v1723_v13  ;;  %v5703_v59 = vpop.f32.mrf.mxu1 }
 0x389   : > { %v4501_v5 = vpop.eup %4500  ;;  %v1883_v7 = vadd.f32 0.5, %v1851_v4  ;;  %v4175_v10 = vpop.f32.mrf.mxu0 }
 0x38a   : > { %2534 = vmatmul.mubr.f32.gmra.mxu0 %v1877_v8  ;;  %v1852_v45 = vmul.f32 0.5, %v4501_v5  ;;  %v4503_v25 = vpop.eup %4502  ;;  %v1795_v8 = vmul.f32 0.5, %v1713_v39  ;;  %v1796_v15 = vmul.f32 0.5, %v1718_v3  ;;  %v1733_v23 = vadd.f32 %v4175_v10, %v5612_v34  ;;  %v5707_v18 = vpop.f32.mrf.mxu1 }
 0x38b   : > { %2539 = vmatprep.mubr.f32.mxu0 %v6650_v41  ;;  %v1853_v40 = vmul.f32 0.5, %v4503_v25  ;;  %v1727_v35 = vpop.f32.mrf.mxu0 }
 0x38c   : > { %v1884_v28 = vadd.f32 0.5, %v1852_v45  ;;  %4514 = vtanh.f32 %v1795_v8  ;;  %v1728_v32 = vadd.f32 %v1727_v35, %v5612_v34  ;;  %v1799_v1 = vmul.f32 0.5, %v1733_v23 }
 0x38d   : > { %v4505_v42 = vpop.eup %4504  ;;  %v1885_v63 = vadd.f32 0.5, %v1853_v40  ;;  %4516 = vtanh.f32 %v1796_v15  ;;  %v4178_v43 = vpop.f32.mrf.mxu0 }
 0x38e   : > { %2540 = vmatmul.mubr.f32.gmra.mxu0 %v1878_v47  ;;  %v1854_v57 = vmul.f32 0.5, %v4505_v42  ;;  %v4507_v6 = vpop.eup %4506  ;;  %4518 = vtanh.f32 %v1797_v17  ;;  %v1743_v4 = vadd.f32 %v4178_v43, %v5612_v34 }
 0x38f   : > { %2545 = vmatprep.mubr.f32.mxu0 %v6650_v41  ;;  %v1855_v14 = vmul.f32 0.5, %v4507_v6  ;;  %v1737_v9 = vpop.f32.mrf.mxu0  ;;  %v360_v6 = vld [vmem:[#allocation5 + $0x550] sm:$0xff] }
 0x390   : > { %v1886_v47 = vadd.f32 0.5, %v1854_v57  ;;  %v1738_v49 = vadd.f32 %v1737_v9, %v5612_v34  ;;  %v1801_v45 = vmul.f32 0.5, %v1743_v4 }
 0x391   : > { %v4509_v16 = vpop.eup %4508  ;;  %v1887_v24 = vadd.f32 0.5, %v1855_v14  ;;  %v4181_v11 = vpop.f32.mrf.mxu0 }
 0x392   : > { %2546 = vmatmul.mubr.f32.gmra.mxu0 %v1879_v19  ;;  %v1856_v19 = vmul.f32 0.5, %v4509_v16  ;;  %v4511_v48 = vpop.eup %4510  ;;  %v1800_v5 = vmul.f32 0.5, %v1738_v49  ;;  %v1753_v37 = vadd.f32 %v4181_v11, %v5612_v34  ;;  %v359_v16 = vld [vmem:[#allocation5 + $0x540] sm:$0xff] }
 0x393   : > { %2551 = vmatprep.mubr.f32.mxu0 %v6650_v41  ;;  %v1857_v44 = vmul.f32 0.5, %v4511_v48  ;;  %v1747_v51 = vpop.f32.mrf.mxu0  ;;  %v355_v11 = vld [vmem:[#allocation5 + $0x500] sm:$0xff] }
 0x394   : > { %v1888_v26 = vadd.f32 0.5, %v1856_v19  ;;  %v1748_v0 = vadd.f32 %v1747_v51, %v5612_v34  ;;  %v1803_v13 = vmul.f32 0.5, %v1753_v37 }
 0x395   : > { %v4513_v50 = vpop.eup %4512  ;;  %v4184_v40 = vpop.f32.mrf.mxu0 }
 0x396   : > { %2552 = vmatmul.mubr.f32.gmra.mxu0 %v1880_v58  ;;  %v1798_v58 = vmul.f32 0.5, %v1728_v32  ;;  %v1858_v52 = vmul.f32 0.5, %v4513_v50  ;;  %v1802_v8 = vmul.f32 0.5, %v1748_v0  ;;  %v1763_v32 = vadd.f32 %v4184_v40, %v5612_v34 }
 0x397   : > { %2557 = vmatprep.mubr.f32.mxu0 %v6650_v41  ;;  %v1757_v3 = vpop.f32.mrf.mxu0 }
 0x398   : > { %4520 = vtanh.f32 %v1798_v58  ;;  %v1890_v46 = vadd.f32 0.5, %v1858_v52  ;;  %v1758_v15 = vadd.f32 %v1757_v3, %v5612_v34  ;;  %v1805_v9 = vmul.f32 0.5, %v1763_v32 }
 0x399   : > { %v4515_v31 = vpop.eup %4514  ;;  %4522 = vtanh.f32 %v1799_v1  ;;  %v4187_v17 = vpop.f32.mrf.mxu0  ;;  %v356_v1 = vld [vmem:[#allocation5 + $0x510] sm:$0xff] }
 0x39a   : > { %2558 = vmatmul.mubr.f32.gmra.mxu0 %v1881_v22  ;;  %v1889_v22 = vadd.f32 0.5, %v1857_v44  ;;  %v4517_v53 = vpop.eup %4516  ;;  %4524 = vtanh.f32 %v1800_v5  ;;  %v1804_v23 = vmul.f32 0.5, %v1758_v15  ;;  %v357_v44 = vld [vmem:[#allocation5 + $0x520] sm:$0xff]  ;;  %v1773_v5 = vadd.f32 %v4187_v17, %v5612_v34 }
 0x39b   : > { %2563 = vmatprep.mubr.f32.mxu0 %v6650_v41  ;;  %v1860_v25 = vmul.f32 0.5, %v4517_v53  ;;  %v4519_v39 = vpop.eup %4518  ;;  %4526 = vtanh.f32 %v1801_v45  ;;  %v1767_v58 = vpop.f32.mrf.mxu0 }
 0x39c   : > { %v1861_v42 = vmul.f32 0.5, %v4519_v39  ;;  %4528 = vtanh.f32 %v1802_v8  ;;  %v1768_v49 = vadd.f32 %v1767_v58, %v5612_v34  ;;  %v1807_v0 = vmul.f32 0.5, %v1773_v5 }
 0x39d   : > { %v1892_v2 = vadd.f32 0.5, %v1860_v25  ;;  %4530 = vtanh.f32 %v1803_v13 }
 0x39e   : > { %2564 = vmatmul.mubr.f32.gmra.mxu0 %v1882_v61  ;;  %v1859_v61 = vmul.f32 0.5, %v4515_v31  ;;  %v1893_v14 = vadd.f32 0.5, %v1861_v42  ;;  %4532 = vtanh.f32 %v1804_v23  ;;  %v1806_v53 = vmul.f32 0.5, %v1768_v49 }
 0x39f   : > { %2569 = vmatprep.mubr.f32.mxu0 %v6650_v41  ;;  %4534 = vtanh.f32 %v1805_v9  ;;  %v1905_v23 = vlaneseq }
 0x3a0   : > { %v1891_v36 = vadd.f32 0.5, %v1859_v61  ;;  %4536 = vtanh.f32 %v1806_v53 }
 0x3a1   : > { %4538 = vtanh.f32 %v1807_v0 }
 0x3a2   : > { %2570 = vmatmul.mubr.f32.gmra.mxu0 %v1883_v7  ;;  %v5711_v7 = vpop.f32.mrf.mxu1 }
 0x3a3   : > { %2575 = vmatprep.mubr.f32.mxu0 %v6650_v41 }
 0x3a5   : > { %v4521_v57 = vpop.eup %4520 }
 0x3a6   : > { %2576 = vmatmul.mubr.f32.gmra.mxu0 %v1884_v28  ;;  %v5715_v28 = vpop.f32.mrf.mxu1  ;;  %v4523_v35 = vpop.eup %4522 }
 0x3a7   : > { %2581 = vmatprep.mubr.f32.mxu0 %v6650_v41  ;;  %v1863_v48 = vmul.f32 0.5, %v4523_v35 }
 0x3a8   : > { %v5720_v10 = vpop.f32.mrf.mxu1 }
 0x3aa   : > { %2582 = vmatmul.mubr.f32.gmra.mxu0 %v1885_v63  ;;  %v361_v63 = vld [vmem:[#allocation5 + $0x560] sm:$0xff]  ;;  %v5726_v19 = vpop.f32.mrf.mxu1 }
 0x3ab   : > { %2587 = vmatprep.mubr.f32.mxu0 %v6650_v41  ;;  %3067 = vmatpush2.msra.mxu1 %v361_v63 }
 0x3ac   : > { %3068 = vmatprep.subr.mxu1 %v6650_v41  ;;  %v5732_v50 = vpop.f32.mrf.mxu1 }
 0x3ad   : > { %3069 = vmatpush2.msra.mxu1 %v360_v6 }
 0x3ae   : > { %2588 = vmatmul.mubr.f32.gmra.mxu0 %v1886_v47  ;;  %v1862_v47 = vmul.f32 0.5, %v4521_v57  ;;  %3070 = vmatprep.subr.mxu1 %v6650_v41  ;;  %v5737_v4 = vpop.f32.mrf.mxu1 }
 0x3af   : > { %2593 = vmatprep.mubr.f32.mxu0 %v6650_v41  ;;  %3071 = vmatpush2.msra.mxu1 %v359_v16 }
 0x3b0   : > { %3072 = vmatprep.subr.mxu1 %v6650_v41  ;;  %v1894_v43 = vadd.f32 0.5, %v1862_v47  ;;  %v5741_v45 = vpop.f32.mrf.mxu1 }
 0x3b2   : > { %2594 = vmatmul.mubr.f32.gmra.mxu0 %v1887_v24  ;;  %v358_v24 = vld [vmem:[#allocation5 + $0x530] sm:$0xff]  ;;  %v5744_v40 = vpop.f32.mrf.mxu1 }
 0x3b3   : > { %2599 = vmatprep.mubr.f32.mxu0 %v6650_v41  ;;  %3073 = vmatpush2.msra.mxu1 %v358_v24 }
 0x3b4   : > { %3074 = vmatprep.subr.mxu1 %v6650_v41 }
 0x3b5   : > { %3075 = vmatpush2.msra.mxu1 %v357_v44 }
 0x3b6   : > { %2600 = vmatmul.mubr.f32.gmra.mxu0 %v1888_v26  ;;  %v4525_v26 = vpop.eup %4524  ;;  %3076 = vmatprep.subr.mxu1 %v6650_v41 }
 0x3b7   : > { %2605 = vmatprep.mubr.f32.mxu0 %v6650_v41  ;;  %v1864_v52 = vmul.f32 0.5, %v4525_v26  ;;  %3077 = vmatpush2.msra.mxu1 %v356_v1  ;;  %v4527_v31 = vpop.eup %4526  ;;  %v5764_v26 = vshrl.u32 %v1905_v23, 7  ;;  %v392_v1 = vld [vmem:[#allocation5 + $0x604] ss:$8 sm:$0x3] }
 0x3b8   : > { %3078 = vmatprep.subr.mxu1 %v6650_v41  ;;  %v1865_v61 = vmul.f32 0.5, %v4527_v31  ;;  %v4529_v51 = vpop.eup %4528 }
 0x3b9   : > { %3079 = vmatpush2.msra.mxu1 %v355_v11  ;;  %v1866_v25 = vmul.f32 0.5, %v4529_v51  ;;  %v4531_v39 = vpop.eup %4530  ;;  %v1907_v9 = vsub.s32 0, %v5764_v26 }
 0x3ba   : > { %2606 = vmatmul.mubr.f32.gmra.mxu0 %v1889_v22  ;;  %v1895_v22 = vadd.f32 0.5, %v1863_v48  ;;  %v1867_v37 = vmul.f32 0.5, %v4531_v39  ;;  %v4533_v34 = vpop.eup %4532 }
 0x3bb   : > { %2611 = vmatprep.mubr.f32.mxu0 %v6650_v41  ;;  %v1898_v42 = vadd.f32 0.5, %v1866_v25  ;;  %v4535_v8 = vpop.eup %4534  ;;  %v1868_v57 = vmul.f32 0.5, %v4533_v34  ;;  %v5774_v49 = vrot.slane %v392_v1, %v1907_v9 }
 0x3bc   : > { %v1899_v63 = vadd.f32 0.5, %v1867_v37  ;;  %v1869_v6 = vmul.f32 0.5, %v4535_v8 }
 0x3bd   : > { %v1900_v13 = vadd.f32 0.5, %v1868_v57  ;;  %v1982_v11 = vadd.f32 %v5642_v38, %v5774_v49  ;;  %v1988_v5 = vadd.f32 %v5654_v12, %v5774_v49 }
 0x3be   : > { %2612 = vmatmul.mubr.f32.gmra.mxu0 %v1890_v46  ;;  %v1896_v46 = vadd.f32 0.5, %v1864_v52  ;;  %v1901_v15 = vadd.f32 0.5, %v1869_v6 }
 0x3bf   : > { %2617 = vmatprep.mubr.f32.mxu0 %v6650_v41  ;;  %v2172_v51 = vmul.f32 0.5, %v1982_v11  ;;  %v2174_v39 = vmul.f32 0.5, %v1988_v5 }
 0x3c1   : > { %4540 = vtanh.f32 %v2172_v51 }
 0x3c2   : > { %2618 = vmatmul.mubr.f32.gmra.mxu0 %v1891_v36  ;;  %v1897_v36 = vadd.f32 0.5, %v1865_v61 }
 0x3c3   : > { %2623 = vmatprep.mubr.f32.mxu0 %v6650_v41 }
 0x3c6   : > { %2624 = vmatmul.mubr.f32.gmra.mxu0 %v1892_v2  ;;  %v5747_v2 = vpop.f32.mrf.mxu1 }
 0x3c7   : > { %2629 = vmatprep.mubr.f32.mxu0 %v6650_v41 }
 0x3c8   : > { %v5750_v3 = vpop.f32.mrf.mxu1 }
 0x3ca   : > { %2630 = vmatmul.mubr.f32.gmra.mxu0 %v1893_v14  ;;  %v4537_v14 = vpop.eup %4536  ;;  %v5753_v47 = vpop.f32.mrf.mxu1 }
 0x3cb   : > { %2635 = vmatprep.mubr.f32.mxu0 %v6650_v41  ;;  %v1870_v16 = vmul.f32 0.5, %v4537_v14  ;;  %v4539_v35 = vpop.eup %4538 }
 0x3cc   : > { %v5756_v17 = vpop.f32.mrf.mxu1  ;;  %v1871_v24 = vmul.f32 0.5, %v4539_v35 }
 0x3cd   : > { %v1902_v32 = vadd.f32 0.5, %v1870_v16 }
 0x3ce   : > { %2636 = vmatmul.mubr.f32.gmra.mxu0 %v1894_v43  ;;  %v5759_v48 = vpop.f32.mrf.mxu1  ;;  %v1903_v43 = vadd.f32 0.5, %v1871_v24 }
 0x3cf   : > { %2641 = vmatprep.mubr.f32.mxu0 %v6650_v41 }
 0x3d0   : > { %v5762_v44 = vpop.f32.mrf.mxu1 }
 0x3d2   : > { %2642 = vmatmul.mubr.f32.gmra.mxu0 %v1895_v22  ;;  %v5766_v58 = vpop.f32.mrf.mxu1  ;;  %v1911_v22 = vsub.s32 1, %v5764_v26 }
 0x3d3   : > { %2647 = vmatprep.mubr.f32.mxu0 %v6650_v41 }
 0x3d4   : > { %v5770_v52 = vpop.f32.mrf.mxu1 }
 0x3d6   : > { %2648 = vmatmul.mubr.f32.gmra.mxu0 %v1896_v46  ;;  %v5780_v31 = vpop.f32.mrf.mxu1 }
 0x3d7   : > { %2653 = vmatprep.mubr.f32.mxu0 %v6650_v41 }
 0x3d8   : > { %v5786_v46 = vpop.f32.mrf.mxu1 }
 0x3da   : > { %2654 = vmatmul.mubr.f32.gmra.mxu0 %v1897_v36  ;;  %v1994_v36 = vadd.f32 %v5666_v62, %v5774_v49  ;;  %v5796_v38 = vpop.f32.mrf.mxu1 }
 0x3db   : > { %2659 = vmatprep.mubr.f32.mxu0 %v6650_v41 }
 0x3dc   : > { %v5806_v34 = vpop.f32.mrf.mxu1 }
 0x3de   : > { %2660 = vmatmul.mubr.f32.gmra.mxu0 %v1898_v42  ;;  %v2006_v42 = vadd.f32 %v5683_v30, %v5774_v49  ;;  %v2018_v30 = vadd.f32 %v5699_v20, %v5774_v49  ;;  %v2030_v20 = vadd.f32 %v5715_v28, %v5774_v49  ;;  %v2042_v28 = vadd.f32 %v5737_v4, %v5774_v49 }
 0x3df   : > { %2665 = vmatprep.mubr.f32.mxu0 %v6650_v41 }
 0x3e0   : > { %v2180_v57 = vmul.f32 0.5, %v2006_v42  ;;  %v2184_v16 = vmul.f32 0.5, %v2018_v30  ;;  %v2188_v23 = vmul.f32 0.5, %v2030_v20 }
 0x3e2   : > { %2666 = vmatmul.mubr.f32.gmra.mxu0 %v1899_v63 }
 0x3e3   : > { %2671 = vmatprep.mubr.f32.mxu0 %v6650_v41 }
 0x3e6   : > { %2672 = vmatmul.mubr.f32.gmra.mxu0 %v1900_v13  ;;  %v5816_v13 = vpop.f32.mrf.mxu1 }
 0x3e7   : > { %2677 = vmatprep.mubr.f32.mxu0 %v6650_v41 }
 0x3e8   : > { %v5826_v24 = vpop.f32.mrf.mxu1 }
 0x3ea   : > { %2678 = vmatmul.mubr.f32.gmra.mxu0 %v1901_v15 }
 0x3eb   : > { %2683 = vmatprep.mubr.f32.mxu0 %v6650_v41 }
 0x3ee   : > { %2684 = vmatmul.mubr.f32.gmra.mxu0 %v1902_v32 }
 0x3ef   : > { %2689 = vmatprep.mubr.f32.mxu0 %v6650_v41  ;;  %v5778_v41 = vrot.slane %v392_v1, %v1911_v22  ;;  %v4541_v1 = vpop.eup %4540 }
 0x3f1   : > { %v1984_v61 = vadd.f32 %v5648_v60, %v5778_v41  ;;  %v1990_v53 = vadd.f32 %v5660_v33, %v5778_v41  ;;  %v1996_v0 = vadd.f32 %v5671_v21, %v5778_v41  ;;  %v2000_v60 = vadd.f32 %v5675_v27, %v5774_v49 }
 0x3f2   : > { %2690 = vmatmul.mubr.f32.gmra.mxu0 %v1903_v43  ;;  %v2002_v12 = vadd.f32 %v5679_v29, %v5778_v41  ;;  %v2176_v33 = vmul.f32 0.5, %v1994_v36  ;;  %v2008_v21 = vadd.f32 %v5687_v55, %v5778_v41  ;;  %v2012_v27 = vadd.f32 %v5691_v54, %v5774_v49 }
 0x3f3   : > { %v2173_v25 = vmul.f32 0.5, %v1984_v61  ;;  %v2175_v37 = vmul.f32 0.5, %v1990_v53  ;;  %v2177_v62 = vmul.f32 0.5, %v1996_v0  ;;  %v2178_v8 = vmul.f32 0.5, %v2000_v60  ;;  %v5836_v61 = vpop.f32.mrf.mxu1 }
 0x3f4   : > { %v2179_v63 = vmul.f32 0.5, %v2002_v12  ;;  %v2014_v29 = vadd.f32 %v5695_v56, %v5778_v41  ;;  %v2181_v6 = vmul.f32 0.5, %v2008_v21  ;;  %v2020_v55 = vadd.f32 %v5703_v59, %v5778_v41 }
 0x3f5   : > { %4542 = vtanh.f32 %v2173_v25  ;;  %v2182_v14 = vmul.f32 0.5, %v2012_v27  ;;  %v2024_v54 = vadd.f32 %v5707_v18, %v5774_v49  ;;  %v2026_v56 = vadd.f32 %v5711_v7, %v5778_v41  ;;  %v5846_v12 = vpop.f32.mrf.mxu1 }
 0x3f6   : > { %4544 = vtanh.f32 %v2174_v39  ;;  %v2183_v15 = vmul.f32 0.5, %v2014_v29  ;;  %v2185_v35 = vmul.f32 0.5, %v2020_v55  ;;  %v2032_v59 = vadd.f32 %v5720_v10, %v5778_v41 }
 0x3f7   : > { %4546 = vtanh.f32 %v2175_v37  ;;  %v2186_v32 = vmul.f32 0.5, %v2024_v54  ;;  %v2036_v18 = vadd.f32 %v5726_v19, %v5774_v49  ;;  %v2187_v43 = vmul.f32 0.5, %v2026_v56 }
 0x3f8   : > { %4548 = vtanh.f32 %v2176_v33  ;;  %v2038_v7 = vadd.f32 %v5732_v50, %v5778_v41  ;;  %v2189_v10 = vmul.f32 0.5, %v2032_v59  ;;  %v2044_v11 = vadd.f32 %v5741_v45, %v5778_v41 }
 0x3f9   : > { %4550 = vtanh.f32 %v2177_v62  ;;  %v2190_v19 = vmul.f32 0.5, %v2036_v18  ;;  %v2048_v53 = vadd.f32 %v5744_v40, %v5774_v49  ;;  %v2050_v4 = vadd.f32 %v5747_v2, %v5778_v41 }
 0x3fa   : > { %4552 = vtanh.f32 %v2178_v8  ;;  %v2191_v51 = vmul.f32 0.5, %v2038_v7  ;;  %v2300_v25 = vmul.f32 0.5, %v4541_v1  ;;  %v2192_v0 = vmul.f32 0.5, %v2042_v28 }
 0x3fb   : > { %4554 = vtanh.f32 %v2179_v63  ;;  %v2054_v45 = vadd.f32 %v5750_v3, %v5774_v49  ;;  %v2193_v37 = vmul.f32 0.5, %v2044_v11  ;;  %v2056_v40 = vadd.f32 %v5753_v47, %v5778_v41 }
 0x3fc   : > { %4556 = vtanh.f32 %v2180_v57  ;;  %v2194_v42 = vmul.f32 0.5, %v2048_v53  ;;  %v2060_v2 = vadd.f32 %v5756_v17, %v5774_v49  ;;  %v2195_v21 = vmul.f32 0.5, %v2050_v4 }
 0x3fd   : > { %4558 = vtanh.f32 %v2181_v6  ;;  %v2062_v3 = vadd.f32 %v5759_v48, %v5778_v41  ;;  %v2196_v63 = vmul.f32 0.5, %v2054_v45  ;;  %v2066_v47 = vadd.f32 %v5762_v44, %v5774_v49  ;;  %v5856_v6 = vpop.f32.mrf.mxu1 }
 0x3fe   : > { %4560 = vtanh.f32 %v2182_v14  ;;  %v5854_v57 = vadd.f32 0.5, %v2300_v25  ;;  %v2197_v30 = vmul.f32 0.5, %v2056_v40  ;;  %v2198_v48 = vmul.f32 0.5, %v2060_v2 }
 0x3ff   : > { %4562 = vtanh.f32 %v2183_v15  ;;  %v2068_v54 = vadd.f32 %v5766_v58, %v5778_v41  ;;  %v2199_v44 = vmul.f32 0.5, %v2062_v3  ;;  %v2074_v58 = vadd.f32 %v5780_v31, %v5778_v41 }
 0x400   : > { %4564 = vtanh.f32 %v2184_v16  ;;  %v2072_v16 = vadd.f32 %v5770_v52, %v5774_v49  ;;  %v2078_v52 = vadd.f32 %v5786_v46, %v5774_v49  ;;  %v2080_v31 = vadd.f32 %v5796_v38, %v5778_v41 }
 0x401   : > { %4566 = vtanh.f32 %v2185_v35  ;;  %v2201_v1 = vmul.f32 0.5, %v2068_v54 }
 0x402   : > { %v4543_v5 = vpop.eup %4542  ;;  %4568 = vtanh.f32 %v2186_v32  ;;  %v2200_v32 = vmul.f32 0.5, %v2066_v47  ;;  %v2202_v53 = vmul.f32 0.5, %v2072_v16  ;;  %v2204_v40 = vmul.f32 0.5, %v2078_v52 }
 0x403   : > { %v4545_v50 = vpop.eup %4544  ;;  %4570 = vtanh.f32 %v2187_v43  ;;  %v2301_v60 = vmul.f32 0.5, %v4543_v5 }
 0x404   : > { %v4547_v36 = vpop.eup %4546  ;;  %4572 = vtanh.f32 %v2188_v23  ;;  %v2302_v27 = vmul.f32 0.5, %v4545_v50  ;;  %v5868_v23 = vpop.f32.mrf.mxu1 }
 0x405   : > { %v4549_v39 = vpop.eup %4548  ;;  %4574 = vtanh.f32 %v2189_v10  ;;  %v5858_v17 = vadd.f32 0.5, %v2301_v60  ;;  %v2303_v14 = vmul.f32 0.5, %v4547_v36 }
 0x406   : > { %v4551_v33 = vpop.eup %4550  ;;  %4576 = vtanh.f32 %v2190_v19  ;;  %v2304_v56 = vmul.f32 0.5, %v4549_v39  ;;  %v5864_v35 = vadd.f32 0.5, %v2302_v27  ;;  %v5880_v46 = vpop.f32.mrf.mxu1  ;;  %v2205_v27 = vmul.f32 0.5, %v2080_v31 }
 0x407   : > { %v4553_v62 = vpop.eup %4552  ;;  %4578 = vtanh.f32 %v2191_v51  ;;  %v2305_v59 = vmul.f32 0.5, %v4551_v33  ;;  %v5872_v10 = vadd.f32 0.5, %v2303_v14  ;;  %v2084_v33 = vadd.f32 %v5806_v34, %v5774_v49 }
 0x408   : > { %v4555_v8 = vpop.eup %4554  ;;  %4580 = vtanh.f32 %v2192_v0  ;;  %v2306_v43 = vmul.f32 0.5, %v4553_v62  ;;  %v5874_v5 = vadd.f32 0.5, %v2304_v56  ;;  %v2203_v0 = vmul.f32 0.5, %v2074_v58 }
 0x409   : > { %v4557_v29 = vpop.eup %4556  ;;  %4582 = vtanh.f32 %v2193_v37  ;;  %v2307_v7 = vmul.f32 0.5, %v4555_v8  ;;  %v5882_v45 = vadd.f32 0.5, %v2305_v59  ;;  %v2086_v62 = vadd.f32 %v5816_v13, %v5778_v41 }
 0x40a   : > { %v4559_v55 = vpop.eup %4558  ;;  %4584 = vtanh.f32 %v2194_v42  ;;  %v2308_v19 = vmul.f32 0.5, %v4557_v29  ;;  %v5878_v25 = vadd.f32 0.5, %v2306_v43  ;;  %v2090_v34 = vadd.f32 %v5826_v24, %v5774_v49 }
 0x40b   : > { %v4561_v15 = vpop.eup %4560  ;;  %4586 = vtanh.f32 %v2195_v21  ;;  %v2309_v51 = vmul.f32 0.5, %v4559_v55  ;;  %v5884_v39 = vadd.f32 0.5, %v2307_v7  ;;  %v5898_v55 = vpop.f32.mrf.mxu1  ;;  %v2206_v13 = vmul.f32 0.5, %v2084_v33 }
 0x40c   : > { %v4563_v20 = vpop.eup %4562  ;;  %4588 = vtanh.f32 %v2196_v63  ;;  %v2310_v4 = vmul.f32 0.5, %v4561_v15  ;;  %v5888_v2 = vadd.f32 0.5, %v2308_v19  ;;  %v2207_v16 = vmul.f32 0.5, %v2086_v62 }
 0x40d   : > { %v4565_v18 = vpop.eup %4564  ;;  %4590 = vtanh.f32 %v2197_v30  ;;  %v2311_v37 = vmul.f32 0.5, %v4563_v20  ;;  %v5894_v63 = vadd.f32 0.5, %v2309_v51  ;;  %v2092_v20 = vadd.f32 %v5836_v61, %v5778_v41 }
 0x40e   : > { %v4567_v28 = vpop.eup %4566  ;;  %4592 = vtanh.f32 %v2198_v48  ;;  %v2312_v38 = vmul.f32 0.5, %v4565_v18  ;;  %v5892_v3 = vadd.f32 0.5, %v2310_v4  ;;  %v2096_v24 = vadd.f32 %v5846_v12, %v5774_v49 }
 0x40f   : > { %v4569_v11 = vpop.eup %4568  ;;  %4594 = vtanh.f32 %v2199_v44  ;;  %v2313_v8 = vmul.f32 0.5, %v4567_v28  ;;  %v5900_v54 = vadd.f32 0.5, %v2311_v37  ;;  %v2208_v58 = vmul.f32 0.5, %v2090_v34  ;;  %v5910_v28 = vpop.f32.mrf.mxu1 }
 0x410   : > { %v4571_v50 = vpop.eup %4570  ;;  %4596 = vtanh.f32 %v2200_v32  ;;  %v2314_v29 = vmul.f32 0.5, %v4569_v11  ;;  %v5902_v56 = vadd.f32 0.5, %v2312_v38  ;;  %v2209_v31 = vmul.f32 0.5, %v2092_v20 }
 0x411   : > { %v4573_v36 = vpop.eup %4572  ;;  %4598 = vtanh.f32 %v2201_v1  ;;  %v2315_v30 = vmul.f32 0.5, %v4571_v50  ;;  %v5912_v1 = vadd.f32 0.5, %v2313_v8  ;;  %v394_v50 = vld [vmem:[#allocation5 + $0x605] ss:$8 sm:$0x3]  ;;  %v2113_v62 = vpop.f32.mrf.mxu1 }
 0x412   : > { %v4575_v60 = vpop.eup %4574  ;;  %4600 = vtanh.f32 %v2202_v53  ;;  %v2316_v48 = vmul.f32 0.5, %v4573_v36  ;;  %v5908_v7 = vadd.f32 0.5, %v2314_v29  ;;  %v2098_v53 = vadd.f32 %v5856_v6, %v5778_v41 }
 0x413   : > { %v4577_v42 = vpop.eup %4576  ;;  %4602 = vtanh.f32 %v2203_v0  ;;  %v2317_v44 = vmul.f32 0.5, %v4575_v60  ;;  %v5914_v52 = vadd.f32 0.5, %v2315_v30  ;;  %v5928_v6 = vrot.slane %v394_v50, %v1907_v9 }
 0x414   : > { %v4579_v21 = vpop.eup %4578  ;;  %4604 = vtanh.f32 %v2204_v40  ;;  %v2318_v32 = vmul.f32 0.5, %v4577_v42  ;;  %v5916_v19 = vadd.f32 0.5, %v2316_v48  ;;  %v2210_v40 = vmul.f32 0.5, %v2096_v24 }
 0x415   : > { %v4581_v47 = vpop.eup %4580  ;;  %v2319_v18 = vmul.f32 0.5, %v4579_v21  ;;  %4606 = vtanh.f32 %v2205_v27  ;;  %v5920_v51 = vadd.f32 0.5, %v2317_v44  ;;  %v2211_v27 = vmul.f32 0.5, %v2098_v53 }
 0x416   : > { %v4583_v14 = vpop.eup %4582  ;;  %v2320_v61 = vmul.f32 0.5, %v4581_v47  ;;  %4608 = vtanh.f32 %v2206_v13  ;;  %v5922_v0 = vadd.f32 0.5, %v2318_v32  ;;  %v2102_v47 = vadd.f32 %v5868_v23, %v5774_v49 }
 0x417   : > { %v4585_v15 = vpop.eup %4584  ;;  %v2321_v4 = vmul.f32 0.5, %v4583_v14  ;;  %4610 = vtanh.f32 %v2207_v16  ;;  %v5924_v60 = vadd.f32 0.5, %v2319_v18  ;;  %v5938_v14 = vrot.slane %v394_v50, %v1911_v22 }
 0x418   : > { %v4587_v59 = vpop.eup %4586  ;;  %v2322_v37 = vmul.f32 0.5, %v4585_v15  ;;  %4612 = vtanh.f32 %v2208_v58  ;;  %v5930_v21 = vadd.f32 0.5, %v2320_v61  ;;  %v2104_v15 = vadd.f32 %v5880_v46, %v5778_v41 }
 0x419   : > { %v4589_v43 = vpop.eup %4588  ;;  %v2323_v42 = vmul.f32 0.5, %v4587_v59  ;;  %v5934_v30 = vadd.f32 0.5, %v2321_v4  ;;  %4614 = vtanh.f32 %v2209_v31  ;;  %v2115_v59 = vpop.f32.mrf.mxu1  ;;  %v2212_v24 = vmul.f32 0.5, %v2102_v47 }
 0x41a   : > { %v4591_v11 = vpop.eup %4590  ;;  %v2324_v38 = vmul.f32 0.5, %v4589_v43  ;;  %4616 = vtanh.f32 %v2210_v40  ;;  %v5942_v16 = vadd.f32 0.5, %v2322_v37  ;;  %v2213_v4 = vmul.f32 0.5, %v2104_v15 }
 0x41b   : > { %v4593_v12 = vpop.eup %4592  ;;  %v2325_v8 = vmul.f32 0.5, %v4591_v11  ;;  %v5944_v23 = vadd.f32 0.5, %v2323_v42  ;;  %4618 = vtanh.f32 %v2211_v27  ;;  %v2108_v31 = vadd.f32 %v5898_v55, %v5774_v49 }
 0x41c   : > { %v4595_v36 = vpop.eup %4594  ;;  %v2326_v34 = vmul.f32 0.5, %v4593_v12  ;;  %v5946_v20 = vadd.f32 0.5, %v2324_v38  ;;  %v2110_v47 = vadd.f32 %v5910_v28, %v5778_v41 }
 0x41d   : > { %v4597_v33 = vpop.eup %4596  ;;  %v2327_v13 = vmul.f32 0.5, %v4595_v36  ;;  %v5949_v22 = vadd.f32 0.5, %v2325_v8 }
 0x41e   : > { %v4599_v29 = vpop.eup %4598  ;;  %v2328_v9 = vmul.f32 0.5, %v4597_v33  ;;  %v5951_v11 = vadd.f32 0.5, %v2326_v34  ;;  %v2119_v33 = vpop.f32.mrf.mxu1 }
 0x41f   : > { %v4601_v48 = vpop.eup %4600  ;;  %v2329_v18 = vmul.f32 0.5, %v4599_v29  ;;  %v5954_v50 = vadd.f32 0.5, %v2327_v13 }
 0x420   : > { %v4603_v26 = vpop.eup %4602  ;;  %v2330_v46 = vmul.f32 0.5, %v4601_v48  ;;  %v5956_v12 = vadd.f32 0.5, %v2328_v9 }
 0x421   : > { %v4605_v58 = vpop.eup %4604  ;;  %v2331_v40 = vmul.f32 0.5, %v4603_v26  ;;  %v5961_v8 = vadd.f32 0.5, %v2329_v18 }
 0x422   : > { %v4607_v37 = vpop.eup %4606  ;;  %v2332_v27 = vmul.f32 0.5, %v4605_v58  ;;  %v5965_v48 = vadd.f32 0.5, %v2330_v46 }
 0x423   : > { %v4609_v34 = vpop.eup %4608  ;;  %v2333_v15 = vmul.f32 0.5, %v4607_v37  ;;  %v5969_v18 = vadd.f32 0.5, %v2331_v40 }
 0x424   : > { %v4611_v9 = vpop.eup %4610  ;;  %v5972_v46 = vadd.f32 0.5, %v2332_v27 }
 0x425   : > { %v4613_v58 = vpop.eup %4612 }
 0x426   : > { %6656 = vst [vmem:[#allocation12_spill] sm:$0xff] %v5972_v46  ;;  %v4615_v40 = vpop.eup %4614 }
 0x427   : > { %v4617_v27 = vpop.eup %4616 }
 0x436   : > { %v2505_v44 = vpop.f32.mrf.mxu0 }
 0x437   : > { %v2506_v32 = vadd.f32 %v2505_v44, %v5928_v6  ;;  %v2214_v44 = vmul.f32 0.5, %v2108_v31 }
 0x438   : > { %v2507_v43 = vpop.f32.mrf.mxu0 }
 0x439   : > { %v2696_v61 = vmul.f32 0.5, %v2506_v32  ;;  %v2508_v53 = vadd.f32 %v2507_v43, %v5938_v14  ;;  %v2114_v32 = vadd.f32 %v2113_v62, %v5774_v49 }
 0x43a   : > { %v2511_v36 = vpop.f32.mrf.mxu0 }
 0x43b   : > { %4620 = vtanh.f32 %v2696_v61  ;;  %v2697_v42 = vmul.f32 0.5, %v2508_v53  ;;  %v2512_v38 = vadd.f32 %v2511_v36, %v5928_v6  ;;  %v2334_v61 = vmul.f32 0.5, %v4609_v34 }
 0x43c   : > { %4622 = vtanh.f32 %v2212_v24  ;;  %v2513_v29 = vpop.f32.mrf.mxu0  ;;  %v2121_v24 = vpop.f32.mrf.mxu1  ;;  %v2215_v53 = vmul.f32 0.5, %v2110_v47  ;;  %v2116_v36 = vadd.f32 %v2115_v59, %v5778_v41 }
 0x43d   : > { %4624 = vtanh.f32 %v2697_v42  ;;  %v2698_v55 = vmul.f32 0.5, %v2512_v38  ;;  %v2514_v13 = vadd.f32 %v2513_v29, %v5938_v14  ;;  %v5976_v42 = vadd.f32 0.5, %v2333_v15 }
 0x43e   : > { %4626 = vtanh.f32 %v2213_v4  ;;  %v2517_v26 = vpop.f32.mrf.mxu0  ;;  %v2335_v4 = vmul.f32 0.5, %v4611_v9  ;;  %v2216_v38 = vmul.f32 0.5, %v2114_v32  ;;  %v2120_v29 = vadd.f32 %v2119_v33, %v5774_v49  ;;  %v2125_v34 = vpop.f32.mrf.mxu1 }
 0x43f   : > { %4628 = vtanh.f32 %v2698_v55  ;;  %v2699_v28 = vmul.f32 0.5, %v2514_v13  ;;  %v2518_v43 = vadd.f32 %v2517_v26, %v5928_v6  ;;  %v2336_v13 = vmul.f32 0.5, %v4613_v58 }
 0x440   : > { %v2519_v37 = vpop.f32.mrf.mxu0  ;;  %v5980_v9 = vadd.f32 0.5, %v2334_v61  ;;  %v2217_v26 = vmul.f32 0.5, %v2116_v36  ;;  %v2337_v58 = vmul.f32 0.5, %v4615_v40  ;;  %v2127_v61 = vpop.f32.mrf.mxu1 }
 0x441   : > { %4630 = vtanh.f32 %v2699_v28  ;;  %v2700_v31 = vmul.f32 0.5, %v2518_v43  ;;  %v2520_v62 = vadd.f32 %v2519_v37, %v5938_v14  ;;  %v2122_v28 = vadd.f32 %v2121_v24, %v5778_v41  ;;  %v4619_v43 = vpop.eup %4618 }
 0x442   : > { %4632 = vtanh.f32 %v2214_v44  ;;  %v2523_v55 = vpop.f32.mrf.mxu0  ;;  %6657 = vst [vmem:[#allocation11_spill] sm:$0xff] %v5980_v9  ;;  %v5983_v44 = vadd.f32 0.5, %v2335_v4  ;;  %v2338_v37 = vmul.f32 0.5, %v4617_v27  ;;  %v2339_v9 = vmul.f32 0.5, %v4619_v43 }
 0x443   : > { %4634 = vtanh.f32 %v2700_v31  ;;  %v2701_v47 = vmul.f32 0.5, %v2520_v62  ;;  %v2524_v59 = vadd.f32 %v2523_v55, %v5928_v6  ;;  %v2218_v31 = vmul.f32 0.5, %v2120_v29 }
 0x444   : > { %4636 = vtanh.f32 %v2215_v53  ;;  %v2525_v15 = vpop.f32.mrf.mxu0  ;;  %6658 = vst [vmem:[#allocation14_spill] sm:$0xff] %v5983_v44  ;;  %v5986_v55 = vadd.f32 0.5, %v2336_v13  ;;  %v2219_v4 = vmul.f32 0.5, %v2122_v28  ;;  %v5991_v13 = vadd.f32 0.5, %v2337_v58 }
 0x445   : > { %4638 = vtanh.f32 %v2701_v47  ;;  %v2702_v33 = vmul.f32 0.5, %v2524_v59  ;;  %v2526_v32 = vadd.f32 %v2525_v15, %v5938_v14  ;;  %v2126_v47 = vadd.f32 %v2125_v34, %v5774_v49 }
 0x446   : > { %4640 = vtanh.f32 %v2216_v38  ;;  %v2529_v62 = vpop.f32.mrf.mxu0  ;;  %6659 = vst [vmem:[#allocation13_spill] sm:$0xff] %v5986_v55  ;;  %6660 = vst [vmem:[#allocation15_spill] sm:$0xff] %v5991_v13 }
 0x447   : > { %4642 = vtanh.f32 %v2702_v33  ;;  %v2703_v53 = vmul.f32 0.5, %v2526_v32  ;;  %v2530_v24 = vadd.f32 %v2529_v62, %v5928_v6  ;;  %v5993_v33 = vadd.f32 0.5, %v2338_v37 }
 0x448   : > { %v4621_v36 = vpop.eup %4620  ;;  %4644 = vtanh.f32 %v2217_v26  ;;  %v2531_v59 = vpop.f32.mrf.mxu0  ;;  %v2128_v32 = vadd.f32 %v2127_v61, %v5778_v41 }
 0x449   : > { %v4623_v15 = vpop.eup %4622  ;;  %v2824_v40 = vmul.f32 0.5, %v4621_v36  ;;  %4646 = vtanh.f32 %v2703_v53  ;;  %v2704_v38 = vmul.f32 0.5, %v2530_v24  ;;  %v2532_v29 = vadd.f32 %v2531_v59, %v5938_v14  ;;  %6661 = vst [vmem:[#allocation16_spill] sm:$0xff] %v5993_v33 }
 0x44a   : > { %v4625_v27 = vpop.eup %4624  ;;  %4648 = vtanh.f32 %v2218_v31  ;;  %v2535_v43 = vpop.f32.mrf.mxu0  ;;  %v5996_v36 = vadd.f32 0.5, %v2339_v9  ;;  %v2340_v53 = vmul.f32 0.5, %v4623_v15  ;;  %v2220_v59 = vmul.f32 0.5, %v2126_v47 }
 0x44b   : > { %v4627_v26 = vpop.eup %4626  ;;  %v2888_v28 = vadd.f32 0.5, %v2824_v40  ;;  %v2825_v62 = vmul.f32 0.5, %v4625_v27  ;;  %4650 = vtanh.f32 %v2704_v38  ;;  %v2705_v34 = vmul.f32 0.5, %v2532_v29 }
 0x44c   : > { %v4629_v55 = vpop.eup %4628  ;;  %6662 = vst [vmem:[#allocation17_spill] sm:$0xff] %v5996_v36  ;;  %4652 = vtanh.f32 %v2219_v4  ;;  %v2536_v24 = vadd.f32 %v2535_v43, %v5928_v6  ;;  %v2537_v58 = vpop.f32.mrf.mxu0  ;;  %v5999_v61 = vmul.f32 0.5, %v4627_v26  ;;  %v6001_v13 = vmul.f32 0.5, %v2128_v32  ;;  %v6009_v43 = vld [vmem:[#allocation5 + $0x606] ss:$0 sm:$0xff] }
 0x44d   : > { %v2889_v37 = vadd.f32 0.5, %v2825_v62  ;;  %v2826_v33 = vmul.f32 0.5, %v4629_v55  ;;  %4654 = vtanh.f32 %v2705_v34  ;;  %v2538_v38 = vadd.f32 %v2537_v58, %v5938_v14  ;;  %v2131_v4 = vpop.f32.mrf.mxu1 }
 0x44e   : > { %v4631_v31 = vpop.eup %4630  ;;  %v2706_v40 = vmul.f32 0.5, %v2536_v24  ;;  %v2541_v9 = vpop.f32.mrf.mxu0  ;;  %v2952_v15 = vsub.f32 %v5854_v57, %v2888_v28  ;;  %v4935_v24 = vld [vmem:[%s5239_s24] sm:$0xff] }
 0x44f   : > { %v6004_v29 = vpop.eup %4632  ;;  %v2827_v27 = vmul.f32 0.5, %v4631_v31  ;;  %v2542_v47 = vadd.f32 %v2541_v9, %v5928_v6  ;;  %v2953_v55 = vsub.f32 %v5858_v17, %v2889_v37  ;;  %v2890_v32 = vadd.f32 0.5, %v2826_v33 }
 0x450   : > { %v4635_v26 = vpop.eup %4634  ;;  %4656 = vtanh.f32 %v2706_v40  ;;  %v2707_v62 = vmul.f32 0.5, %v2538_v38  ;;  %v2543_v34 = vpop.f32.mrf.mxu0  ;;  %v6013_v58 = vmul.f32 %v4935_v24, %v6009_v43  ;;  %v6019_v33 = vadd.f32 %v2131_v4, %v5774_v49  ;;  %v4936_v38 = vld [vmem:[%s5239_s24 + $0x10] sm:$0xff] }
 0x451   : > { %v6015_v36 = vpop.eup %4636  ;;  %v2891_v57 = vadd.f32 0.5, %v2827_v27  ;;  %v2828_v28 = vmul.f32 0.5, %v4635_v26  ;;  %v2708_v31 = vmul.f32 0.5, %v2542_v47  ;;  %v2544_v17 = vadd.f32 %v2543_v34, %v5938_v14  ;;  %3080 = vmatprep.mubr.f32.mxu1 %v2953_v55  ;;  %v4937_v27 = vld [vmem:[%s5239_s24 + $0x8] sm:$0xff] }
 0x452   : > { %6663 = vst [vmem:[#allocation18_spill] sm:$0xff] %v6013_v58  ;;  %v4639_v37 = vpop.eup %4638  ;;  %4658 = vtanh.f32 %v2707_v62  ;;  %v2547_v40 = vpop.f32.mrf.mxu0  ;;  %3081 = vmatmul.mubr.f32.vlgmr.msra.gmra.mxu1 %v2952_v15  ;;  %3497 = vadd.xlane.f32.xlu0 %v6013_v58  ;;  %v6024_v9 = vmul.f32 %v4936_v38, %v6009_v43  ;;  %v6028_v47 = vmul.f32 %v4937_v27, %v6009_v43  ;;  %v4938_v38 = vld [vmem:[%s5239_s24 + $0x18] sm:$0xff] }
 0x453   : > { %v6030_v26 = vpop.eup %4640  ;;  %v2892_v55 = vadd.f32 0.5, %v2828_v28  ;;  %v2829_v34 = vmul.f32 0.5, %v4639_v37  ;;  %4660 = vtanh.f32 %v2708_v31  ;;  %v2709_v4 = vmul.f32 0.5, %v2544_v17 }
 0x454   : > { %6664 = vst [vmem:[#allocation19_spill] sm:$0xff] %v6024_v9  ;;  %v4643_v62 = vpop.eup %4642  ;;  %v2548_v15 = vadd.f32 %v2547_v40, %v5928_v6  ;;  %v2549_v24 = vpop.f32.mrf.mxu0  ;;  %v2955_v58 = vsub.f32 %v5872_v10, %v2891_v57  ;;  %v2954_v44 = vsub.f32 %v5864_v35, %v2890_v32  ;;  %3499 = vadd.xlane.f32.xlu1 %v6028_v47  ;;  %v6043_v40 = vadd.f32 0.5, %v2340_v53  ;;  %v4939_v32 = vld [vmem:[%s5239_s24 + $0x20] sm:$0xff] }
 0x455   : > { %v6038_v27 = vmul.f32 %v4938_v38, %v6009_v43  ;;  %v6040_v46 = vpop.eup %4644  ;;  %v2893_v28 = vadd.f32 0.5, %v2829_v34  ;;  %v2830_v31 = vmul.f32 0.5, %v4643_v62  ;;  %4662 = vtanh.f32 %v2709_v4 }
 0x456   : > { %v2550_v17 = vadd.f32 %v2549_v24, %v5938_v14  ;;  %v4647_v37 = vpop.eup %4646  ;;  %4664 = vtanh.f32 %v2220_v59  ;;  %v2710_v10 = vmul.f32 0.5, %v2548_v15  ;;  %3085 = vmatprep.mubr.f32.mxu1 %v2955_v58  ;;  %v2553_v35 = vpop.f32.mrf.mxu0  ;;  %3501 = vadd.xlane.f32.xlu0 %v6024_v9  ;;  %v6048_v57 = vmul.f32 %v4939_v32, %v6009_v43  ;;  %v4940_v32 = vld [vmem:[%s5239_s24 + $0x28] sm:$0xff] }
 0x457   : > { %v6050_v38 = vpop.eup %4648  ;;  %v2831_v34 = vmul.f32 0.5, %v4647_v37  ;;  %v2554_v62 = vadd.f32 %v2553_v35, %v5928_v6  ;;  %3086 = vmatmul.mubr.f32.gmra.mxu1 %v2954_v44  ;;  %v2956_v53 = vsub.f32 %v5874_v5, %v2892_v55  ;;  %v2894_v15 = vadd.f32 0.5, %v2830_v31  ;;  %v4941_v31 = vld [vmem:[%s5239_s24 + $0x30] sm:$0xff] }
 0x458   : > { %6665 = vst [vmem:[#allocation20_spill] sm:$0xff] %v6048_v57  ;;  %v2711_v4 = vmul.f32 0.5, %v2550_v17  ;;  %v4651_v59 = vpop.eup %4650  ;;  %4666 = vtanh.f32 %v2710_v10  ;;  %v2555_v58 = vpop.f32.mrf.mxu0  ;;  %v2957_v24 = vsub.f32 %v5882_v45, %v2893_v28  ;;  %3503 = vadd.xlane.f32.xlu1 %v6038_v27  ;;  %v6058_v9 = vmul.f32 %v4940_v32, %v6009_v43 }
 0x459   : > { %v6060_v37 = vpop.eup %4652  ;;  %v2895_v17 = vadd.f32 0.5, %v2831_v34  ;;  %v2832_v35 = vmul.f32 0.5, %v4651_v59  ;;  %v2712_v44 = vmul.f32 0.5, %v2554_v62  ;;  %v6063_v55 = vadd.f32 0.5, %v5999_v61 }
 0x45a   : > { %4668 = vtanh.f32 %v2711_v4  ;;  %v4655_v5 = vpop.eup %4654  ;;  %v2556_v45 = vadd.f32 %v2555_v58, %v5938_v14  ;;  %3090 = vmatprep.mubr.f32.mxu1 %v2957_v24  ;;  %v2559_v28 = vpop.f32.mrf.mxu0  ;;  %3505 = vadd.xlane.f32.xlu0 %v6048_v57  ;;  %v6070_v10 = vmul.f32 %v4941_v31, %v6009_v43  ;;  %v2342_v34 = vmul.f32 0.5, %v6004_v29  ;;  %v4942_v24 = vld [vmem:[%s5239_s24 + $0x38] sm:$0xff] }
 0x45b   : > { %4670 = vtanh.f32 %v6001_v13  ;;  %v2833_v4 = vmul.f32 0.5, %v4655_v5  ;;  %v2560_v61 = vadd.f32 %v2559_v28, %v5928_v6  ;;  %3091 = vmatmul.mubr.f32.gmra.mxu1 %v2956_v53  ;;  %v2896_v62 = vadd.f32 0.5, %v2832_v35 }
 0x45c   : > { %4672 = vtanh.f32 %v2712_v44  ;;  %v2713_v13 = vmul.f32 0.5, %v2556_v45  ;;  %v2561_v59 = vpop.f32.mrf.mxu0  ;;  %v2959_v58 = vsub.f32 %v5884_v39, %v2895_v17  ;;  %3507 = vadd.xlane.f32.xlu1 %v6058_v9  ;;  %v6078_v32 = vmul.f32 %v4942_v24, %v6009_v43  ;;  %v4943_v39 = vld [vmem:[%s5239_s24 + $0x40] sm:$0xff] }
 0x45d   : > { %v4657_v31 = vpop.eup %4656  ;;  %v2897_v57 = vadd.f32 0.5, %v2833_v4  ;;  %v2714_v29 = vmul.f32 0.5, %v2560_v61  ;;  %v2562_v44 = vadd.f32 %v2561_v59, %v5938_v14  ;;  %v2958_v5 = vsub.f32 %v5878_v25, %v2894_v15  ;;  %v2133_v4 = vpop.f32.mrf.mxu1 }
 0x45e   : > { %6666 = vst [vmem:[#allocation21_spill] sm:$0xff] %v6078_v32  ;;  %v2222_v53 = vmul.f32 0.5, %v6019_v33  ;;  %v2834_v35 = vmul.f32 0.5, %v4657_v31  ;;  %4674 = vtanh.f32 %v2713_v13  ;;  %3095 = vmatprep.mubr.f32.mxu1 %v2959_v58  ;;  %v2565_v45 = vpop.f32.mrf.mxu0  ;;  %3509 = vadd.xlane.f32.xlu0 %v6070_v10  ;;  %v6086_v17 = vmul.f32 %v4943_v39, %v6009_v43  ;;  %v4944_v31 = vld [vmem:[%s5239_s24 + $0x48] sm:$0xff] }
 0x45f   : > { %v4659_v28 = vpop.eup %4658  ;;  %4676 = vtanh.f32 %v2714_v29  ;;  %v2715_v61 = vmul.f32 0.5, %v2562_v44  ;;  %v2566_v59 = vadd.f32 %v2565_v45, %v5928_v6  ;;  %3096 = vmatmul.mubr.f32.gmra.mxu1 %v2958_v5  ;;  %v2961_v25 = vsub.f32 %v5894_v63, %v2897_v57 }
 0x460   : > { %6667 = vst [vmem:[#allocation22_spill] sm:$0xff] %v6086_v17  ;;  %v4661_v33 = vpop.eup %4660  ;;  %v2898_v15 = vadd.f32 0.5, %v2834_v35  ;;  %v2835_v13 = vmul.f32 0.5, %v4659_v28  ;;  %v2567_v58 = vpop.f32.mrf.mxu0  ;;  %v2960_v24 = vsub.f32 %v5888_v2, %v2896_v62  ;;  %3511 = vadd.xlane.f32.xlu1 %v6078_v32  ;;  %v6094_v39 = vmul.f32 %v4944_v31, %v6009_v43  ;;  %v4945_v62 = vld [vmem:[%s5239_s24 + $0x50] sm:$0xff]  ;;  %v4946_v31 = vld [vmem:[%s5239_s24 + $0x58] sm:$0xff] }
 0x461   : > { %v2836_v29 = vmul.f32 0.5, %v4661_v33  ;;  %4678 = vtanh.f32 %v2715_v61  ;;  %v2716_v44 = vmul.f32 0.5, %v2566_v59  ;;  %v2568_v5 = vadd.f32 %v2567_v58, %v5938_v14  ;;  %3100 = vmatprep.mubr.f32.mxu1 %v2961_v25 }
 0x462   : > { %v4663_v63 = vpop.eup %4662  ;;  %v6097_v57 = vadd.f32 0.5, %v2342_v34  ;;  %v2134_v35 = vadd.f32 %v2133_v4, %v5778_v41  ;;  %v2899_v45 = vadd.f32 0.5, %v2835_v13  ;;  %v2571_v2 = vpop.f32.mrf.mxu0  ;;  %3513 = vadd.xlane.f32.xlu0 %v6086_v17  ;;  %v6103_v28 = vmul.f32 %v4945_v62, %v6009_v43 }
 0x463   : > { %v6105_v33 = vpop.eup %4664  ;;  %v2343_v61 = vmul.f32 0.5, %v6015_v36  ;;  %v2837_v59 = vmul.f32 0.5, %v4663_v63  ;;  %4680 = vtanh.f32 %v2716_v44  ;;  %v2717_v25 = vmul.f32 0.5, %v2568_v5  ;;  %3101 = vmatmul.mubr.f32.gmra.mxu1 %v2960_v24  ;;  %v4947_v63 = vld [vmem:[%s5239_s24 + $0x60] sm:$0xff] }
 0x464   : > { %v2900_v34 = vadd.f32 0.5, %v2836_v29  ;;  %v2572_v4 = vadd.f32 %v2571_v2, %v5928_v6  ;;  %v2573_v13 = vpop.f32.mrf.mxu0  ;;  %v2963_v58 = vsub.f32 %v5900_v54, %v2899_v45  ;;  %3515 = vadd.xlane.f32.xlu1 %v6094_v39  ;;  %v6113_v62 = vmul.f32 %v4946_v31, %v6009_v43  ;;  %v4948_v31 = vld [vmem:[%s5239_s24 + $0x68] sm:$0xff] }
 0x465   : > { %v4667_v17 = vpop.eup %4666  ;;  %v2901_v32 = vadd.f32 0.5, %v2837_v59  ;;  %4682 = vtanh.f32 %v2717_v25  ;;  %v2574_v36 = vadd.f32 %v2573_v13, %v5938_v14  ;;  %v2962_v24 = vsub.f32 %v5892_v3, %v2898_v15  ;;  %v2137_v59 = vpop.f32.mrf.mxu1 }
 0x466   : > { %4684 = vtanh.f32 %v2222_v53  ;;  %v2838_v44 = vmul.f32 0.5, %v4667_v17  ;;  %v2718_v5 = vmul.f32 0.5, %v2572_v4  ;;  %3105 = vmatprep.mubr.f32.mxu1 %v2963_v58  ;;  %v2577_v54 = vpop.f32.mrf.mxu0  ;;  %3517 = vadd.xlane.f32.xlu0 %v6103_v28  ;;  %v6120_v45 = vmul.f32 %v4947_v63, %v6009_v43 }
 0x467   : > { %v4669_v29 = vpop.eup %4668  ;;  %v2719_v13 = vmul.f32 0.5, %v2574_v36  ;;  %v2578_v3 = vadd.f32 %v2577_v54, %v5928_v6  ;;  %3106 = vmatmul.mubr.f32.gmra.mxu1 %v2962_v24  ;;  %v2965_v53 = vsub.f32 %v5912_v1, %v2901_v32  ;;  %v2964_v58 = vsub.f32 %v5902_v56, %v2900_v34  ;;  %v4949_v56 = vld [vmem:[%s5239_s24 + $0x70] sm:$0xff] }
 0x468   : > { %6668 = vst [vmem:[#allocation23_spill] sm:$0xff] %v6120_v45  ;;  %v6122_v2 = vpop.eup %4670  ;;  %v2839_v25 = vmul.f32 0.5, %v4669_v29  ;;  %v2902_v15 = vadd.f32 0.5, %v2838_v44  ;;  %4686 = vtanh.f32 %v2718_v5  ;;  %v2579_v4 = vpop.f32.mrf.mxu0  ;;  %3519 = vadd.xlane.f32.xlu1 %v6113_v62  ;;  %v6130_v63 = vmul.f32 %v4948_v31, %v6009_v43 }
 0x469   : > { %v4673_v17 = vpop.eup %4672  ;;  %4688 = vtanh.f32 %v2719_v13  ;;  %v2720_v54 = vmul.f32 0.5, %v2578_v3  ;;  %3110 = vmatprep.mubr.f32.mxu1 %v2965_v53  ;;  %v2223_v24 = vmul.f32 0.5, %v2134_v35  ;;  %v2138_v1 = vadd.f32 %v2137_v59, %v5774_v49  ;;  %v2139_v13 = vpop.f32.mrf.mxu1 }
 0x46a   : > { %6669 = vst [vmem:[#allocation24_spill] sm:$0xff] %v6130_v63  ;;  %v2903_v29 = vadd.f32 0.5, %v2839_v25  ;;  %v2840_v36 = vmul.f32 0.5, %v4673_v17  ;;  %v2580_v32 = vadd.f32 %v2579_v4, %v5938_v14  ;;  %v2583_v44 = vpop.f32.mrf.mxu0  ;;  %3521 = vadd.xlane.f32.xlu0 %v6120_v45  ;;  %v6137_v34 = vmul.f32 %v4949_v56, %v6009_v43  ;;  %v4950_v56 = vld [vmem:[%s5239_s24 + $0x78] sm:$0xff] }
 0x46b   : > { %v4675_v5 = vpop.eup %4674  ;;  %v6139_v31 = vadd.f32 0.5, %v2343_v61  ;;  %4690 = vtanh.f32 %v2720_v54  ;;  %v2584_v25 = vadd.f32 %v2583_v44, %v5928_v6  ;;  %3111 = vmatmul.mubr.f32.gmra.mxu1 %v2964_v58  ;;  %v6146_v45 = vmul.f32 %v4950_v56, %v6009_v43 }
 0x46c   : > { %v2967_v35 = vsub.f32 %v5914_v52, %v2903_v29  ;;  %v4677_v59 = vpop.eup %4676  ;;  %v2904_v3 = vadd.f32 0.5, %v2840_v36  ;;  %v2841_v53 = vmul.f32 0.5, %v4675_v5  ;;  %v2721_v17 = vmul.f32 0.5, %v2580_v32  ;;  %v2585_v4 = vpop.f32.mrf.mxu0  ;;  %3523 = vadd.xlane.f32.xlu1 %v6130_v63  ;;  %v4951_v5 = vld [vmem:[%s5239_s24 + $0x80] sm:$0xff] }
 0x46d   : > { %v2842_v61 = vmul.f32 0.5, %v4677_v59  ;;  %v2722_v54 = vmul.f32 0.5, %v2584_v25  ;;  %v2586_v44 = vadd.f32 %v2585_v4, %v5938_v14  ;;  %v2966_v52 = vsub.f32 %v5908_v7, %v2902_v15 }
 0x46e   : > { %3115 = vmatprep.mubr.f32.mxu1 %v2967_v35  ;;  %v4679_v58 = vpop.eup %4678  ;;  %v2224_v29 = vmul.f32 0.5, %v2138_v1  ;;  %v2905_v36 = vadd.f32 0.5, %v2841_v53  ;;  %4692 = vtanh.f32 %v2721_v17  ;;  %v2589_v32 = vpop.f32.mrf.mxu0  ;;  %3525 = vadd.xlane.f32.xlu0 %v6137_v34  ;;  %v6153_v63 = vmul.f32 %v4951_v5, %v6009_v43 }
 0x46f   : > { %v2140_v56 = vadd.f32 %v2139_v13, %v5778_v41  ;;  %v2843_v59 = vmul.f32 0.5, %v4679_v58  ;;  %4694 = vtanh.f32 %v2722_v54  ;;  %v2723_v25 = vmul.f32 0.5, %v2586_v44  ;;  %3116 = vmatmul.mubr.f32.gmra.mxu1 %v2966_v52  ;;  %v4952_v58 = vld [vmem:[%s5239_s24 + $0x90] sm:$0xff] }
 0x470   : > { %6670 = vst [vmem:[#allocation25_spill] sm:$0xff] %v6153_v63  ;;  %v4681_v35 = vpop.eup %4680  ;;  %v2906_v4 = vadd.f32 0.5, %v2842_v61  ;;  %v2590_v7 = vadd.f32 %v2589_v32, %v5928_v6  ;;  %v2591_v15 = vpop.f32.mrf.mxu0  ;;  %v2969_v1 = vsub.f32 %v5920_v51, %v2905_v36  ;;  %v2968_v53 = vsub.f32 %v5916_v19, %v2904_v3  ;;  %3527 = vadd.xlane.f32.xlu1 %v6146_v45 }
 0x471   : > { %v2907_v17 = vadd.f32 0.5, %v2843_v59  ;;  %v2844_v5 = vmul.f32 0.5, %v4681_v35  ;;  %4696 = vtanh.f32 %v2723_v25  ;;  %v2592_v13 = vadd.f32 %v2591_v15, %v5938_v14  ;;  %v2143_v36 = vpop.f32.mrf.mxu1 }
 0x472   : > { %v4683_v54 = vpop.eup %4682  ;;  %v2344_v44 = vmul.f32 0.5, %v6030_v26  ;;  %4698 = vtanh.f32 %v2223_v24  ;;  %v2724_v61 = vmul.f32 0.5, %v2590_v7  ;;  %3120 = vmatprep.mubr.f32.mxu1 %v2969_v1  ;;  %v2595_v52 = vpop.f32.mrf.mxu0  ;;  %3529 = vadd.xlane.f32.xlu0 %v6153_v63  ;;  %v6165_v51 = vmul.f32 %v4952_v58, %v6009_v43 }
 0x473   : > { %v6167_v19 = vpop.eup %4684  ;;  %v2345_v3 = vmul.f32 0.5, %v6040_v46  ;;  %v2845_v32 = vmul.f32 0.5, %v4683_v54  ;;  %v2725_v59 = vmul.f32 0.5, %v2592_v13  ;;  %v2596_v25 = vadd.f32 %v2595_v52, %v5928_v6  ;;  %3121 = vmatmul.mubr.f32.gmra.mxu1 %v2968_v53 }
 0x474   : > { %v2908_v26 = vadd.f32 0.5, %v2844_v5  ;;  %4700 = vtanh.f32 %v2724_v61  ;;  %v2597_v24 = vpop.f32.mrf.mxu0  ;;  %v2971_v35 = vsub.f32 %v5924_v60, %v2907_v17  ;;  %v2970_v7 = vsub.f32 %v5922_v0, %v2906_v4  ;;  %v2145_v5 = vpop.f32.mrf.mxu1 }
 0x475   : > { %v4687_v15 = vpop.eup %4686  ;;  %v2909_v1 = vadd.f32 0.5, %v2845_v32  ;;  %4702 = vtanh.f32 %v2725_v59  ;;  %v2726_v58 = vmul.f32 0.5, %v2596_v25  ;;  %v2598_v63 = vadd.f32 %v2597_v24, %v5938_v14 }
 0x476   : > { %v4689_v46 = vpop.eup %4688  ;;  %4704 = vtanh.f32 %v2224_v29  ;;  %v2225_v54 = vmul.f32 0.5, %v2140_v56  ;;  %v2144_v13 = vadd.f32 %v2143_v36, %v5774_v49  ;;  %v2846_v52 = vmul.f32 0.5, %v4687_v15  ;;  %3125 = vmatprep.mubr.f32.mxu1 %v2971_v35  ;;  %v2601_v53 = vpop.f32.mrf.mxu0  ;;  %3533 = vadd.xlane.f32.xlu0 %v6165_v51 }
 0x477   : > { %v2847_v60 = vmul.f32 0.5, %v4689_v46  ;;  %4706 = vtanh.f32 %v2726_v58  ;;  %v2727_v0 = vmul.f32 0.5, %v2598_v63  ;;  %v2602_v4 = vadd.f32 %v2601_v53, %v5928_v6  ;;  %3126 = vmatmul.mubr.f32.gmra.mxu1 %v2970_v7  ;;  %v2149_v46 = vpop.f32.mrf.mxu1 }
 0x478   : > { %v4691_v17 = vpop.eup %4690  ;;  %v6177_v61 = vadd.f32 0.5, %v2344_v44  ;;  %v2910_v32 = vadd.f32 0.5, %v2846_v52  ;;  %v2603_v29 = vpop.f32.mrf.mxu0  ;;  %v2973_v56 = vsub.f32 %v5934_v30, %v2909_v1  ;;  %v2972_v36 = vsub.f32 %v5930_v21, %v2908_v26 }
 0x479   : > { %v2911_v59 = vadd.f32 0.5, %v2847_v60  ;;  %v2848_v25 = vmul.f32 0.5, %v4691_v17  ;;  %4708 = vtanh.f32 %v2727_v0  ;;  %v2728_v24 = vmul.f32 0.5, %v2602_v4 }
 0x47a   : > { %v6181_v35 = vadd.f32 0.5, %v2345_v3  ;;  %4710 = vtanh.f32 %v2225_v54  ;;  %v2146_v63 = vadd.f32 %v2145_v5, %v5778_v41  ;;  %v2604_v7 = vadd.f32 %v2603_v29, %v5938_v14  ;;  %3130 = vmatprep.mubr.f32.mxu1 %v2973_v56  ;;  %v2607_v44 = vpop.f32.mrf.mxu0 }
 0x47b   : > { %v4693_v15 = vpop.eup %4692  ;;  %v2346_v58 = vmul.f32 0.5, %v6050_v38  ;;  %4712 = vtanh.f32 %v2728_v24  ;;  %v2608_v21 = vadd.f32 %v2607_v44, %v5928_v6  ;;  %3131 = vmatmul.mubr.f32.gmra.mxu1 %v2972_v36  ;;  %v2975_v30 = vsub.f32 %v5944_v23, %v2911_v59 }
 0x47c   : > { %v4695_v26 = vpop.eup %4694  ;;  %v2226_v3 = vmul.f32 0.5, %v2144_v13  ;;  %v2849_v1 = vmul.f32 0.5, %v4693_v15  ;;  %v2729_v54 = vmul.f32 0.5, %v2604_v7  ;;  %v2609_v52 = vpop.f32.mrf.mxu0  ;;  %v2974_v53 = vsub.f32 %v5942_v16, %v2910_v32 }
 0x47d   : > { %v2912_v5 = vadd.f32 0.5, %v2848_v25  ;;  %v2850_v60 = vmul.f32 0.5, %v4695_v26  ;;  %v2730_v0 = vmul.f32 0.5, %v2608_v21  ;;  %v2610_v4 = vadd.f32 %v2609_v52, %v5938_v14  ;;  %3135 = vmatprep.mubr.f32.mxu1 %v2975_v30 }
 0x47e   : > { %v4697_v38 = vpop.eup %4696  ;;  %v2227_v17 = vmul.f32 0.5, %v2146_v63  ;;  %v2150_v29 = vadd.f32 %v2149_v46, %v5774_v49  ;;  %v2913_v56 = vadd.f32 0.5, %v2849_v1  ;;  %4714 = vtanh.f32 %v2729_v54  ;;  %v2613_v23 = vpop.f32.mrf.mxu0 }
 0x47f   : > { %v6191_v36 = vpop.eup %4698  ;;  %v2347_v13 = vmul.f32 0.5, %v6060_v37  ;;  %v2851_v59 = vmul.f32 0.5, %v4697_v38  ;;  %4716 = vtanh.f32 %v2730_v0  ;;  %v2731_v16 = vmul.f32 0.5, %v2610_v4  ;;  %3136 = vmatmul.mubr.f32.gmra.mxu1 %v2974_v53  ;;  %v2151_v54 = vpop.f32.mrf.mxu1 }
 0x480   : > { %4718 = vtanh.f32 %v2226_v3  ;;  %v2914_v32 = vadd.f32 0.5, %v2850_v60  ;;  %v2614_v25 = vadd.f32 %v2613_v23, %v5928_v6  ;;  %v2615_v24 = vpop.f32.mrf.mxu0  ;;  %v2977_v63 = vsub.f32 %v5949_v22, %v2913_v56 }
 0x481   : > { %v4701_v7 = vpop.eup %4700  ;;  %v2915_v44 = vadd.f32 0.5, %v2851_v59  ;;  %4720 = vtanh.f32 %v2731_v16  ;;  %v2616_v15 = vadd.f32 %v2615_v24, %v5938_v14  ;;  %v2976_v46 = vsub.f32 %v5946_v20, %v2912_v5 }
 0x482   : > { %v4703_v21 = vpop.eup %4702  ;;  %4722 = vtanh.f32 %v2227_v17  ;;  %v2228_v37 = vmul.f32 0.5, %v2150_v29  ;;  %v2852_v30 = vmul.f32 0.5, %v4701_v7  ;;  %v2732_v26 = vmul.f32 0.5, %v2614_v25  ;;  %3140 = vmatprep.mubr.f32.mxu1 %v2977_v63  ;;  %v2619_v3 = vpop.f32.mrf.mxu0 }
 0x483   : > { %v6198_v1 = vpop.eup %4704  ;;  %v2853_v52 = vmul.f32 0.5, %v4703_v21  ;;  %v2733_v53 = vmul.f32 0.5, %v2616_v15  ;;  %v2620_v22 = vadd.f32 %v2619_v3, %v5928_v6  ;;  %3141 = vmatmul.mubr.f32.gmra.mxu1 %v2976_v46  ;;  %v2979_v60 = vsub.f32 %v5954_v50, %v2915_v44  ;;  %v2155_v63 = vpop.f32.mrf.mxu1 }
 0x484   : > { %v4707_v0 = vpop.eup %4706  ;;  %v6202_v4 = vadd.f32 0.5, %v2346_v58  ;;  %v2916_v20 = vadd.f32 0.5, %v2852_v30  ;;  %4724 = vtanh.f32 %v2732_v26  ;;  %v2621_v5 = vpop.f32.mrf.mxu0  ;;  %v2978_v38 = vsub.f32 %v5951_v11, %v2914_v32 }
 0x485   : > { %v2917_v17 = vadd.f32 0.5, %v2853_v52  ;;  %v2854_v29 = vmul.f32 0.5, %v4707_v0  ;;  %4726 = vtanh.f32 %v2733_v53  ;;  %v2734_v56 = vmul.f32 0.5, %v2620_v22  ;;  %3145 = vmatprep.mubr.f32.mxu1 %v2979_v60 }
 0x486   : > { %v4709_v23 = vpop.eup %4708  ;;  %v6205_v59 = vadd.f32 0.5, %v2347_v13  ;;  %4728 = vtanh.f32 %v2228_v37  ;;  %v2152_v16 = vadd.f32 %v2151_v54, %v5778_v41  ;;  %v2622_v50 = vadd.f32 %v2621_v5, %v5938_v14  ;;  %v2625_v58 = vpop.f32.mrf.mxu0 }
 0x487   : > { %v6209_v25 = vpop.eup %4710  ;;  %v2348_v24 = vmul.f32 0.5, %v6105_v33  ;;  %v2855_v11 = vmul.f32 0.5, %v4709_v23  ;;  %4730 = vtanh.f32 %v2734_v56  ;;  %v2626_v32 = vadd.f32 %v2625_v58, %v5928_v6  ;;  %3146 = vmatmul.mubr.f32.gmra.mxu1 %v2978_v38  ;;  %v2157_v56 = vpop.f32.mrf.mxu1 }
 0x488   : > { %v4713_v7 = vpop.eup %4712  ;;  %v2918_v44 = vadd.f32 0.5, %v2854_v29  ;;  %v2735_v13 = vmul.f32 0.5, %v2622_v50  ;;  %v2627_v15 = vpop.f32.mrf.mxu0  ;;  %v2981_v46 = vsub.f32 %v5961_v8, %v2917_v17  ;;  %v2980_v21 = vsub.f32 %v5956_v12, %v2916_v20 }
 0x489   : > { %v2919_v37 = vadd.f32 0.5, %v2855_v11  ;;  %v2856_v30 = vmul.f32 0.5, %v4713_v7  ;;  %v2736_v26 = vmul.f32 0.5, %v2626_v32  ;;  %v2628_v3 = vadd.f32 %v2627_v15, %v5938_v14 }
 0x48a   : > { %v2349_v33 = vmul.f32 0.5, %v6122_v2  ;;  %v2229_v54 = vmul.f32 0.5, %v2152_v16  ;;  %v2156_v52 = vadd.f32 %v2155_v63, %v5774_v49  ;;  %4732 = vtanh.f32 %v2735_v13  ;;  %3150 = vmatprep.mubr.f32.mxu1 %v2981_v46  ;;  %v2631_v53 = vpop.f32.mrf.mxu0 }
 0x48b   : > { %v4715_v22 = vpop.eup %4714  ;;  %v6218_v60 = vadd.f32 0.5, %v2348_v24  ;;  %4734 = vtanh.f32 %v2736_v26  ;;  %v2737_v8 = vmul.f32 0.5, %v2628_v3  ;;  %v2632_v12 = vadd.f32 %v2631_v53, %v5928_v6  ;;  %3151 = vmatmul.mubr.f32.gmra.mxu1 %v2980_v21 }
 0x48c   : > { %v4717_v0 = vpop.eup %4716  ;;  %v2920_v20 = vadd.f32 0.5, %v2856_v30  ;;  %v2857_v5 = vmul.f32 0.5, %v4715_v22  ;;  %v2633_v38 = vpop.f32.mrf.mxu0  ;;  %v2983_v2 = vsub.f32 %v5969_v18, %v2919_v37  ;;  %v2982_v17 = vsub.f32 %v5965_v48, %v2918_v44 }
 0x48d   : > { %v6223_v29 = vpop.eup %4718  ;;  %v2858_v23 = vmul.f32 0.5, %v4717_v0  ;;  %4736 = vtanh.f32 %v2737_v8  ;;  %v2738_v16 = vmul.f32 0.5, %v2632_v12  ;;  %v2634_v50 = vadd.f32 %v2633_v38, %v5938_v14  ;;  %v2161_v30 = vpop.f32.mrf.mxu1  ;;  %v4953_v12 = vld [vmem:[%s5239_s24 + $0x88] sm:$0xff] }
 0x48e   : > { %v4721_v58 = vpop.eup %4720  ;;  %v6226_v24 = vadd.f32 0.5, %v2349_v33  ;;  %v6229_v63 = vmul.f32 0.5, %v6167_v19  ;;  %4738 = vtanh.f32 %v2229_v54  ;;  %v2921_v11 = vadd.f32 0.5, %v2857_v5  ;;  %3155 = vmatprep.mubr.f32.mxu1 %v2983_v2  ;;  %v2637_v18 = vpop.f32.mrf.mxu0  ;;  %v6671_v33 = vld [vmem:[#allocation12_spill] sm:$0xff]  ;;  %v4954_v5 = vld [vmem:[%s5239_s24 + $0xa0] sm:$0xff] }
 0x48f   : > { %v6231_v32 = vpop.eup %4722  ;;  %v2230_v48 = vmul.f32 0.5, %v2156_v52  ;;  %v2859_v7 = vmul.f32 0.5, %v4721_v58  ;;  %4740 = vtanh.f32 %v2738_v16  ;;  %v2739_v44 = vmul.f32 0.5, %v2634_v50  ;;  %3156 = vmatmul.mubr.f32.gmra.mxu1 %v2982_v17 }
 0x490   : > { %v2158_v13 = vadd.f32 %v2157_v56, %v5778_v41  ;;  %v2922_v15 = vadd.f32 0.5, %v2858_v23  ;;  %v2638_v46 = vadd.f32 %v2637_v18, %v5928_v6  ;;  %v2639_v19 = vpop.f32.mrf.mxu0  ;;  %v2985_v21 = vsub.f32 %v5976_v42, %v2921_v11  ;;  %v6673_v18 = vld [vmem:[#allocation11_spill] sm:$0xff] }
 0x491   : > { %v4725_v37 = vpop.eup %4724  ;;  %v2923_v26 = vadd.f32 0.5, %v2859_v7  ;;  %4742 = vtanh.f32 %v2739_v44  ;;  %v2640_v3 = vadd.f32 %v2639_v19, %v5938_v14  ;;  %v2984_v54 = vsub.f32 %v6671_v33, %v2920_v20  ;;  %v6672_v20 = vld [vmem:[#allocation14_spill] sm:$0xff] }
 0x492   : > { %v4727_v52 = vpop.eup %4726  ;;  %v2860_v53 = vmul.f32 0.5, %v4725_v37  ;;  %v2740_v22 = vmul.f32 0.5, %v2638_v46  ;;  %3160 = vmatprep.mubr.f32.mxu1 %v2985_v21  ;;  %v2643_v8 = vpop.f32.mrf.mxu0  ;;  %v6240_v0 = vmul.f32 %v4953_v12, %v6009_v43  ;;  %v6244_v42 = vmul.f32 %v4954_v5, %v6009_v43 }
 0x493   : > { %v6246_v38 = vpop.eup %4728  ;;  %v2861_v2 = vmul.f32 0.5, %v4727_v52  ;;  %v2741_v17 = vmul.f32 0.5, %v2640_v3  ;;  %v2644_v56 = vadd.f32 %v2643_v8, %v5928_v6  ;;  %3161 = vmatmul.mubr.f32.gmra.mxu1 %v2984_v54  ;;  %v2987_v23 = vsub.f32 %v6672_v20, %v2923_v26  ;;  %v4956_v3 = vld [vmem:[%s5239_s24 + $0xb0] sm:$0xff]  ;;  %v2163_v12 = vpop.f32.mrf.mxu1 }
 0x494   : > { %v4731_v16 = vpop.eup %4730  ;;  %v2162_v50 = vadd.f32 %v2161_v30, %v5774_v49  ;;  %v2924_v58 = vadd.f32 0.5, %v2860_v53  ;;  %4744 = vtanh.f32 %v2740_v22  ;;  %v2645_v11 = vpop.f32.mrf.mxu0  ;;  %v2986_v7 = vsub.f32 %v6673_v18, %v2922_v15  ;;  %3531 = vadd.xlane.f32.xlu1 %v6240_v0  ;;  %3537 = vadd.xlane.f32.xlu0 %v6244_v42  ;;  %v4955_v30 = vld [vmem:[%s5239_s24 + $0x98] sm:$0xff]  ;;  %v6674_v53 = vld [vmem:[#allocation15_spill] sm:$0xff] }
 0x495   : > { %v2925_v44 = vadd.f32 0.5, %v2861_v2  ;;  %v2862_v46 = vmul.f32 0.5, %v4731_v16  ;;  %4746 = vtanh.f32 %v2741_v17  ;;  %v2742_v19 = vmul.f32 0.5, %v2644_v56  ;;  %3165 = vmatprep.mubr.f32.mxu1 %v2987_v23  ;;  %v6675_v16 = vld [vmem:[#allocation13_spill] sm:$0xff] }
 0x496   : > { %4748 = vtanh.f32 %v2230_v48  ;;  %v2646_v21 = vadd.f32 %v2645_v11, %v5938_v14  ;;  %v2649_v37 = vpop.f32.mrf.mxu0  ;;  %v6257_v26 = vmul.f32 %v4955_v30, %v6009_v43  ;;  %v6261_v15 = vmul.f32 %v4956_v3, %v6009_v43 }
 0x497   : > { %v4733_v33 = vpop.eup %4732  ;;  %v2231_v54 = vmul.f32 0.5, %v2158_v13  ;;  %4750 = vtanh.f32 %v2742_v19  ;;  %v2650_v52 = vadd.f32 %v2649_v37, %v5928_v6  ;;  %3166 = vmatmul.mubr.f32.gmra.mxu1 %v2986_v7  ;;  %v2989_v22 = vsub.f32 %v6674_v53, %v2925_v44  ;;  %v4957_v44 = vld [vmem:[%s5239_s24 + $0xa8] sm:$0xff]  ;;  %v4958_v19 = vld [vmem:[%s5239_s24 + $0xc0] sm:$0xff] }
 0x498   : > { %v4735_v48 = vpop.eup %4734  ;;  %v2232_v8 = vmul.f32 0.5, %v2162_v50  ;;  %v2926_v5 = vadd.f32 0.5, %v2862_v46  ;;  %v2863_v2 = vmul.f32 0.5, %v4733_v33  ;;  %v2743_v17 = vmul.f32 0.5, %v2646_v21  ;;  %v2651_v56 = vpop.f32.mrf.mxu0  ;;  %3535 = vadd.xlane.f32.xlu1 %v6257_v26  ;;  %3541 = vadd.xlane.f32.xlu0 %v6261_v15 }
 0x499   : > { %v2864_v13 = vmul.f32 0.5, %v4735_v48  ;;  %v2744_v20 = vmul.f32 0.5, %v2650_v52  ;;  %v2652_v23 = vadd.f32 %v2651_v56, %v5938_v14  ;;  %3170 = vmatprep.mubr.f32.mxu1 %v2989_v22  ;;  %v2988_v11 = vsub.f32 %v6675_v16, %v2924_v58  ;;  %v6676_v48 = vld [vmem:[#allocation17_spill] sm:$0xff] }
 0x49a   : > { %v4737_v18 = vpop.eup %4736  ;;  %v2927_v50 = vadd.f32 0.5, %v2863_v2  ;;  %4752 = vtanh.f32 %v2743_v17  ;;  %v2655_v7 = vpop.f32.mrf.mxu0  ;;  %v6271_v46 = vmul.f32 %v4957_v44, %v6009_v43  ;;  %v6275_v21 = vmul.f32 %v4958_v19, %v6009_v43  ;;  %v6677_v17 = vld [vmem:[#allocation16_spill] sm:$0xff] }
 0x49b   : > { %v6277_v37 = vpop.eup %4738  ;;  %v2164_v30 = vadd.f32 %v2163_v12, %v5778_v41  ;;  %v2865_v3 = vmul.f32 0.5, %v4737_v18  ;;  %4754 = vtanh.f32 %v2744_v20  ;;  %v2745_v33 = vmul.f32 0.5, %v2652_v23  ;;  %3171 = vmatmul.mubr.f32.gmra.mxu1 %v2988_v11  ;;  %v4959_v18 = vld [vmem:[%s5239_s24 + $0xb8] sm:$0xff] }
 0x49c   : > { %v4741_v58 = vpop.eup %4740  ;;  %v2928_v52 = vadd.f32 0.5, %v2864_v13  ;;  %v2656_v53 = vadd.f32 %v2655_v7, %v5928_v6  ;;  %v2657_v22 = vpop.f32.mrf.mxu0  ;;  %v2991_v2 = vsub.f32 %v6676_v48, %v2927_v50  ;;  %v2990_v56 = vsub.f32 %v6677_v17, %v2926_v5  ;;  %3539 = vadd.xlane.f32.xlu1 %v6271_v46  ;;  %3545 = vadd.xlane.f32.xlu0 %v6275_v21  ;;  %v4960_v50 = vld [vmem:[%s5239_s24 + $0xd0] sm:$0xff] }
 0x49d   : > { %v2929_v12 = vadd.f32 0.5, %v2865_v3  ;;  %v2866_v16 = vmul.f32 0.5, %v4741_v58  ;;  %4756 = vtanh.f32 %v2745_v33  ;;  %v2658_v20 = vadd.f32 %v2657_v22, %v5938_v14 }
 0x49e   : > { %v4743_v23 = vpop.eup %4742  ;;  %4758 = vtanh.f32 %v2231_v54  ;;  %v2746_v13 = vmul.f32 0.5, %v2656_v53  ;;  %3175 = vmatprep.mubr.f32.mxu1 %v2991_v2  ;;  %v2661_v11 = vpop.f32.mrf.mxu0  ;;  %v6288_v7 = vmul.f32 %v4959_v18, %v6009_v43  ;;  %v6292_v5 = vmul.f32 %v4960_v50, %v6009_v43 }
 0x49f   : > { %4760 = vtanh.f32 %v2232_v8  ;;  %v2867_v44 = vmul.f32 0.5, %v4743_v23  ;;  %v2747_v19 = vmul.f32 0.5, %v2658_v20  ;;  %v2662_v3 = vadd.f32 %v2661_v11, %v5928_v6  ;;  %3176 = vmatmul.mubr.f32.gmra.mxu1 %v2990_v56  ;;  %v2167_v8 = vpop.f32.mrf.mxu1 }
 0x4a0   : > { %v2930_v33 = vadd.f32 0.5, %v2866_v16  ;;  %4762 = vtanh.f32 %v2746_v13  ;;  %v2663_v54 = vpop.f32.mrf.mxu0  ;;  %v2993_v58 = vsub.f32 %v6063_v55, %v2929_v12  ;;  %v2992_v53 = vsub.f32 %v6043_v40, %v2928_v52  ;;  %3543 = vadd.xlane.f32.xlu1 %v6288_v7  ;;  %3549 = vadd.xlane.f32.xlu0 %v6292_v5  ;;  %v4961_v55 = vld [vmem:[%s5239_s24 + $0xc8] sm:$0xff]  ;;  %v4962_v52 = vld [vmem:[%s5239_s24 + $0xe0] sm:$0xff] }
 0x4a1   : > { %v4745_v22 = vpop.eup %4744  ;;  %v2931_v48 = vadd.f32 0.5, %v2867_v44  ;;  %4764 = vtanh.f32 %v2747_v19  ;;  %v2748_v2 = vmul.f32 0.5, %v2662_v3  ;;  %v2664_v17 = vadd.f32 %v2663_v54, %v5938_v14 }
 0x4a2   : > { %v4747_v56 = vpop.eup %4746  ;;  %v2233_v16 = vmul.f32 0.5, %v2164_v30  ;;  %v2868_v20 = vmul.f32 0.5, %v4745_v22  ;;  %3180 = vmatprep.mubr.f32.mxu1 %v2993_v58  ;;  %v2667_v23 = vpop.f32.mrf.mxu0  ;;  %v6302_v40 = vmul.f32 %v4961_v55, %v6009_v43  ;;  %v6306_v12 = vmul.f32 %v4962_v52, %v6009_v43 }
 0x4a3   : > { %v6308_v13 = vpop.eup %4748  ;;  %v2869_v11 = vmul.f32 0.5, %v4747_v56  ;;  %4766 = vtanh.f32 %v2748_v2  ;;  %v2749_v18 = vmul.f32 0.5, %v2664_v17  ;;  %v2668_v50 = vadd.f32 %v2667_v23, %v5928_v6  ;;  %3181 = vmatmul.mubr.f32.gmra.mxu1 %v2992_v53  ;;  %v2169_v58 = vpop.f32.mrf.mxu1  ;;  %v4963_v17 = vld [vmem:[%s5239_s24 + $0xd8] sm:$0xff]  ;;  %v4964_v56 = vld [vmem:[#allocation5 + $0x606] ss:$0 sm:$0xff] }
 0x4a4   : > { %v4751_v30 = vpop.eup %4750  ;;  %v2168_v44 = vadd.f32 %v2167_v8, %v5774_v49  ;;  %v2932_v19 = vadd.f32 0.5, %v2868_v20  ;;  %v2669_v3 = vpop.f32.mrf.mxu0  ;;  %v2995_v54 = vsub.f32 %v6139_v31, %v2931_v48  ;;  %v2994_v43 = vsub.f32 %v6097_v57, %v2930_v33  ;;  %3547 = vadd.xlane.f32.xlu1 %v6302_v40  ;;  %3553 = vadd.xlane.f32.xlu0 %v6306_v12  ;;  %v4965_v48 = vld [vmem:[%s5239_s24 + $0xf0] sm:$0xff] }
 0x4a5   : > { %v2933_v22 = vadd.f32 0.5, %v2869_v11  ;;  %v2870_v2 = vmul.f32 0.5, %v4751_v30  ;;  %4768 = vtanh.f32 %v2749_v18  ;;  %v2750_v53 = vmul.f32 0.5, %v2668_v50 }
 0x4a6   : > { %4770 = vtanh.f32 %v2233_v16  ;;  %v2670_v49 = vadd.f32 %v2669_v3, %v5938_v14  ;;  %3185 = vmatprep.mubr.f32.mxu1 %v2995_v54  ;;  %v2673_v8 = vpop.f32.mrf.mxu0  ;;  %v6318_v31 = vmul.f32 %v4964_v56, %v4963_v17  ;;  %v6321_v57 = vmul.f32 %v4965_v48, %v4964_v56 }
 0x4a7   : > { %v4753_v33 = vpop.eup %4752  ;;  %v6324_v20 = vmul.f32 0.5, %v6191_v36  ;;  %4772 = vtanh.f32 %v2750_v53  ;;  %v2674_v23 = vadd.f32 %v2673_v8, %v5928_v6  ;;  %3186 = vmatmul.mubr.f32.gmra.mxu1 %v2994_v43  ;;  %v2997_v16 = vsub.f32 %v6181_v35, %v2933_v22 }
 0x4a8   : > { %v4755_v55 = vpop.eup %4754  ;;  %v2170_v52 = vadd.f32 %v2169_v58, %v5778_v41  ;;  %v2871_v11 = vmul.f32 0.5, %v4753_v33  ;;  %v2751_v18 = vmul.f32 0.5, %v2670_v49  ;;  %v2675_v50 = vpop.f32.mrf.mxu0  ;;  %v2996_v30 = vsub.f32 %v6177_v61, %v2932_v19  ;;  %3551 = vadd.xlane.f32.xlu1 %v6318_v31  ;;  %3557 = vadd.xlane.f32.xlu0 %v6321_v57  ;;  %v4966_v58 = vld [vmem:[%s5239_s24 + $0xe8] sm:$0xff] }
 0x4a9   : > { %v2934_v36 = vadd.f32 0.5, %v2870_v2  ;;  %v2872_v3 = vmul.f32 0.5, %v4755_v55  ;;  %v2752_v54 = vmul.f32 0.5, %v2674_v23  ;;  %v2676_v43 = vadd.f32 %v2675_v50, %v5938_v14  ;;  %3190 = vmatprep.mubr.f32.mxu1 %v2997_v16 }
 0x4aa   : > { %v4757_v35 = vpop.eup %4756  ;;  %v2234_v22 = vmul.f32 0.5, %v2168_v44  ;;  %v2935_v53 = vadd.f32 0.5, %v2871_v11  ;;  %4774 = vtanh.f32 %v2751_v18  ;;  %v2679_v41 = vpop.f32.mrf.mxu0  ;;  %v6334_v49 = vmul.f32 %v4966_v58, %v4964_v56 }
 0x4ab   : > { %v6336_v8 = vpop.eup %4758  ;;  %v2353_v61 = vmul.f32 0.5, %v6209_v25  ;;  %v2873_v19 = vmul.f32 0.5, %v4757_v35  ;;  %4776 = vtanh.f32 %v2752_v54  ;;  %v2753_v2 = vmul.f32 0.5, %v2676_v43  ;;  %3191 = vmatmul.mubr.f32.gmra.mxu1 %v2996_v30  ;;  %v4967_v54 = vld [vmem:[%s5239_s24 + $0xf8] sm:$0xff] }
 0x4ac   : > { %v6339_v17 = vpop.eup %4760  ;;  %v2235_v48 = vmul.f32 0.5, %v2170_v52  ;;  %v2936_v33 = vadd.f32 0.5, %v2872_v3  ;;  %v2680_v44 = vadd.f32 %v2679_v41, %v5928_v6  ;;  %v2681_v23 = vpop.f32.mrf.mxu0  ;;  %v2999_v16 = vsub.f32 %v6205_v59, %v2935_v53  ;;  %3555 = vadd.xlane.f32.xlu1 %v6334_v49 }
 0x4ad   : > { %v4763_v55 = vpop.eup %4762  ;;  %v2937_v11 = vadd.f32 0.5, %v2873_v19  ;;  %4778 = vtanh.f32 %v2753_v2  ;;  %v2682_v25 = vadd.f32 %v2681_v23, %v5938_v14  ;;  %v2998_v18 = vsub.f32 %v6202_v4, %v2934_v36 }
 0x4ae   : > { %v4765_v50 = vpop.eup %4764  ;;  %4780 = vtanh.f32 %v2234_v22  ;;  %v2874_v30 = vmul.f32 0.5, %v4763_v55  ;;  %v2754_v52 = vmul.f32 0.5, %v2680_v44  ;;  %3195 = vmatprep.mubr.f32.mxu1 %v2999_v16  ;;  %v2685_v3 = vpop.f32.mrf.mxu0  ;;  %v6347_v43 = vmul.f32 %v4967_v54, %v4964_v56 }
 0x4af   : > { %v2875_v35 = vmul.f32 0.5, %v4765_v50  ;;  %v2755_v59 = vmul.f32 0.5, %v2682_v25  ;;  %v2686_v53 = vadd.f32 %v2685_v3, %v5928_v6  ;;  %3196 = vmatmul.mubr.f32.gmra.mxu1 %v2998_v18  ;;  %v3001_v41 = vsub.f32 %v6226_v24, %v2937_v11 }
 0x4b0   : > { %v4767_v58 = vpop.eup %4766  ;;  %v2414_v19 = vadd.f32 0.5, %v6229_v63  ;;  %v2938_v4 = vadd.f32 0.5, %v2874_v30  ;;  %4782 = vtanh.f32 %v2754_v52  ;;  %v2687_v36 = vpop.f32.mrf.mxu0  ;;  %v3000_v22 = vsub.f32 %v6218_v60, %v2936_v33  ;;  %3559 = vadd.xlane.f32.xlu1 %v6347_v43 }
 0x4b1   : > { %v2939_v2 = vadd.f32 0.5, %v2875_v35  ;;  %v2876_v56 = vmul.f32 0.5, %v4767_v58  ;;  %4784 = vtanh.f32 %v2755_v59  ;;  %v2756_v44 = vmul.f32 0.5, %v2686_v53  ;;  %3200 = vmatprep.mubr.f32.mxu1 %v3001_v41 }
 0x4b2   : > { %v4769_v23 = vpop.eup %4768  ;;  %v2415_v16 = vadd.f32 0.5, %v6324_v20  ;;  %v2352_v24 = vmul.f32 0.5, %v6198_v1  ;;  %4786 = vtanh.f32 %v2235_v48  ;;  %v2688_v63 = vadd.f32 %v2687_v36, %v5938_v14  ;;  %v2691_v55 = vpop.f32.mrf.mxu0 }
 0x4b3   : > { %v6357_v11 = vpop.eup %4770  ;;  %v2417_v25 = vadd.f32 0.5, %v2353_v61  ;;  %v2877_v60 = vmul.f32 0.5, %v4769_v23  ;;  %4788 = vtanh.f32 %v2756_v44  ;;  %v2692_v33 = vadd.f32 %v2691_v55, %v5928_v6  ;;  %3201 = vmatmul.mubr.f32.gmra.mxu1 %v3000_v22 }
 0x4b4   : > { %v4773_v18 = vpop.eup %4772  ;;  %v2940_v50 = vadd.f32 0.5, %v2876_v56  ;;  %v2757_v30 = vmul.f32 0.5, %v2688_v63  ;;  %v2693_v52 = vpop.f32.mrf.mxu0  ;;  %v3003_v3 = vsub.f32 %v2415_v16, %v2939_v2  ;;  %v3002_v20 = vsub.f32 %v2414_v19, %v2938_v4 }
 0x4b5   : > { %v2941_v54 = vadd.f32 0.5, %v2877_v60  ;;  %v2878_v1 = vmul.f32 0.5, %v4773_v18  ;;  %v2758_v48 = vmul.f32 0.5, %v2692_v33  ;;  %v2694_v35 = vadd.f32 %v2693_v52, %v5938_v14 }
 0x4b6   : > { %v2416_v59 = vadd.f32 0.5, %v2352_v24  ;;  %v2355_v53 = vmul.f32 0.5, %v6231_v32  ;;  %4790 = vtanh.f32 %v2757_v30  ;;  %3205 = vmatprep.mubr.f32.mxu1 %v3003_v3  ;;  %v2354_v6 = vmul.f32 0.5, %v6223_v29 }
 0x4b7   : > { %v4775_v61 = vpop.eup %4774  ;;  %4792 = vtanh.f32 %v2758_v48  ;;  %v2759_v41 = vmul.f32 0.5, %v2694_v35  ;;  %3206 = vmatmul.mubr.f32.gmra.mxu1 %v3002_v20  ;;  %v3005_v58 = vsub.f32 %v2417_v25, %v2941_v54  ;;  %v2357_v19 = vmul.f32 0.5, %v6277_v37 }
 0x4b8   : > { %v4777_v36 = vpop.eup %4776  ;;  %v2879_v4 = vmul.f32 0.5, %v4775_v61  ;;  %v2942_v22 = vadd.f32 0.5, %v2878_v1  ;;  %v3004_v14 = vsub.f32 %v2416_v59, %v2940_v50  ;;  %v2419_v32 = vadd.f32 0.5, %v2355_v53 }
 0x4b9   : > { %v2880_v2 = vmul.f32 0.5, %v4777_v36  ;;  %4794 = vtanh.f32 %v2759_v41  ;;  %3210 = vmatprep.mubr.f32.mxu1 %v3005_v58  ;;  %v2418_v16 = vadd.f32 0.5, %v2354_v6  ;;  %v2356_v29 = vmul.f32 0.5, %v6246_v38 }
 0x4ba   : > { %v4779_v56 = vpop.eup %4778  ;;  %v2943_v44 = vadd.f32 0.5, %v2879_v4  ;;  %v2359_v63 = vmul.f32 0.5, %v6336_v8  ;;  %v2421_v37 = vadd.f32 0.5, %v2357_v19  ;;  %v2358_v20 = vmul.f32 0.5, %v6308_v13 }
 0x4bb   : > { %v4781_v23 = vpop.eup %4780  ;;  %v2881_v24 = vmul.f32 0.5, %v4779_v56  ;;  %3211 = vmatmul.mubr.f32.gmra.mxu1 %v3004_v14  ;;  %v2944_v60 = vadd.f32 0.5, %v2880_v2  ;;  %v3006_v18 = vsub.f32 %v2418_v16, %v2942_v22  ;;  %v2420_v3 = vadd.f32 0.5, %v2356_v29 }
 0x4bc   : > { %v3007_v55 = vsub.f32 %v2419_v32, %v2943_v44  ;;  %v2423_v48 = vadd.f32 0.5, %v2359_v63  ;;  %v2361_v61 = vmul.f32 0.5, %v6357_v11  ;;  %v2422_v41 = vadd.f32 0.5, %v2358_v20 }
 0x4bd   : > { %v4783_v25 = vpop.eup %4782  ;;  %v2945_v33 = vadd.f32 0.5, %v2881_v24  ;;  %v3008_v53 = vsub.f32 %v2420_v3, %v2944_v60  ;;  %v2360_v58 = vmul.f32 0.5, %v6339_v17  ;;  %v2362_v29 = vmul.f32 0.5, %v4781_v23 }
 0x4be   : > { %v4785_v30 = vpop.eup %4784  ;;  %v2882_v52 = vmul.f32 0.5, %v4783_v25  ;;  %3215 = vmatprep.mubr.f32.mxu1 %v3007_v55  ;;  %v2425_v32 = vadd.f32 0.5, %v2361_v61 }
 0x4bf   : > { %v4787_v50 = vpop.eup %4786  ;;  %v2883_v54 = vmul.f32 0.5, %v4785_v30  ;;  %3216 = vmatmul.mubr.f32.gmra.mxu1 %v3006_v18  ;;  %v3009_v38 = vsub.f32 %v2421_v37, %v2945_v33  ;;  %v2424_v16 = vadd.f32 0.5, %v2360_v58  ;;  %v2426_v37 = vadd.f32 0.5, %v2362_v29  ;;  %v6369_v18 = vld [vmem:[#allocation5 + $0x603] ss:$0 sm:$0xff] }
 0x4c0   : > { %v4789_v1 = vpop.eup %4788  ;;  %v2946_v35 = vadd.f32 0.5, %v2882_v52  ;;  %v2363_v4 = vmul.f32 0.5, %v4787_v50 }
 0x4c1   : > { %v2947_v8 = vadd.f32 0.5, %v2883_v54  ;;  %v2884_v59 = vmul.f32 0.5, %v4789_v1  ;;  %3220 = vmatprep.mubr.f32.mxu1 %v3009_v38 }
 0x4c2   : > { %v3010_v14 = vsub.f32 %v2422_v41, %v2946_v35  ;;  %v2427_v63 = vadd.f32 0.5, %v2363_v4 }
 0x4c3   : > { %v4791_v6 = vpop.eup %4790  ;;  %3221 = vmatmul.mubr.f32.gmra.mxu1 %v3008_v53  ;;  %v3011_v36 = vsub.f32 %v2423_v48, %v2947_v8  ;;  %v2948_v22 = vadd.f32 0.5, %v2884_v59 }
 0x4c4   : > { %v4793_v19 = vpop.eup %4792  ;;  %v2885_v13 = vmul.f32 0.5, %v4791_v6 }
 0x4c5   : > { %v2886_v2 = vmul.f32 0.5, %v4793_v19  ;;  %3225 = vmatprep.mubr.f32.mxu1 %v3011_v36  ;;  %v3012_v25 = vsub.f32 %v2424_v16, %v2948_v22 }
 0x4c6   : > { %v4795_v56 = vpop.eup %4794  ;;  %v2949_v44 = vadd.f32 0.5, %v2885_v13 }
 0x4c7   : > { %v2887_v24 = vmul.f32 0.5, %v4795_v56  ;;  %3226 = vmatmul.mubr.f32.gmra.mxu1 %v3010_v14  ;;  %v2950_v55 = vadd.f32 0.5, %v2886_v2 }
 0x4c8   : > { %v3013_v11 = vsub.f32 %v2425_v32, %v2949_v44  ;;  %v6678_v44 = vld [vmem:[#allocation18_spill] sm:$0xff] }
 0x4c9   : > { %v2951_v17 = vadd.f32 0.5, %v2887_v24  ;;  %v3014_v33 = vsub.f32 %v2426_v37, %v2950_v55 }
 0x4ca   : > { %3230 = vmatprep.mubr.f32.mxu1 %v3013_v11 }
 0x4cb   : > { %3231 = vmatmul.mubr.f32.gmra.mxu1 %v3012_v25  ;;  %v3015_v60 = vsub.f32 %v2427_v63, %v2951_v17 }
 0x4cd   : > { %3235 = vmatprep.mubr.f32.mxu1 %v3015_v60 }
 0x4cf   : > { %3236 = vmatmul.mubr.f32.gmra.mxu1 %v3014_v33 }
 0x512   : > { %v3082_v30 = vpop.f32.mrf.mxu1 }
 0x513   : > { %v3083_v52 = vadd.f32 %v3082_v30, %v6369_v18 }
 0x514   : > { %v3084_v23 = vpop.f32.mrf.mxu1 }
 0x515   : > { %v3241_v50 = vmul.f32 0.5, %v3083_v52 }
 0x517   : > { %4796 = vtanh.f32 %v3241_v50  ;;  %v3087_v3 = vpop.f32.mrf.mxu1 }
 0x518   : > { %v3088_v20 = vadd.f32 %v3087_v3, %v6369_v18 }
 0x519   : > { %v3089_v54 = vpop.f32.mrf.mxu1 }
 0x51a   : > { %v3242_v38 = vmul.f32 0.5, %v3088_v20  ;;  %v6679_v54 = vld [vmem:[#allocation19_spill] sm:$0xff] }
 0x51b   : > { %v3092_v1 = vpop.f32.mrf.mxu1 }
 0x51c   : > { %4798 = vtanh.f32 %v3242_v38  ;;  %v3093_v48 = vadd.f32 %v3092_v1, %v6369_v18 }
 0x51d   : > { %v3094_v35 = vpop.f32.mrf.mxu1 }
 0x51e   : > { %v3243_v8 = vmul.f32 0.5, %v3093_v48 }
 0x51f   : > { %v3097_v59 = vpop.f32.mrf.mxu1 }
 0x520   : > { %4800 = vtanh.f32 %v3243_v8  ;;  %v3098_v53 = vadd.f32 %v3097_v59, %v6369_v18 }
 0x521   : > { %v3099_v61 = vpop.f32.mrf.mxu1 }
 0x522   : > { %v3244_v6 = vmul.f32 0.5, %v3098_v53 }
 0x523   : > { %v3102_v41 = vpop.f32.mrf.mxu1 }
 0x524   : > { %v4797_v58 = vpop.eup %4796  ;;  %4802 = vtanh.f32 %v3244_v6  ;;  %v3103_v36 = vadd.f32 %v3102_v41, %v6369_v18 }
 0x525   : > { %v3104_v19 = vpop.f32.mrf.mxu1  ;;  %v3305_v13 = vmul.f32 0.5, %v4797_v58 }
 0x526   : > { %v3245_v4 = vmul.f32 0.5, %v3103_v36 }
 0x527   : > { %v3107_v22 = vpop.f32.mrf.mxu1  ;;  %v3337_v2 = vadd.f32 0.5, %v3305_v13 }
 0x528   : > { %4804 = vtanh.f32 %v3245_v4  ;;  %v3108_v14 = vadd.f32 %v3107_v22, %v6369_v18  ;;  %v6680_v22 = vld [vmem:[#allocation20_spill] sm:$0xff] }
 0x529   : > { %v4799_v56 = vpop.eup %4798  ;;  %v3109_v32 = vpop.f32.mrf.mxu1  ;;  %v3401_v16 = vmul.f32 %v6678_v44, %v3337_v2 }
 0x52a   : > { %v3246_v29 = vmul.f32 0.5, %v3108_v14  ;;  %v3306_v24 = vmul.f32 0.5, %v4799_v56 }
 0x52b   : > { %v3112_v11 = vpop.f32.mrf.mxu1  ;;  %3433 = vadd.xlane.f32.xlu0 %v3401_v16 }
 0x52c   : > { %4806 = vtanh.f32 %v3246_v29  ;;  %v3113_v63 = vadd.f32 %v3112_v11, %v6369_v18  ;;  %v3338_v55 = vadd.f32 0.5, %v3306_v24 }
 0x52d   : > { %v4801_v17 = vpop.eup %4800  ;;  %v3114_v25 = vpop.f32.mrf.mxu1 }
 0x52e   : > { %v3247_v37 = vmul.f32 0.5, %v3113_v63  ;;  %v3402_v60 = vmul.f32 %v6028_v47, %v3338_v55  ;;  %v3307_v33 = vmul.f32 0.5, %v4801_v17 }
 0x52f   : > { %v3117_v30 = vpop.f32.mrf.mxu1 }
 0x530   : > { %4808 = vtanh.f32 %v3247_v37  ;;  %v3118_v52 = vadd.f32 %v3117_v30, %v6369_v18  ;;  %3435 = vadd.xlane.f32.xlu0 %v3402_v60  ;;  %v3339_v23 = vadd.f32 0.5, %v3307_v33 }
 0x531   : > { %v4803_v50 = vpop.eup %4802  ;;  %v3119_v3 = vpop.f32.mrf.mxu1 }
 0x532   : > { %v3248_v20 = vmul.f32 0.5, %v3118_v52  ;;  %v3403_v38 = vmul.f32 %v6679_v54, %v3339_v23  ;;  %v3308_v1 = vmul.f32 0.5, %v4803_v50  ;;  %v6681_v54 = vld [vmem:[#allocation21_spill] sm:$0xff] }
 0x533   : > { %v3122_v48 = vpop.f32.mrf.mxu1 }
 0x534   : > { %4810 = vtanh.f32 %v3248_v20  ;;  %v3123_v35 = vadd.f32 %v3122_v48, %v6369_v18  ;;  %3437 = vadd.xlane.f32.xlu1 %v3403_v38  ;;  %v3340_v8 = vadd.f32 0.5, %v3308_v1 }
 0x535   : > { %v4805_v47 = vpop.eup %4804  ;;  %v3124_v59 = vpop.f32.mrf.mxu1 }
 0x536   : > { %v3249_v53 = vmul.f32 0.5, %v3123_v35  ;;  %v3404_v61 = vmul.f32 %v6038_v27, %v3340_v8  ;;  %v3309_v6 = vmul.f32 0.5, %v4805_v47 }
 0x537   : > { %v3127_v41 = vpop.f32.mrf.mxu1 }
 0x538   : > { %4812 = vtanh.f32 %v3249_v53  ;;  %v3128_v58 = vadd.f32 %v3127_v41, %v6369_v18  ;;  %3439 = vadd.xlane.f32.xlu1 %v3404_v61  ;;  %v3341_v36 = vadd.f32 0.5, %v3309_v6  ;;  %v6682_v53 = vld [vmem:[#allocation22_spill] sm:$0xff] }
 0x539   : > { %v4807_v19 = vpop.eup %4806  ;;  %v3129_v13 = vpop.f32.mrf.mxu1 }
 0x53a   : > { %v3250_v4 = vmul.f32 0.5, %v3128_v58  ;;  %v3405_v2 = vmul.f32 %v6680_v22, %v3341_v36  ;;  %v3310_v14 = vmul.f32 0.5, %v4807_v19 }
 0x53b   : > { %v3132_v56 = vpop.f32.mrf.mxu1 }
 0x53c   : > { %4814 = vtanh.f32 %v3250_v4  ;;  %v3133_v32 = vadd.f32 %v3132_v56, %v6369_v18  ;;  %3441 = vadd.xlane.f32.xlu0 %v3405_v2  ;;  %v3342_v44 = vadd.f32 0.5, %v3310_v14 }
 0x53d   : > { %v4809_v27 = vpop.eup %4808  ;;  %v3134_v16 = vpop.f32.mrf.mxu1 }
 0x53e   : > { %v3251_v29 = vmul.f32 0.5, %v3133_v32  ;;  %v3406_v24 = vmul.f32 %v6058_v9, %v3342_v44  ;;  %v3311_v11 = vmul.f32 0.5, %v4809_v27 }
 0x53f   : > { %v3137_v63 = vpop.f32.mrf.mxu1 }
 0x540   : > { %4816 = vtanh.f32 %v3251_v29  ;;  %v3138_v55 = vadd.f32 %v3137_v63, %v6369_v18  ;;  %3443 = vadd.xlane.f32.xlu1 %v3406_v24  ;;  %v3343_v17 = vadd.f32 0.5, %v3311_v11 }
 0x541   : > { %v4811_v25 = vpop.eup %4810  ;;  %v3139_v37 = vpop.f32.mrf.mxu1 }
 0x542   : > { %v3252_v60 = vmul.f32 0.5, %v3138_v55  ;;  %v3407_v33 = vmul.f32 %v6070_v10, %v3343_v17  ;;  %v3312_v30 = vmul.f32 0.5, %v4811_v25 }
 0x543   : > { %v3142_v52 = vpop.f32.mrf.mxu1 }
 0x544   : > { %4818 = vtanh.f32 %v3252_v60  ;;  %v3143_v23 = vadd.f32 %v3142_v52, %v6369_v18  ;;  %3445 = vadd.xlane.f32.xlu0 %v3407_v33  ;;  %v3344_v50 = vadd.f32 0.5, %v3312_v30 }
 0x545   : > { %v4813_v9 = vpop.eup %4812  ;;  %v3144_v3 = vpop.f32.mrf.mxu1 }
 0x546   : > { %v3253_v20 = vmul.f32 0.5, %v3143_v23  ;;  %v3408_v38 = vmul.f32 %v6681_v54, %v3344_v50  ;;  %v3313_v1 = vmul.f32 0.5, %v4813_v9  ;;  %v6683_v3 = vld [vmem:[#allocation23_spill] sm:$0xff] }
 0x547   : > { %v3147_v48 = vpop.f32.mrf.mxu1 }
 0x548   : > { %4820 = vtanh.f32 %v3253_v20  ;;  %v3148_v35 = vadd.f32 %v3147_v48, %v6369_v18  ;;  %3447 = vadd.xlane.f32.xlu1 %v3408_v38  ;;  %v3345_v8 = vadd.f32 0.5, %v3313_v1 }
 0x549   : > { %v4815_v10 = vpop.eup %4814  ;;  %v3149_v47 = vpop.f32.mrf.mxu1 }
 0x54a   : > { %v3254_v59 = vmul.f32 0.5, %v3148_v35  ;;  %v3409_v61 = vmul.f32 %v6682_v53, %v3345_v8  ;;  %v3314_v6 = vmul.f32 0.5, %v4815_v10  ;;  %v6407_v10 = vpop.xlane.xlu1 %3499 }
 0x54b   : > { %v3152_v41 = vpop.f32.mrf.mxu1 }
 0x54c   : > { %4822 = vtanh.f32 %v3254_v59  ;;  %v3153_v58 = vadd.f32 %v3152_v41, %v6369_v18  ;;  %3449 = vadd.xlane.f32.xlu0 %v3409_v61  ;;  %v3346_v36 = vadd.f32 0.5, %v3314_v6  ;;  %v6684_v59 = vld [vmem:[#allocation24_spill] sm:$0xff] }
 0x54d   : > { %v4817_v19 = vpop.eup %4816  ;;  %v3154_v13 = vpop.f32.mrf.mxu1 }
 0x54e   : > { %v3255_v4 = vmul.f32 0.5, %v3153_v58  ;;  %v3410_v22 = vmul.f32 %v6094_v39, %v3346_v36  ;;  %v3315_v2 = vmul.f32 0.5, %v4817_v19  ;;  %v6399_v39 = vpop.xlane.xlu0 %3497 }
 0x54f   : > { %v3157_v14 = vpop.f32.mrf.mxu1 }
 0x550   : > { %4824 = vtanh.f32 %v3255_v4  ;;  %v3158_v56 = vadd.f32 %v3157_v14, %v6369_v18  ;;  %3451 = vadd.xlane.f32.xlu1 %v3410_v22  ;;  %v3347_v32 = vadd.f32 0.5, %v3315_v2 }
 0x551   : > { %v4819_v44 = vpop.eup %4818  ;;  %v3159_v27 = vpop.f32.mrf.mxu1 }
 0x552   : > { %v3256_v16 = vmul.f32 0.5, %v3158_v56  ;;  %v3411_v29 = vmul.f32 %v6103_v28, %v3347_v32  ;;  %v3316_v24 = vmul.f32 0.5, %v4819_v44  ;;  %v6404_v38 = vpop.xlane.xlu0 %3501  ;;  %v6414_v56 = vpop.xlane.xlu1 %3503 }
 0x553   : > { %v3162_v11 = vpop.f32.mrf.mxu1 }
 0x554   : > { %4826 = vtanh.f32 %v3256_v16  ;;  %v3163_v63 = vadd.f32 %v3162_v11, %v6369_v18  ;;  %3453 = vadd.xlane.f32.xlu0 %v3411_v29  ;;  %v3348_v55 = vadd.f32 0.5, %v3316_v24 }
 0x555   : > { %v4821_v17 = vpop.eup %4820  ;;  %v3164_v25 = vpop.f32.mrf.mxu1 }
 0x556   : > { %v3257_v37 = vmul.f32 0.5, %v3163_v63  ;;  %v3412_v60 = vmul.f32 %v6113_v62, %v3348_v55  ;;  %v3317_v33 = vmul.f32 0.5, %v4821_v17  ;;  %v6411_v36 = vpop.xlane.xlu0 %3505 }
 0x557   : > { %v3167_v30 = vpop.f32.mrf.mxu1 }
 0x558   : > { %4828 = vtanh.f32 %v3257_v37  ;;  %v3168_v52 = vadd.f32 %v3167_v30, %v6369_v18  ;;  %3455 = vadd.xlane.f32.xlu1 %v3412_v60  ;;  %v3349_v28 = vadd.f32 0.5, %v3317_v33  ;;  %v6421_v60 = vpop.xlane.xlu1 %3507  ;;  %v6685_v30 = vld [vmem:[#allocation25_spill] sm:$0xff] }
 0x559   : > { %v4823_v23 = vpop.eup %4822  ;;  %v3169_v50 = vpop.f32.mrf.mxu1 }
 0x55a   : > { %v3258_v9 = vmul.f32 0.5, %v3168_v52  ;;  %v3413_v20 = vmul.f32 %v6683_v3, %v3349_v28  ;;  %v3318_v54 = vmul.f32 0.5, %v4823_v23  ;;  %v6418_v63 = vpop.xlane.xlu0 %3509 }
 0x55b   : > { %v3172_v1 = vpop.f32.mrf.mxu1 }
 0x55c   : > { %4830 = vtanh.f32 %v3258_v9  ;;  %v3173_v48 = vadd.f32 %v3172_v1, %v6369_v18  ;;  %3457 = vadd.xlane.f32.xlu0 %v3413_v20  ;;  %v3350_v62 = vadd.f32 0.5, %v3318_v54 }
 0x55d   : > { %v4825_v35 = vpop.eup %4824  ;;  %v3174_v8 = vpop.f32.mrf.mxu1 }
 0x55e   : > { %v3259_v47 = vmul.f32 0.5, %v3173_v48  ;;  %v3414_v53 = vmul.f32 %v6684_v59, %v3350_v62  ;;  %v3319_v61 = vmul.f32 0.5, %v4825_v35  ;;  %v6425_v9 = vpop.xlane.xlu0 %3513  ;;  %v6428_v35 = vpop.xlane.xlu1 %3511 }
 0x55f   : > { %v3177_v6 = vpop.f32.mrf.mxu1 }
 0x560   : > { %4832 = vtanh.f32 %v3259_v47  ;;  %v3178_v41 = vadd.f32 %v3177_v6, %v6369_v18  ;;  %3459 = vadd.xlane.f32.xlu1 %v3414_v53  ;;  %v3351_v58 = vadd.f32 0.5, %v3319_v61 }
 0x561   : > { %v4827_v19 = vpop.eup %4826  ;;  %v3179_v13 = vpop.f32.mrf.mxu1 }
 0x562   : > { %v3260_v4 = vmul.f32 0.5, %v3178_v41  ;;  %v3415_v22 = vmul.f32 %v6137_v34, %v3351_v58  ;;  %v3320_v2 = vmul.f32 0.5, %v4827_v19  ;;  %v6432_v58 = vpop.xlane.xlu0 %3517 }
 0x563   : > { %v3182_v14 = vpop.f32.mrf.mxu1 }
 0x564   : > { %4834 = vtanh.f32 %v3260_v4  ;;  %v3183_v32 = vadd.f32 %v3182_v14, %v6369_v18  ;;  %3461 = vadd.xlane.f32.xlu0 %v3415_v22  ;;  %v3352_v44 = vadd.f32 0.5, %v3320_v2  ;;  %v6435_v2 = vpop.xlane.xlu1 %3515 }
 0x565   : > { %v4829_v27 = vpop.eup %4828  ;;  %v3184_v16 = vpop.f32.mrf.mxu1 }
 0x566   : > { %v3261_v29 = vmul.f32 0.5, %v3183_v32  ;;  %v3416_v24 = vmul.f32 %v6146_v45, %v3352_v44  ;;  %v3321_v11 = vmul.f32 0.5, %v4829_v27 }
 0x567   : > { %v3187_v55 = vpop.f32.mrf.mxu1 }
 0x568   : > { %4836 = vtanh.f32 %v3261_v29  ;;  %v3188_v34 = vadd.f32 %v3187_v55, %v6369_v18  ;;  %3463 = vadd.xlane.f32.xlu1 %v3416_v24  ;;  %v3353_v17 = vadd.f32 0.5, %v3321_v11  ;;  %v6439_v29 = vpop.xlane.xlu0 %3521 }
 0x569   : > { %v4831_v25 = vpop.eup %4830  ;;  %v3189_v37 = vpop.f32.mrf.mxu1 }
 0x56a   : > { %v3262_v33 = vmul.f32 0.5, %v3188_v34  ;;  %v3417_v52 = vmul.f32 %v6685_v30, %v3353_v17  ;;  %v3322_v28 = vmul.f32 0.5, %v4831_v25  ;;  %v6442_v37 = vpop.xlane.xlu1 %3519 }
 0x56b   : > { %v3192_v23 = vpop.f32.mrf.mxu1 }
 0x56c   : > { %4838 = vtanh.f32 %v3262_v33  ;;  %v3193_v45 = vadd.f32 %v3192_v23, %v6369_v18  ;;  %3465 = vadd.xlane.f32.xlu0 %v3417_v52  ;;  %v3354_v50 = vadd.f32 0.5, %v3322_v28 }
 0x56d   : > { %v4833_v3 = vpop.eup %4832  ;;  %v3194_v20 = vpop.f32.mrf.mxu1 }
 0x56e   : > { %v3263_v54 = vmul.f32 0.5, %v3193_v45  ;;  %v3418_v1 = vmul.f32 %v6240_v0, %v3354_v50  ;;  %v3323_v48 = vmul.f32 0.5, %v4833_v3  ;;  %v6446_v50 = vpop.xlane.xlu0 %3525 }
 0x56f   : > { %v3197_v62 = vpop.f32.mrf.mxu1 }
 0x570   : > { %4840 = vtanh.f32 %v3263_v54  ;;  %v3198_v8 = vadd.f32 %v3197_v62, %v6369_v18  ;;  %3467 = vadd.xlane.f32.xlu1 %v3418_v1  ;;  %v3355_v47 = vadd.f32 0.5, %v3323_v48  ;;  %v6449_v48 = vpop.xlane.xlu1 %3523 }
 0x571   : > { %v4835_v59 = vpop.eup %4834  ;;  %v3199_v53 = vpop.f32.mrf.mxu1 }
 0x572   : > { %v3264_v61 = vmul.f32 0.5, %v3198_v8  ;;  %v3419_v6 = vmul.f32 %v6165_v51, %v3355_v47  ;;  %v3324_v41 = vmul.f32 0.5, %v4835_v59 }
 0x573   : > { %v3202_v19 = vpop.f32.mrf.mxu1 }
 0x574   : > { %4842 = vtanh.f32 %v3264_v61  ;;  %v3203_v0 = vadd.f32 %v3202_v19, %v6369_v18  ;;  %3469 = vadd.xlane.f32.xlu0 %v3419_v6  ;;  %v3356_v13 = vadd.f32 0.5, %v3324_v41  ;;  %v6453_v61 = vpop.xlane.xlu0 %3529 }
 0x575   : > { %v4837_v4 = vpop.eup %4836  ;;  %v3204_v22 = vpop.f32.mrf.mxu1 }
 0x576   : > { %v3265_v14 = vmul.f32 0.5, %v3203_v0  ;;  %v3420_v32 = vmul.f32 %v6257_v26, %v3356_v13  ;;  %v3325_v44 = vmul.f32 0.5, %v4837_v4  ;;  %v6456_v22 = vpop.xlane.xlu1 %3527 }
 0x577   : > { %v3207_v27 = vpop.f32.mrf.mxu1 }
 0x578   : > { %4844 = vtanh.f32 %v3265_v14  ;;  %v3208_v51 = vadd.f32 %v3207_v27, %v6369_v18  ;;  %3471 = vadd.xlane.f32.xlu1 %v3420_v32  ;;  %v3357_v16 = vadd.f32 0.5, %v3325_v44 }
 0x579   : > { %v4839_v24 = vpop.eup %4838  ;;  %v3209_v11 = vpop.f32.mrf.mxu1 }
 0x57a   : > { %v3266_v55 = vmul.f32 0.5, %v3208_v51  ;;  %v3421_v34 = vmul.f32 %v6244_v42, %v3357_v16  ;;  %v3326_v17 = vmul.f32 0.5, %v4839_v24  ;;  %v6460_v24 = vpop.xlane.xlu0 %3533 }
 0x57b   : > { %v3212_v25 = vpop.f32.mrf.mxu1 }
 0x57c   : > { %4846 = vtanh.f32 %v3266_v55  ;;  %v3213_v26 = vadd.f32 %v3212_v25, %v6369_v18  ;;  %3473 = vadd.xlane.f32.xlu0 %v3421_v34  ;;  %v3358_v33 = vadd.f32 0.5, %v3326_v17  ;;  %v6463_v25 = vpop.xlane.xlu1 %3531 }
 0x57d   : > { %v4841_v30 = vpop.eup %4840  ;;  %v3214_v52 = vpop.f32.mrf.mxu1 }
 0x57e   : > { %v3267_v28 = vmul.f32 0.5, %v3213_v26  ;;  %v3422_v23 = vmul.f32 %v6271_v46, %v3358_v33  ;;  %v3327_v45 = vmul.f32 0.5, %v4841_v30 }
 0x57f   : > { %v3217_v3 = vpop.f32.mrf.mxu1 }
 0x580   : > { %4848 = vtanh.f32 %v3267_v28  ;;  %v3218_v42 = vadd.f32 %v3217_v3, %v6369_v18  ;;  %3475 = vadd.xlane.f32.xlu1 %v3422_v23  ;;  %v3359_v20 = vadd.f32 0.5, %v3327_v45  ;;  %v6467_v23 = vpop.xlane.xlu0 %3537 }
 0x581   : > { %v4843_v54 = vpop.eup %4842  ;;  %v3219_v1 = vpop.f32.mrf.mxu1 }
 0x582   : > { %v3268_v62 = vmul.f32 0.5, %v3218_v42  ;;  %v3423_v8 = vmul.f32 %v6261_v15, %v3359_v20  ;;  %v3328_v47 = vmul.f32 0.5, %v4843_v54  ;;  %v6470_v1 = vpop.xlane.xlu1 %3535 }
 0x583   : > { %v3222_v59 = vpop.f32.mrf.mxu1 }
 0x584   : > { %4850 = vtanh.f32 %v3268_v62  ;;  %v3223_v46 = vadd.f32 %v3222_v59, %v6369_v18  ;;  %3477 = vadd.xlane.f32.xlu0 %v3423_v8  ;;  %v3360_v53 = vadd.f32 0.5, %v3328_v47 }
 0x585   : > { %v4845_v6 = vpop.eup %4844  ;;  %v3224_v41 = vpop.f32.mrf.mxu1 }
 0x586   : > { %v3269_v19 = vmul.f32 0.5, %v3223_v46  ;;  %v3424_v0 = vmul.f32 %v6288_v7, %v3360_v53  ;;  %v3329_v13 = vmul.f32 0.5, %v4845_v6  ;;  %v6475_v53 = vpop.xlane.xlu1 %3539 }
 0x587   : > { %v3227_v4 = vpop.f32.mrf.mxu1 }
 0x588   : > { %4852 = vtanh.f32 %v3269_v19  ;;  %v3228_v15 = vadd.f32 %v3227_v4, %v6369_v18  ;;  %3479 = vadd.xlane.f32.xlu1 %v3424_v0  ;;  %v3361_v14 = vadd.f32 0.5, %v3329_v13 }
 0x589   : > { %v4847_v32 = vpop.eup %4846  ;;  %v3229_v44 = vpop.f32.mrf.mxu1 }
 0x58a   : > { %v3270_v27 = vmul.f32 0.5, %v3228_v15  ;;  %v3425_v51 = vmul.f32 %v6275_v21, %v3361_v14  ;;  %v3330_v16 = vmul.f32 0.5, %v4847_v32  ;;  %v3561_v32 = vmax.f32 %v6399_v39, 1.0 }
 0x58b   : > { %v3232_v11 = vpop.f32.mrf.mxu1  ;;  %v3563_v39 = vmax.f32 %v6404_v38, 1.0 }
 0x58c   : > { %4854 = vtanh.f32 %v3270_v27  ;;  %v3233_v7 = vadd.f32 %v3232_v11, %v6369_v18  ;;  %3481 = vadd.xlane.f32.xlu0 %v3425_v51  ;;  %v3362_v55 = vadd.f32 0.5, %v3330_v16 }
 0x58d   : > { %v4849_v34 = vpop.eup %4848  ;;  %v3234_v17 = vpop.f32.mrf.mxu1 }
 0x58e   : > { %v3271_v26 = vmul.f32 0.5, %v3233_v7  ;;  %v3426_v33 = vmul.f32 %v6302_v40, %v3362_v55  ;;  %v3331_v30 = vmul.f32 0.5, %v4849_v34  ;;  %v3564_v55 = vmax.f32 %v6414_v56, 1.0 }
 0x58f   : > { %v3237_v52 = vpop.f32.mrf.mxu1 }
 0x590   : > { %4856 = vtanh.f32 %v3271_v26  ;;  %v3238_v21 = vadd.f32 %v3237_v52, %v6369_v18  ;;  %3483 = vadd.xlane.f32.xlu1 %v3426_v33  ;;  %v3363_v28 = vadd.f32 0.5, %v3331_v30  ;;  %v6473_v18 = vpop.xlane.xlu0 %3541  ;;  %v3566_v30 = vmax.f32 %v6421_v60, 1.0 }
 0x591   : > { %v4851_v45 = vpop.eup %4850  ;;  %v3239_v3 = vpop.f32.mrf.mxu1  ;;  %v3568_v60 = vmax.f32 %v6428_v35, 1.0 }
 0x592   : > { %v3272_v42 = vmul.f32 0.5, %v3238_v21  ;;  %v3427_v20 = vmul.f32 %v6292_v5, %v3363_v28  ;;  %v3332_v54 = vmul.f32 0.5, %v4851_v45  ;;  %v3567_v21 = vmax.f32 %v6418_v63, 1.0 }
 0x594   : > { %4858 = vtanh.f32 %v3272_v42  ;;  %3485 = vadd.xlane.f32.xlu0 %v3427_v20  ;;  %v3364_v40 = vadd.f32 0.5, %v3332_v54  ;;  %v6478_v19 = vpop.xlane.xlu0 %3545  ;;  %v3569_v54 = vmax.f32 %v6425_v9, 1.0 }
 0x595   : > { %v4853_v62 = vpop.eup %4852  ;;  %4860 = vrcp.f32 %v3561_v32 }
 0x596   : > { %v3428_v8 = vmul.f32 %v6318_v31, %v3364_v40  ;;  %v3333_v47 = vmul.f32 0.5, %v4853_v62  ;;  %v6481_v31 = vpop.xlane.xlu1 %3543 }
 0x598   : > { %3487 = vadd.xlane.f32.xlu1 %v3428_v8  ;;  %v3365_v59 = vadd.f32 0.5, %v3333_v47 }
 0x599   : > { %v4855_v46 = vpop.eup %4854 }
 0x59a   : > { %v3429_v6 = vmul.f32 %v6306_v12, %v3365_v59  ;;  %v3334_v5 = vmul.f32 0.5, %v4855_v46  ;;  %v6485_v12 = vpop.xlane.xlu0 %3549  ;;  %v6487_v16 = vpop.xlane.xlu1 %3547  ;;  %v3570_v59 = vmax.f32 %v6435_v2, 1.0 }
 0x59c   : > { %3489 = vadd.xlane.f32.xlu0 %v3429_v6  ;;  %v3366_v41 = vadd.f32 0.5, %v3334_v5  ;;  %v3571_v5 = vmax.f32 %v6432_v58, 1.0 }
 0x59d   : > { %v4857_v0 = vpop.eup %4856 }
 0x59e   : > { %v3430_v13 = vmul.f32 %v6334_v49, %v3366_v41  ;;  %v3335_v4 = vmul.f32 0.5, %v4857_v0  ;;  %v3562_v49 = vmax.f32 %v6407_v10, 1.0  ;;  %v6491_v7 = vpop.xlane.xlu0 %3553  ;;  %v3565_v10 = vmax.f32 %v6411_v36, 1.0 }
 0x5a0   : > { %3491 = vadd.xlane.f32.xlu1 %v3430_v13  ;;  %v3367_v15 = vadd.f32 0.5, %v3335_v4  ;;  %4862 = vrcp.f32 %v3562_v49  ;;  %v3572_v13 = vmax.f32 %v6442_v37, 1.0  ;;  %v3575_v49 = vmax.f32 %v6446_v50, 1.0 }
 0x5a1   : > { %v4859_v14 = vpop.eup %4858  ;;  %4864 = vrcp.f32 %v3563_v39 }
 0x5a2   : > { %v3431_v44 = vmul.f32 %v6321_v57, %v3367_v15  ;;  %v3336_v27 = vmul.f32 0.5, %v4859_v14  ;;  %v6494_v57 = vpop.xlane.xlu1 %3551  ;;  %v6497_v34 = vpop.xlane.xlu0 %3557  ;;  %4866 = vrcp.f32 %v3564_v55  ;;  %v3573_v14 = vmax.f32 %v6439_v29, 1.0 }
 0x5a3   : > { %v4861_v26 = vpop.eup %4860  ;;  %4868 = vrcp.f32 %v3565_v10  ;;  %v3576_v55 = vmax.f32 %v6456_v22, 1.0 }
 0x5a4   : > { %3493 = vadd.xlane.f32.xlu0 %v3431_v44  ;;  %v3368_v51 = vadd.f32 0.5, %v3336_v27  ;;  %4870 = vrcp.f32 %v3566_v30  ;;  %v3574_v44 = vmax.f32 %v6449_v48, 1.0 }
 0x5a5   : > { %4872 = vrcp.f32 %v3567_v21 }
 0x5a6   : > { %v3432_v11 = vmul.f32 %v6347_v43, %v3368_v51  ;;  %v6499_v17 = vpop.xlane.xlu1 %3555  ;;  %4874 = vrcp.f32 %v3568_v60  ;;  %v3580_v60 = vmax.f32 %v6470_v1, 1.0 }
 0x5a7   : > { %4876 = vrcp.f32 %v3569_v54 }
 0x5a8   : > { %3495 = vadd.xlane.f32.xlu1 %v3432_v11  ;;  %4878 = vrcp.f32 %v3570_v59 }
 0x5a9   : > { %4880 = vrcp.f32 %v3571_v5 }
 0x5aa   : > { %v6508_v56 = vpop.xlane.xlu1 %3559  ;;  %4882 = vrcp.f32 %v3572_v13  ;;  %v3586_v13 = vmax.f32 %v6487_v16, 1.0 }
 0x5ab   : > { %4884 = vrcp.f32 %v3573_v14 }
 0x5ac   : > { %4886 = vrcp.f32 %v3574_v44 }
 0x5ad   : > { %v4863_v38 = vpop.eup %4862  ;;  %4888 = vrcp.f32 %v3575_v49 }
 0x5ae   : > { %v4865_v28 = vpop.eup %4864  ;;  %4890 = vrcp.f32 %v3576_v55  ;;  %v3591_v55 = vmax.f32 %v6497_v34, 1.0 }
 0x5af   : > { %v4867_v42 = vpop.eup %4866 }
 0x5b0   : > { %v4869_v63 = vpop.eup %4868 }
 0x5b1   : > { %v4871_v47 = vpop.eup %4870 }
 0x5b2   : > { %v4873_v6 = vpop.eup %4872 }
 0x5b3   : > { %v4875_v0 = vpop.eup %4874 }
 0x5b4   : > { %v3434_v43 = vpop.xlane.xlu0 %3433  ;;  %v4877_v15 = vpop.eup %4876 }
 0x5b5   : > { %v3625_v33 = vmul.f32 %v4861_v26, %v3434_v43  ;;  %v4879_v27 = vpop.eup %4878  ;;  %v3577_v43 = vmax.f32 %v6453_v61, 1.0 }
 0x5b6   : > { %v4881_v11 = vpop.eup %4880 }
 0x5b7   : > { %3657 = vst [vmem:[%s6505_s15] sm:$0xff] %v3625_v33  ;;  %v4883_v26 = vpop.eup %4882  ;;  %4892 = vrcp.f32 %v3577_v43 }
 0x5b8   : > { %v4885_v33 = vpop.eup %4884 }
 0x5b9   : > { %v3436_v52 = vpop.xlane.xlu0 %3435 }
 0x5ba   : > { %v3626_v36 = vmul.f32 %v4863_v38, %v3436_v52  ;;  %v3578_v38 = vmax.f32 %v6463_v25, 1.0  ;;  %v4887_v52 = vpop.eup %4886 }
 0x5bc   : > { %3658 = vst [vmem:[%s6505_s15 + $0x8] sm:$0xff] %v3626_v36  ;;  %v3579_v36 = vmax.f32 %v6460_v24, 1.0  ;;  %4894 = vrcp.f32 %v3578_v38 }
 0x5bd   : > { %v3438_v45 = vpop.xlane.xlu1 %3437 }
 0x5be   : > { %v3627_v3 = vmul.f32 %v4865_v28, %v3438_v45  ;;  %v4889_v28 = vpop.eup %4888  ;;  %4896 = vrcp.f32 %v3579_v36 }
 0x5bf   : > { %4898 = vrcp.f32 %v3580_v60 }
 0x5c0   : > { %3659 = vst [vmem:[%s6505_s15 + $0x10] sm:$0xff] %v3627_v3  ;;  %v4891_v3 = vpop.eup %4890 }
 0x5c1   : > { %v3440_v20 = vpop.xlane.xlu1 %3439 }
 0x5c2   : > { %v3628_v40 = vmul.f32 %v4867_v42, %v3440_v20  ;;  %v3581_v20 = vmax.f32 %v6467_v23, 1.0 }
 0x5c4   : > { %3660 = vst [vmem:[%s6505_s15 + $0x18] sm:$0xff] %v3628_v40  ;;  %v4893_v54 = vpop.eup %4892  ;;  %4900 = vrcp.f32 %v3581_v20 }
 0x5c5   : > { %v3442_v62 = vpop.xlane.xlu0 %3441 }
 0x5c6   : > { %v3629_v8 = vmul.f32 %v4869_v63, %v3442_v62  ;;  %v3582_v63 = vmax.f32 %v6475_v53, 1.0 }
 0x5c8   : > { %3661 = vst [vmem:[%s6505_s15 + $0x20] sm:$0xff] %v3629_v8  ;;  %4902 = vrcp.f32 %v3582_v63 }
 0x5c9   : > { %v3444_v35 = vpop.xlane.xlu1 %3443  ;;  %v4895_v62 = vpop.eup %4894 }
 0x5ca   : > { %v3630_v46 = vmul.f32 %v4871_v47, %v3444_v35  ;;  %v3583_v47 = vmax.f32 %v6473_v18, 1.0 }
 0x5cb   : > { %v4897_v59 = vpop.eup %4896 }
 0x5cc   : > { %3662 = vst [vmem:[%s6505_s15 + $0x28] sm:$0xff] %v3630_v46  ;;  %4904 = vrcp.f32 %v3583_v47  ;;  %v3584_v46 = vmax.f32 %v6481_v31, 1.0 }
 0x5cd   : > { %v3446_v9 = vpop.xlane.xlu0 %3445 }
 0x5ce   : > { %v3631_v41 = vmul.f32 %v4873_v6, %v3446_v9  ;;  %v4899_v6 = vpop.eup %4898  ;;  %v3585_v9 = vmax.f32 %v6478_v19, 1.0  ;;  %4906 = vrcp.f32 %v3584_v46 }
 0x5d0   : > { %3663 = vst [vmem:[%s6505_s15 + $0x30] sm:$0xff] %v3631_v41  ;;  %4908 = vrcp.f32 %v3585_v9 }
 0x5d1   : > { %v3448_v4 = vpop.xlane.xlu1 %3447  ;;  %v4901_v41 = vpop.eup %4900  ;;  %4910 = vrcp.f32 %v3586_v13 }
 0x5d2   : > { %v3632_v2 = vmul.f32 %v4875_v0, %v3448_v4 }
 0x5d4   : > { %3664 = vst [vmem:[%s6505_s15 + $0x38] sm:$0xff] %v3632_v2 }
 0x5d5   : > { %v3450_v32 = vpop.xlane.xlu0 %3449  ;;  %v4903_v4 = vpop.eup %4902 }
 0x5d6   : > { %v3633_v58 = vmul.f32 %v4877_v15, %v3450_v32  ;;  %v3587_v15 = vmax.f32 %v6485_v12, 1.0 }
 0x5d8   : > { %3665 = vst [vmem:[%s6505_s15 + $0x40] sm:$0xff] %v3633_v58  ;;  %4912 = vrcp.f32 %v3587_v15  ;;  %v3588_v58 = vmax.f32 %v6494_v57, 1.0 }
 0x5d9   : > { %v3452_v51 = vpop.xlane.xlu1 %3451  ;;  %v4905_v14 = vpop.eup %4904 }
 0x5da   : > { %v3634_v37 = vmul.f32 %v4879_v27, %v3452_v51  ;;  %v3589_v51 = vmax.f32 %v6491_v7, 1.0  ;;  %4914 = vrcp.f32 %v3588_v58 }
 0x5db   : > { %v4907_v44 = vpop.eup %4906 }
 0x5dc   : > { %3666 = vst [vmem:[%s6505_s15 + $0x48] sm:$0xff] %v3634_v37  ;;  %4916 = vrcp.f32 %v3589_v51 }
 0x5dd   : > { %v3454_v39 = vpop.xlane.xlu0 %3453  ;;  %v4909_v37 = vpop.eup %4908 }
 0x5de   : > { %v3635_v29 = vmul.f32 %v4881_v11, %v3454_v39  ;;  %v3590_v11 = vmax.f32 %v6499_v17, 1.0  ;;  %v4911_v39 = vpop.eup %4910 }
 0x5e0   : > { %3667 = vst [vmem:[%s6505_s15 + $0x50] sm:$0xff] %v3635_v29  ;;  %4918 = vrcp.f32 %v3590_v11 }
 0x5e1   : > { %v3456_v10 = vpop.xlane.xlu1 %3455  ;;  %4920 = vrcp.f32 %v3591_v55 }
 0x5e2   : > { %v3636_v48 = vmul.f32 %v4883_v26, %v3456_v10 }
 0x5e4   : > { %3668 = vst [vmem:[%s6505_s15 + $0x58] sm:$0xff] %v3636_v48  ;;  %v3592_v48 = vmax.f32 %v6508_v56, 1.0 }
 0x5e5   : > { %v3458_v50 = vpop.xlane.xlu0 %3457  ;;  %v4913_v7 = vpop.eup %4912 }
 0x5e6   : > { %v3637_v30 = vmul.f32 %v4885_v33, %v3458_v50  ;;  %4922 = vrcp.f32 %v3592_v48 }
 0x5e7   : > { %v4915_v43 = vpop.eup %4914 }
 0x5e8   : > { %3669 = vst [vmem:[%s6505_s15 + $0x60] sm:$0xff] %v3637_v30 }
 0x5e9   : > { %v3460_v21 = vpop.xlane.xlu1 %3459  ;;  %v4917_v34 = vpop.eup %4916 }
 0x5ea   : > { %v3638_v22 = vmul.f32 %v4887_v52, %v3460_v21 }
 0x5ec   : > { %3670 = vst [vmem:[%s6505_s15 + $0x68] sm:$0xff] %v3638_v22 }
 0x5ed   : > { %v3462_v61 = vpop.xlane.xlu0 %3461  ;;  %v4919_v38 = vpop.eup %4918 }
 0x5ee   : > { %v3639_v45 = vmul.f32 %v4889_v28, %v3462_v61  ;;  %v4921_v56 = vpop.eup %4920 }
 0x5f0   : > { %3671 = vst [vmem:[%s6505_s15 + $0x70] sm:$0xff] %v3639_v45 }
 0x5f1   : > { %v3464_v42 = vpop.xlane.xlu1 %3463 }
 0x5f2   : > { %v3640_v25 = vmul.f32 %v4891_v3, %v3464_v42 }
 0x5f3   : > { %v4923_v28 = vpop.eup %4922 }
 0x5f4   : > { %3672 = vst [vmem:[%s6505_s15 + $0x78] sm:$0xff] %v3640_v25 }
 0x5f5   : > { %v3466_v24 = vpop.xlane.xlu0 %3465 }
 0x5f6   : > { %v3641_v40 = vmul.f32 %v4893_v54, %v3466_v24 }
 0x5f8   : > { %3673 = vst [vmem:[%s6505_s15 + $0x80] sm:$0xff] %v3641_v40 }
 0x5f9   : > { %v3468_v8 = vpop.xlane.xlu1 %3467 }
 0x5fa   : > { %v3642_v1 = vmul.f32 %v4895_v62, %v3468_v8 }
 0x5fc   : > { %3674 = vst [vmem:[%s6505_s15 + $0x88] sm:$0xff] %v3642_v1 }
 0x5fd   : > { %v3470_v23 = vpop.xlane.xlu0 %3469 }
 0x5fe   : > { %v3643_v35 = vmul.f32 %v4897_v59, %v3470_v23 }
 0x600   : > { %3675 = vst [vmem:[%s6505_s15 + $0x90] sm:$0xff] %v3643_v35 }
 0x601   : > { %v3472_v5 = vpop.xlane.xlu1 %3471 }
 0x602   : > { %v3644_v53 = vmul.f32 %v4899_v6, %v3472_v5 }
 0x604   : > { %3676 = vst [vmem:[%s6505_s15 + $0x98] sm:$0xff] %v3644_v53 }
 0x605   : > { %v3474_v18 = vpop.xlane.xlu0 %3473 }
 0x606   : > { %v3645_v0 = vmul.f32 %v4901_v41, %v3474_v18 }
 0x608   : > { %3677 = vst [vmem:[%s6505_s15 + $0xa0] sm:$0xff] %v3645_v0 }
 0x609   : > { %v3476_v2 = vpop.xlane.xlu1 %3475 }
 0x60a   : > { %v3646_v31 = vmul.f32 %v4903_v4, %v3476_v2 }
 0x60c   : > { %3678 = vst [vmem:[%s6505_s15 + $0xa8] sm:$0xff] %v3646_v31 }
 0x60d   : > { %v3478_v19 = vpop.xlane.xlu0 %3477 }
 0x60e   : > { %v3647_v32 = vmul.f32 %v4905_v14, %v3478_v19 }
 0x610   : > { %3679 = vst [vmem:[%s6505_s15 + $0xb0] sm:$0xff] %v3647_v32 }
 0x611   : > { %v3480_v27 = vpop.xlane.xlu1 %3479 }
 0x612   : > { %v3648_v16 = vmul.f32 %v4907_v44, %v3480_v27 }
 0x614   : > { %3680 = vst [vmem:[%s6505_s15 + $0xb8] sm:$0xff] %v3648_v16 }
 0x615   : > { %v3482_v12 = vpop.xlane.xlu0 %3481 }
 0x616   : > { %v3649_v49 = vmul.f32 %v4909_v37, %v3482_v12 }
 0x618   : > { %3681 = vst [vmem:[%s6505_s15 + $0xc0] sm:$0xff] %v3649_v49 }
 0x619   : > { %v3484_v57 = vpop.xlane.xlu1 %3483 }
 0x61a   : > { %v3650_v29 = vmul.f32 %v4911_v39, %v3484_v57 }
 0x61c   : > { %3682 = vst [vmem:[%s6505_s15 + $0xc8] sm:$0xff] %v3650_v29 }
 0x61d   : > { %v3486_v26 = vpop.xlane.xlu0 %3485 }
 0x61e   : > { %v3651_v10 = vmul.f32 %v4913_v7, %v3486_v26 }
 0x620   : > { %3683 = vst [vmem:[%s6505_s15 + $0xd0] sm:$0xff] %v3651_v10 }
 0x621   : > { %v3488_v17 = vpop.xlane.xlu1 %3487 }
 0x622   : > { %v3652_v33 = vmul.f32 %v4915_v43, %v3488_v17 }
 0x624   : > { %3684 = vst [vmem:[%s6505_s15 + $0xd8] sm:$0xff] %v3652_v33 }
 0x625   : > { %v3490_v50 = vpop.xlane.xlu0 %3489 }
 0x626   : > { %v3653_v30 = vmul.f32 %v4917_v34, %v3490_v50 }
 0x628   : > { %3685 = vst [vmem:[%s6505_s15 + $0xe0] sm:$0xff] %v3653_v30 }
 0x629   : > { %v3492_v52 = vpop.xlane.xlu1 %3491 }
 0x62a   : > { %v3654_v21 = vmul.f32 %v4919_v38, %v3492_v52 }
 0x62c   : > { %3686 = vst [vmem:[%s6505_s15 + $0xe8] sm:$0xff] %v3654_v21 }
 0x62d   : > { %v3494_v22 = vpop.xlane.xlu0 %3493 }
 0x62e   : > { %v3655_v36 = vmul.f32 %v4921_v56, %v3494_v22 }
 0x630   : > { %3687 = vst [vmem:[%s6505_s15 + $0xf0] sm:$0xff] %v3655_v36 }
 0x631   : > { %v3496_v61 = vpop.xlane.xlu1 %3495 }
 0x632   : > { %v3656_v45 = vmul.f32 %v4923_v28, %v3496_v61 }
 0x634   : > { %3688 = vst [vmem:[%s6505_s15 + $0xf8] sm:$0xff] %v3656_v45 }
 0x635   : > { %5035 = shalt.err (!%p5032_p0)
}
 0x636   : > { %s5036_s3 = scalar_lea.hbm %s6571_s20, 4096  ;;  %s5040_s6 = scalar_lea.hbm %s6619_s2, 8192 }
 0x637   : > { %p5037_p5 = scmp.ne.s32.totalorder %s6571_s20, %s5036_s3  ;;  %p5041_p4 = scmp.lt.s32.totalorder %s6571_s20, %s6619_s2 }
 0x638   : > { %p5042_p6 = scmp.lt.s32.totalorder %s5040_s6, %s5036_s3 }
 0x639   : > { %p5038_p9 = pnand %p5037_p5, %p6686_p11 }
 0x63a   : > { %p5043_p8 = por %p5042_p6, %p5041_p4 }
 0x63b   : > { %p5039_p1 = pneg %p5038_p9 }
 0x63d   : > { %p5044_p3 = pnand %p5043_p8, %p5039_p1 }
 0x63f   : > { %5047 = shalt.err (!%p5044_p3)
}
 0x640   : > { %s5100_s23 = smov 128   ;;  %s5101_s24 = smov 8  }
 0x641   : > { %4226 = dma.vmem_to_hbm [thread:$0]  (%p6686_p11), %s6573_s8, 4096, %s6571_s20, %s3690_s25, %s5100_s23, %s5100_s23, %s5101_s24  }
 0x642 PF: > { %s3718_s15 = sand.u32 1, %s5078_s9   ;;  %p6687_p7 = scmp.ne.s32.totalorder %s6635_s16, 0 }
 0x643   : > { %p6688_p12 = scmp.ge.s32.totalorder %s5090_s12, 2  ;;  %s3719_s17 = scalar_lea.sflag [#allocation4], %s3718_s15 }
 0x645   : > { %p4237_p10 = pnand %p6688_p12, %p6687_p7 }
 0x647   : > { %p4238_p2 = pneg %p4237_p10 }
 0x649   : > { %5073 = dma.done.wait (%p4238_p2), %s3719_s17, 4096  }
 0x64a   : > { %5075 = vsyncadd (%p4238_p2), %s3719_s17, 4294963200  ;;  %p16_p13 = scmp.ge.s32.totalorder %s5171_s21, 4   ;;  %s6689_s9 = smov %s5082_s10 }
 0x64b   : > { %s6690_s10 = smov %s5086_s11  ;;  %s6691_s11 = smov %s5188_s29 }
 0x64c   : > { %s6692_s12 = smov %s5171_s21  ;;  %18 = sbr.rel (!%p16_p13) target bundleno = 6 (0x6), region = 79 }
 0x651   :  { %3724 = vsyncpa [#allocation3], 1 }
 0x652   :  { %3726 = vsyncpa [#allocation3 + $0x1], 1 }
 0x653   :  { %3727 = vsyncpa [#allocation6], 1 }
 0x654   :  { %3728 = vsyncpa [#allocation4], 1 }
 0x655   :  { %3730 = vsyncpa [#allocation4 + $0x1], 1 }

</bundles_post_ra>
